<compile_context>
chip_gen: v7x
topology: tpu7x:2x2x1
jax: 0.10.0
libtpu: 0.0.40
codegen_flags: <defaults>
</compile_context>

<pallas_src>
import math

import jax
import jax.numpy as jnp
from jax.experimental import pallas as pl
from jax.experimental.pallas import tpu as pltpu

# ---- module-consistent hyper-parameters ---------------------------------------
EMBED_DIM = 32                    # d_model
OUTPUT_DIM = 512                  # fMRI volume size
NUM_HEADS = 4
NUM_LAYERS = 2
CHUNK = 64                        # per-query output chunk (Linear(..., 64))
NUM_QUERIES = OUTPUT_DIM // 64    # = 8
FFN_DIM = EMBED_DIM * 4
HEAD_DIM = EMBED_DIM // NUM_HEADS
OUT_WIDTH = NUM_QUERIES * CHUNK   # 512 lane-dense kernel output width
EPS = 1e-5                        # PyTorch LayerNorm default eps

# rows inside the packed per-layer vector slab (L, 11, 4E)
ROW_BSAO, ROW_CAB, ROW_B2, ROW_BQKV, ROW_B1 = 6, 7, 8, 9, 10
# rows inside the packed output-projection slab (105, 2E); offsets 8-aligned
P2_ROW = EMBED_DIM + 8            # 40
P2B_ROW = P2_ROW + 2 * EMBED_DIM  # 104
PROJ_ROWS = P2B_ROW + 1           # 105


def _mm(a, b):
    """2-D matmul with fp32 accumulation (contractions here are tiny, E<=128;
    bf16 operands would not pay for the casts on any TPU generation)."""
    return jnp.dot(a, b, preferred_element_type=jnp.float32)


# ---- the Pallas kernel: whole decoder stack for one batch tile -----------------
def decoder_kernel(enc_ref, x0_ref, w_in_ref, w_out_ref, vecs_ref, proj_ref,
                   out_ref):
    TB = enc_ref.shape[0]
    E, Q, H, Dh = EMBED_DIM, NUM_QUERIES, NUM_HEADS, HEAD_DIM
    F, C = FFN_DIM, CHUNK
    R = TB * Q

    def vec(l, row, width):
        # one packed per-layer vector, shape (1, width)
        return vecs_ref[l, row:row + 1, :width]

    def layer_norm(v, l, which):          # which: 0 -> norm1, 1 -> norm2, 2 -> norm3
        w = vec(l, 2 * which, E)
        b = vec(l, 2 * which + 1, E)
        mu = jnp.mean(v, axis=-1, keepdims=True)
        var = jnp.mean((v - mu) ** 2, axis=-1, keepdims=True)
        return (v - mu) * jax.lax.rsqrt(var + EPS) * w + b

    mem = enc_ref[...]                                              # (TB, E)
    # Layer-0 self-attention + norm1 is batch-independent -> precomputed in the
    # wrapper; broadcast it over the batch tile.
    x = jnp.broadcast_to(x0_ref[...][None], (TB, Q, E)).reshape(R, E)

    for l in range(NUM_LAYERS):                                     # static unroll
        if l > 0:
            # ---- self-attention (1/sqrt(Dh) pre-folded into Q weight/bias) ----
            qkv = _mm(x, w_in_ref[l, :E, :3 * E]) + vec(l, ROW_BQKV, 3 * E)
            q, k, v = qkv[:, :E], qkv[:, E:2 * E], qkv[:, 2 * E:]
            acc = jnp.zeros((R, E), jnp.float32)
            for h in range(H):                                      # static head loop
                sl = slice(h * Dh, (h + 1) * Dh)
                qh = q[:, sl].reshape(TB, Q, Dh)
                kh = k[:, sl].reshape(TB, Q, Dh)
                vh = v[:, sl].reshape(TB, Q, Dh)
                s = jnp.einsum('bqd,bkd->bqk', qh, kh,
                               preferred_element_type=jnp.float32)
                s = s - jnp.max(s, axis=-1, keepdims=True)
                p = jnp.exp(s)
                p = p * pl.reciprocal(jnp.sum(p, axis=-1, keepdims=True),
                                      approx=True)
                oh = jnp.einsum('bqk,bkd->bqd', p, vh,
                                preferred_element_type=jnp.float32)
                # fold concat + out_proj into per-head accumulation
                acc = acc + _mm(oh.reshape(R, Dh), w_out_ref[l, sl, :])
            x = layer_norm(x + acc + vec(l, ROW_BSAO, E), l, 0)

        # ---- cross-attention vs a single memory token: softmax == 1, folded
        #      into one (E,E) matmul; broadcast the result instead of reshaping x.
        ca = _mm(mem, w_out_ref[l, E:2 * E, :]) + vec(l, ROW_CAB, E)   # (TB, E)
        ca = jnp.broadcast_to(ca[:, None, :], (TB, Q, E)).reshape(R, E)
        x = layer_norm(x + ca, l, 1)

        # ---- feed-forward ----
        hdn = jnp.maximum(_mm(x, w_in_ref[l, E:, :]) + vec(l, ROW_B1, F), 0.0)
        x = layer_norm(x + _mm(hdn, w_out_ref[l, 2 * E:, :]) + vec(l, ROW_B2, E),
                       l, 2)

    # ---- output projection (no (R,512) temps, no iota/select/reduce) ----
    h1 = jnp.maximum(_mm(x, proj_ref[:E, :]) + proj_ref[E:E + 1, :], 0.0)  # (R, 2E)
    ch = jnp.tanh(_mm(h1, proj_ref[P2_ROW:P2_ROW + 2 * E, :])
                  + proj_ref[P2B_ROW:P2B_ROW + 1, :])                      # (R, C)
    ch = ch.reshape(TB, Q, C)          # row split only; vreg layout unchanged
    # Emit the lane-dense (TB, 512) block via Q static 64-lane stores.
    for i in range(Q):
        out_ref[:, i * C:(i + 1) * C] = ch[:, i, :]


# ---- wrapper-side parameter preparation ----------------------------------------
def _precompute_block0(p):
    """Layer-0 self-attention + norm1 on the (batch-independent) learned queries."""
    E, H, Dh = EMBED_DIM, NUM_HEADS, HEAD_DIM
    scale = 1.0 / math.sqrt(Dh)
    x = p["queries"]                                       # (Q, E)
    iw, ib = p["sa_in_w"][0], p["sa_in_b"][0, 0]
    ow, ob = p["sa_out_w"][0], p["sa_out_b"][0, 0]
    q = x @ iw[:E].T + ib[:E]
    k = x @ iw[E:2 * E].T + ib[E:2 * E]
    v = x @ iw[2 * E:].T + ib[2 * E:]
    acc = jnp.zeros_like(x)
    for h in range(H):
        sl = slice(h * Dh, (h + 1) * Dh)
        s = (q[:, sl] @ k[:, sl].T) * scale
        s = s - jnp.max(s, -1, keepdims=True)
        pr = jnp.exp(s)
        pr = pr / jnp.sum(pr, -1, keepdims=True)
        acc = acc + (pr @ v[:, sl]) @ ow[:, sl].T
    y = x + acc + ob
    mu = jnp.mean(y, -1, keepdims=True)
    var = jnp.mean((y - mu) ** 2, -1, keepdims=True)
    return (y - mu) * jax.lax.rsqrt(var + EPS) * p["n1_w"][0, 0] + p["n1_b"][0, 0]


def _prepare_params(p):
    """Pre-transpose / pre-fold / pack weights for the kernel (layout plumbing)."""
    E, F = EMBED_DIM, FFN_DIM
    scale = 1.0 / math.sqrt(HEAD_DIM)
    t = lambda w: jnp.transpose(w, (0, 2, 1))
    lane_pad = lambda a, w: jnp.pad(a, ((0, 0), (0, 0), (0, w - a.shape[-1])))

    # fused QKV projection, (in, out) layout; 1/sqrt(Dh) folded into Q columns
    wqkv = t(p["sa_in_w"]).at[:, :, :E].multiply(scale)          # (L, E, 3E)
    bqkv = p["sa_in_b"].at[:, :, :E].multiply(scale)             # (L, 1, 3E)
    wsao = t(p["sa_out_w"])                                      # (L, E, E)

    # cross-attention vs a single memory token folds to one (E,E) matmul + bias
    ca_v_w = p["ca_in_w"][:, 2 * E:, :]                          # (L, E, E) (out,in)
    ca_v_b = p["ca_in_b"][:, :, 2 * E:]                          # (L, 1, E)
    ca_o_wt = t(p["ca_out_w"])                                   # (L, E, E) (in,out)
    caw = jnp.matmul(t(ca_v_w), ca_o_wt)                         # (L, E, E)
    cab = jnp.matmul(ca_v_b, ca_o_wt) + p["ca_out_b"]            # (L, 1, E)

    w1, w2 = t(p["lin1_w"]), t(p["lin2_w"])                      # (L,E,4E), (L,4E,E)

    # --- packed slabs (6 kernel inputs total) --------------------------------
    w_in = jnp.concatenate([lane_pad(wqkv, F), w1], axis=1)      # (L, 2E, 4E)
    w_out = jnp.concatenate([wsao, caw, w2], axis=1)             # (L, 6E, E)
    vecs = jnp.concatenate([
        lane_pad(p["n1_w"], F), lane_pad(p["n1_b"], F),          # rows 0,1
        lane_pad(p["n2_w"], F), lane_pad(p["n2_b"], F),          # rows 2,3
        lane_pad(p["n3_w"], F), lane_pad(p["n3_b"], F),          # rows 4,5
        lane_pad(p["sa_out_b"], F),                              # row 6 ROW_BSAO
        lane_pad(cab, F),                                        # row 7 ROW_CAB
        lane_pad(p["lin2_b"], F),                                # row 8 ROW_B2
        lane_pad(bqkv, F),                                       # row 9 ROW_BQKV
        p["lin1_b"],                                             # row 10 ROW_B1
    ], axis=1)                                                   # (L, 11, 4E)
    proj = jnp.concatenate([
        p["p1_w"].T,                                             # rows 0..E-1
        jnp.pad(p["p1_b"], ((0, 7), (0, 0))),                    # bias at row E
        p["p2_w"].T,                                             # rows 40..103
        p["p2_b"],                                               # row 104
    ], axis=0)                                                   # (105, 2E)

    return dict(x0=_precompute_block0(p), w_in=w_in, w_out=w_out,
                vecs=vecs, proj=proj)


def vit_decoder_forward(encoded, params, *, tile_b=None):
    B, E = encoded.shape
    Q, L, F = NUM_QUERIES, NUM_LAYERS, FFN_DIM

    round8 = lambda v: ((v + 7) // 8) * 8
    if tile_b is None:
        TB = min(256, round8(B))
        # keep >= 2 grid steps when the batch allows it so both v7x TensorCores
        # get a "parallel" grid step to run.
        if B > 8 and -(-B // TB) < 2:
            TB = round8(-(-B // 2))
    else:
        TB = tile_b
    B_pad = -(-B // TB) * TB

    enc = encoded.astype(jnp.float32)
    if B_pad != B:
        enc = jnp.concatenate(
            [enc, jnp.zeros((B_pad - B, E), jnp.float32)], axis=0)

    kp = _prepare_params(params)

    def rep(shape):
        n = len(shape)
        return pl.BlockSpec(shape, lambda b, _n=n: (0,) * _n)

    in_specs = [
        pl.BlockSpec((TB, E), lambda b: (b, 0)),        # encoded (batch tiled)
        rep((Q, E)),                                    # queries after block 0
        rep((L, 2 * E, F)),                             # [wqkv | w1]
        rep((L, 6 * E, E)),                             # [wsao ; caw ; w2]
        rep((L, 11, F)),                                # LN params + biases
        rep((PROJ_ROWS, 2 * E)),                        # output projection slab
    ]

    out = pl.pallas_call(
        decoder_kernel,
        out_shape=jax.ShapeDtypeStruct((B_pad, OUT_WIDTH), jnp.float32),
        grid=(B_pad // TB,),
        in_specs=in_specs,
        out_specs=pl.BlockSpec((TB, OUT_WIDTH), lambda b: (b, 0)),
        compiler_params=pltpu.CompilerParams(
            dimension_semantics=("parallel",),
            vmem_limit_bytes=32 * 1024 * 1024),
    )(enc, kp["x0"], kp["w_in"], kp["w_out"], kp["vecs"], kp["proj"])

    fmri = out[:B]
    # pad / truncate epilogue from the module (dead code: Q*CHUNK == OUTPUT_DIM)
    if OUT_WIDTH < OUTPUT_DIM:
        fmri = jnp.concatenate(
            [fmri, jnp.zeros((B, OUTPUT_DIM - OUT_WIDTH), fmri.dtype)], axis=1)
    elif OUT_WIDTH > OUTPUT_DIM:
        fmri = fmri[:, :OUTPUT_DIM]
    return fmri


# ---- deterministic parameter construction --------------------------------------
def init_params(key):
    E, L, Q = EMBED_DIM, NUM_LAYERS, NUM_QUERIES
    keys = iter(jax.random.split(key, 64))

    def rnd(shape, scale=0.1):
        return (scale * jax.random.normal(next(keys), shape)).astype(jnp.float32)

    return {
        "queries": rnd((Q, E), 1.0),                   # torch.randn init
        "sa_in_w": rnd((L, 3 * E, E)), "sa_in_b": rnd((L, 1, 3 * E), 0.01),
        "sa_out_w": rnd((L, E, E)),    "sa_out_b": rnd((L, 1, E), 0.01),
        "ca_in_w": rnd((L, 3 * E, E)), "ca_in_b": rnd((L, 1, 3 * E), 0.01),
        "ca_out_w": rnd((L, E, E)),    "ca_out_b": rnd((L, 1, E), 0.01),
        "lin1_w": rnd((L, FFN_DIM, E)), "lin1_b": rnd((L, 1, FFN_DIM), 0.01),
        "lin2_w": rnd((L, E, FFN_DIM)), "lin2_b": rnd((L, 1, E), 0.01),
        "n1_w": jnp.ones((L, 1, E), jnp.float32), "n1_b": jnp.zeros((L, 1, E), jnp.float32),
        "n2_w": jnp.ones((L, 1, E), jnp.float32), "n2_b": jnp.zeros((L, 1, E), jnp.float32),
        "n3_w": jnp.ones((L, 1, E), jnp.float32), "n3_b": jnp.zeros((L, 1, E), jnp.float32),
        "p1_w": rnd((2 * E, E)),     "p1_b": rnd((1, 2 * E), 0.01),
        "p2_w": rnd((CHUNK, 2 * E)), "p2_b": rnd((1, CHUNK), 0.01),
    }


# ---- pure-JAX reference (mirrors PyTorch post-norm decoder, eval mode) ----------
def reference_forward(encoded, p):
    B = encoded.shape[0]
    E, H, Dh = EMBED_DIM, NUM_HEADS, HEAD_DIM
    scale = 1.0 / math.sqrt(Dh)

    def ln(v, w, b):
        mu = jnp.mean(v, -1, keepdims=True)
        var = jnp.mean((v - mu) ** 2, -1, keepdims=True)
        return (v - mu) * jax.lax.rsqrt(var + EPS) * w + b

    def mha(qin, kvin, iw, ib, ow, ob):
        q = qin @ iw[:E].T + ib[0, :E]
        k = kvin @ iw[E:2 * E].T + ib[0, E:2 * E]
        v = kvin @ iw[2 * E:].T + ib[0, 2 * E:]
        acc = jnp.zeros(qin.shape, jnp.float32)
        for h in range(H):
            sl = slice(h * Dh, (h + 1) * Dh)
            s = jnp.einsum("bqd,bkd->bqk", q[..., sl], k[..., sl]) * scale
            s = s - jnp.max(s, -1, keepdims=True)
            pr = jnp.exp(s)
            pr = pr / jnp.sum(pr, -1, keepdims=True)
            oh = jnp.einsum("bqk,bkd->bqd", pr, v[..., sl])
            acc = acc + oh @ ow[:, sl].T
        return acc + ob[0]

    mem = encoded[:, None, :]
    x = jnp.broadcast_to(p["queries"][None], (B, NUM_QUERIES, E))
    for l in range(NUM_LAYERS):
        x = ln(x + mha(x, x, p["sa_in_w"][l], p["sa_in_b"][l],
                       p["sa_out_w"][l], p["sa_out_b"][l]),
               p["n1_w"][l, 0], p["n1_b"][l, 0])
        x = ln(x + mha(x, mem, p["ca_in_w"][l], p["ca_in_b"][l],
                       p["ca_out_w"][l], p["ca_out_b"][l]),
               p["n2_w"][l, 0], p["n2_b"][l, 0])
        h = jnp.maximum(x @ p["lin1_w"][l].T + p["lin1_b"][l, 0], 0.0)
        x = ln(x + h @ p["lin2_w"][l].T + p["lin2_b"][l, 0],
               p["n3_w"][l, 0], p["n3_b"][l, 0])
    h1 = jnp.maximum(x @ p["p1_w"].T + p["p1_b"][0], 0.0)
    out = jnp.tanh(h1 @ p["p2_w"].T + p["p2_b"][0])
    return out.reshape(B, -1)[:, :OUTPUT_DIM]


if __name__ == "__main__":
    key = jax.random.PRNGKey(0)
    k_in, k_par = jax.random.split(key)

    B = 2
    encoded = jax.random.normal(k_in, (B, EMBED_DIM), jnp.float32)
    params = init_params(k_par)

    fmri = jax.jit(vit_decoder_forward)(encoded, params)
    fmri = jax.block_until_ready(fmri)

    assert fmri.shape == (B, OUTPUT_DIM), fmri.shape

    ref = reference_forward(encoded, params)
    err = float(jnp.max(jnp.abs(fmri - ref)))
    # 1e-3 tolerance: the kernel uses the approximate EUP reciprocal for the
    # softmax denominator; everything else is exact fp32.
    assert jnp.allclose(fmri, ref, rtol=1e-3, atol=1e-3), err

    # TODO(synk): training-mode dropout (p=0.1) is not implemented; eval-mode
    # (identity) semantics are reproduced, matching module.eval() behaviour.
    print("KERNEL_OK")
</pallas_src>

<mosaic_0001>
module attributes {stable_mosaic.version = 11 : i64} {
  func.func @decoder_kernel(%arg0: i32, %arg1: memref<8x32xf32, #tpu.memory_space<vmem>>, %arg2: memref<8x32xf32, #tpu.memory_space<vmem>>, %arg3: memref<2x64x128xf32, #tpu.memory_space<vmem>>, %arg4: memref<2x192x32xf32, #tpu.memory_space<vmem>>, %arg5: memref<2x11x128xf32, #tpu.memory_space<vmem>>, %arg6: memref<105x64xf32, #tpu.memory_space<vmem>>, %arg7: memref<8x512xf32, #tpu.memory_space<vmem>>) attributes {dimension_semantics = [#tpu.dimension_semantics<parallel>], iteration_bounds = array<i64: 1>, scalar_prefetch = 0 : i64, scratch_operands = 0 : i64, tpu.core_type = #tpu.core_type<tc>, window_params = [{transform_indices = @transform_0, window_bounds = array<i64: 8, 32>}, {pipeline_mode = #tpu.pipeline_mode<synchronous>, transform_indices = @transform_1, window_bounds = array<i64: 8, 32>}, {pipeline_mode = #tpu.pipeline_mode<synchronous>, transform_indices = @transform_2, window_bounds = array<i64: 2, 64, 128>}, {pipeline_mode = #tpu.pipeline_mode<synchronous>, transform_indices = @transform_3, window_bounds = array<i64: 2, 192, 32>}, {pipeline_mode = #tpu.pipeline_mode<synchronous>, transform_indices = @transform_4, window_bounds = array<i64: 2, 11, 128>}, {pipeline_mode = #tpu.pipeline_mode<synchronous>, transform_indices = @transform_5, window_bounds = array<i64: 105, 64>}, {transform_indices = @transform_6, window_bounds = array<i64: 8, 512>}]} {
    %c0 = arith.constant 0 : index
    %c0_0 = arith.constant 0 : index
    %0 = vector.load %arg1[%c0, %c0_0] : memref<8x32xf32, #tpu.memory_space<vmem>>, vector<8x32xf32>
    %c0_1 = arith.constant 0 : index
    %c0_2 = arith.constant 0 : index
    %1 = vector.load %arg2[%c0_1, %c0_2] : memref<8x32xf32, #tpu.memory_space<vmem>>, vector<8x32xf32>
    %2 = vector.shape_cast %1 : vector<8x32xf32> to vector<1x8x32xf32>
    %3 = vector.shape_cast %2 : vector<1x8x32xf32> to vector<1x8x32xf32>
    %4 = vector.broadcast %3 : vector<1x8x32xf32> to vector<8x8x32xf32>
    %5 = vector.shape_cast %4 : vector<8x8x32xf32> to vector<64x32xf32>
    %c0_3 = arith.constant 0 : index
    %c32 = arith.constant 32 : index
    %c0_4 = arith.constant 0 : index
    %6 = vector.load %arg4[%c0_3, %c32, %c0_4] : memref<2x192x32xf32, #tpu.memory_space<vmem>>, vector<1x32x32xf32>
    %7 = vector.shape_cast %6 : vector<1x32x32xf32> to vector<32x32xf32>
    %cst = arith.constant dense<0.000000e+00> : vector<8x32xf32>
    %8 = tpu.matmul %0, %7, %cst {dimension_numbers = #tpu.dot_dimension_numbers<[1], [0], [0], [1], [0, 0, 1, 1], [], []>} : vector<8x32xf32>, vector<32x32xf32>, vector<8x32xf32> -> vector<8x32xf32>
    %c0_5 = arith.constant 0 : index
    %c7 = arith.constant 7 : index
    %c0_6 = arith.constant 0 : index
    %9 = vector.load %arg5[%c0_5, %c7, %c0_6] : memref<2x11x128xf32, #tpu.memory_space<vmem>>, vector<1x1x32xf32>
    %10 = vector.shape_cast %9 : vector<1x1x32xf32> to vector<1x32xf32>
    %11 = vector.broadcast %10 : vector<1x32xf32> to vector<8x32xf32>
    %12 = arith.addf %8, %11 : vector<8x32xf32>
    %13 = vector.shape_cast %12 : vector<8x32xf32> to vector<8x1x32xf32>
    %14 = vector.shape_cast %13 : vector<8x1x32xf32> to vector<8x1x32xf32>
    %15 = vector.broadcast %14 : vector<8x1x32xf32> to vector<8x8x32xf32>
    %16 = vector.shape_cast %15 : vector<8x8x32xf32> to vector<64x32xf32>
    %17 = arith.addf %5, %16 : vector<64x32xf32>
    %c0_7 = arith.constant 0 : index
    %c2 = arith.constant 2 : index
    %c0_8 = arith.constant 0 : index
    %18 = vector.load %arg5[%c0_7, %c2, %c0_8] : memref<2x11x128xf32, #tpu.memory_space<vmem>>, vector<1x1x32xf32>
    %19 = vector.shape_cast %18 : vector<1x1x32xf32> to vector<1x32xf32>
    %c0_9 = arith.constant 0 : index
    %c3 = arith.constant 3 : index
    %c0_10 = arith.constant 0 : index
    %20 = vector.load %arg5[%c0_9, %c3, %c0_10] : memref<2x11x128xf32, #tpu.memory_space<vmem>>, vector<1x1x32xf32>
    %21 = vector.shape_cast %20 : vector<1x1x32xf32> to vector<1x32xf32>
    %cst_11 = arith.constant dense<0.000000e+00> : vector<64xf32>
    %22 = vector.multi_reduction <add>, %17, %cst_11 [1] : vector<64x32xf32> to vector<64xf32>
    %23 = vector.shape_cast %22 : vector<64xf32> to vector<64x1xf32>
    %cst_12 = arith.constant 3.200000e+01 : f32
    %24 = vector.broadcast %cst_12 : f32 to vector<64x1xf32>
    %25 = arith.divf %23, %24 : vector<64x1xf32>
    %26 = vector.broadcast %25 : vector<64x1xf32> to vector<64x32xf32>
    %27 = arith.subf %17, %26 : vector<64x32xf32>
    %28 = arith.mulf %27, %27 : vector<64x32xf32>
    %cst_13 = arith.constant dense<0.000000e+00> : vector<64xf32>
    %29 = vector.multi_reduction <add>, %28, %cst_13 [1] : vector<64x32xf32> to vector<64xf32>
    %30 = vector.shape_cast %29 : vector<64xf32> to vector<64x1xf32>
    %cst_14 = arith.constant 3.200000e+01 : f32
    %31 = vector.broadcast %cst_14 : f32 to vector<64x1xf32>
    %32 = arith.divf %30, %31 : vector<64x1xf32>
    %33 = vector.broadcast %25 : vector<64x1xf32> to vector<64x32xf32>
    %34 = arith.subf %17, %33 : vector<64x32xf32>
    %cst_15 = arith.constant 9.99999974E-6 : f32
    %35 = vector.broadcast %cst_15 : f32 to vector<64x1xf32>
    %36 = arith.addf %32, %35 : vector<64x1xf32>
    %37 = math.rsqrt %36 : vector<64x1xf32>
    %38 = vector.broadcast %37 : vector<64x1xf32> to vector<64x32xf32>
    %39 = arith.mulf %34, %38 : vector<64x32xf32>
    %40 = vector.broadcast %19 : vector<1x32xf32> to vector<64x32xf32>
    %41 = arith.mulf %39, %40 : vector<64x32xf32>
    %42 = vector.broadcast %21 : vector<1x32xf32> to vector<64x32xf32>
    %43 = arith.addf %41, %42 : vector<64x32xf32>
    %c0_16 = arith.constant 0 : index
    %c32_17 = arith.constant 32 : index
    %c0_18 = arith.constant 0 : index
    %44 = vector.load %arg3[%c0_16, %c32_17, %c0_18] : memref<2x64x128xf32, #tpu.memory_space<vmem>>, vector<1x32x128xf32>
    %45 = vector.shape_cast %44 : vector<1x32x128xf32> to vector<32x128xf32>
    %cst_19 = arith.constant dense<0.000000e+00> : vector<64x128xf32>
    %46 = tpu.matmul %43, %45, %cst_19 {dimension_numbers = #tpu.dot_dimension_numbers<[1], [0], [0], [1], [0, 0, 1, 1], [], []>} : vector<64x32xf32>, vector<32x128xf32>, vector<64x128xf32> -> vector<64x128xf32>
    %c0_20 = arith.constant 0 : index
    %c10 = arith.constant 10 : index
    %c0_21 = arith.constant 0 : index
    %47 = vector.load %arg5[%c0_20, %c10, %c0_21] : memref<2x11x128xf32, #tpu.memory_space<vmem>>, vector<1x1x128xf32>
    %48 = vector.shape_cast %47 : vector<1x1x128xf32> to vector<1x128xf32>
    %49 = vector.broadcast %48 : vector<1x128xf32> to vector<64x128xf32>
    %50 = arith.addf %46, %49 : vector<64x128xf32>
    %cst_22 = arith.constant 0.000000e+00 : f32
    %51 = vector.broadcast %cst_22 : f32 to vector<64x128xf32>
    %52 = arith.maximumf %50, %51 : vector<64x128xf32>
    %c0_23 = arith.constant 0 : index
    %c64 = arith.constant 64 : index
    %c0_24 = arith.constant 0 : index
    %53 = vector.load %arg4[%c0_23, %c64, %c0_24] : memref<2x192x32xf32, #tpu.memory_space<vmem>>, vector<1x128x32xf32>
    %54 = vector.shape_cast %53 : vector<1x128x32xf32> to vector<128x32xf32>
    %cst_25 = arith.constant dense<0.000000e+00> : vector<64x32xf32>
    %55 = tpu.matmul %52, %54, %cst_25 {dimension_numbers = #tpu.dot_dimension_numbers<[1], [0], [0], [1], [0, 0, 1, 1], [], []>} : vector<64x128xf32>, vector<128x32xf32>, vector<64x32xf32> -> vector<64x32xf32>
    %56 = arith.addf %43, %55 : vector<64x32xf32>
    %c0_26 = arith.constant 0 : index
    %c8 = arith.constant 8 : index
    %c0_27 = arith.constant 0 : index
    %57 = vector.load %arg5[%c0_26, %c8, %c0_27] : memref<2x11x128xf32, #tpu.memory_space<vmem>>, vector<1x1x32xf32>
    %58 = vector.shape_cast %57 : vector<1x1x32xf32> to vector<1x32xf32>
    %59 = vector.broadcast %58 : vector<1x32xf32> to vector<64x32xf32>
    %60 = arith.addf %56, %59 : vector<64x32xf32>
    %c0_28 = arith.constant 0 : index
    %c4 = arith.constant 4 : index
    %c0_29 = arith.constant 0 : index
    %61 = vector.load %arg5[%c0_28, %c4, %c0_29] : memref<2x11x128xf32, #tpu.memory_space<vmem>>, vector<1x1x32xf32>
    %62 = vector.shape_cast %61 : vector<1x1x32xf32> to vector<1x32xf32>
    %c0_30 = arith.constant 0 : index
    %c5 = arith.constant 5 : index
    %c0_31 = arith.constant 0 : index
    %63 = vector.load %arg5[%c0_30, %c5, %c0_31] : memref<2x11x128xf32, #tpu.memory_space<vmem>>, vector<1x1x32xf32>
    %64 = vector.shape_cast %63 : vector<1x1x32xf32> to vector<1x32xf32>
    %cst_32 = arith.constant dense<0.000000e+00> : vector<64xf32>
    %65 = vector.multi_reduction <add>, %60, %cst_32 [1] : vector<64x32xf32> to vector<64xf32>
    %66 = vector.shape_cast %65 : vector<64xf32> to vector<64x1xf32>
    %cst_33 = arith.constant 3.200000e+01 : f32
    %67 = vector.broadcast %cst_33 : f32 to vector<64x1xf32>
    %68 = arith.divf %66, %67 : vector<64x1xf32>
    %69 = vector.broadcast %68 : vector<64x1xf32> to vector<64x32xf32>
    %70 = arith.subf %60, %69 : vector<64x32xf32>
    %71 = arith.mulf %70, %70 : vector<64x32xf32>
    %cst_34 = arith.constant dense<0.000000e+00> : vector<64xf32>
    %72 = vector.multi_reduction <add>, %71, %cst_34 [1] : vector<64x32xf32> to vector<64xf32>
    %73 = vector.shape_cast %72 : vector<64xf32> to vector<64x1xf32>
    %cst_35 = arith.constant 3.200000e+01 : f32
    %74 = vector.broadcast %cst_35 : f32 to vector<64x1xf32>
    %75 = arith.divf %73, %74 : vector<64x1xf32>
    %76 = vector.broadcast %68 : vector<64x1xf32> to vector<64x32xf32>
    %77 = arith.subf %60, %76 : vector<64x32xf32>
    %cst_36 = arith.constant 9.99999974E-6 : f32
    %78 = vector.broadcast %cst_36 : f32 to vector<64x1xf32>
    %79 = arith.addf %75, %78 : vector<64x1xf32>
    %80 = math.rsqrt %79 : vector<64x1xf32>
    %81 = vector.broadcast %80 : vector<64x1xf32> to vector<64x32xf32>
    %82 = arith.mulf %77, %81 : vector<64x32xf32>
    %83 = vector.broadcast %62 : vector<1x32xf32> to vector<64x32xf32>
    %84 = arith.mulf %82, %83 : vector<64x32xf32>
    %85 = vector.broadcast %64 : vector<1x32xf32> to vector<64x32xf32>
    %86 = arith.addf %84, %85 : vector<64x32xf32>
    %c1 = arith.constant 1 : index
    %c0_37 = arith.constant 0 : index
    %c0_38 = arith.constant 0 : index
    %87 = vector.load %arg3[%c1, %c0_37, %c0_38] : memref<2x64x128xf32, #tpu.memory_space<vmem>>, vector<1x32x96xf32>
    %88 = vector.shape_cast %87 : vector<1x32x96xf32> to vector<32x96xf32>
    %cst_39 = arith.constant dense<0.000000e+00> : vector<64x96xf32>
    %89 = tpu.matmul %86, %88, %cst_39 {dimension_numbers = #tpu.dot_dimension_numbers<[1], [0], [0], [1], [0, 0, 1, 1], [], []>} : vector<64x32xf32>, vector<32x96xf32>, vector<64x96xf32> -> vector<64x96xf32>
    %c1_40 = arith.constant 1 : index
    %c9 = arith.constant 9 : index
    %c0_41 = arith.constant 0 : index
    %90 = vector.load %arg5[%c1_40, %c9, %c0_41] : memref<2x11x128xf32, #tpu.memory_space<vmem>>, vector<1x1x96xf32>
    %91 = vector.shape_cast %90 : vector<1x1x96xf32> to vector<1x96xf32>
    %92 = vector.broadcast %91 : vector<1x96xf32> to vector<64x96xf32>
    %93 = arith.addf %89, %92 : vector<64x96xf32>
    %94 = vector.extract_strided_slice %93 {offsets = [0, 0], sizes = [64, 32], strides = [1, 1]} : vector<64x96xf32> to vector<64x32xf32>
    %95 = vector.extract_strided_slice %93 {offsets = [0, 32], sizes = [64, 32], strides = [1, 1]} : vector<64x96xf32> to vector<64x32xf32>
    %96 = vector.extract_strided_slice %93 {offsets = [0, 64], sizes = [64, 32], strides = [1, 1]} : vector<64x96xf32> to vector<64x32xf32>
    %cst_42 = arith.constant 0.000000e+00 : f32
    %97 = vector.broadcast %cst_42 : f32 to vector<64x32xf32>
    %98 = vector.extract_strided_slice %94 {offsets = [0, 0], sizes = [64, 8], strides = [1, 1]} : vector<64x32xf32> to vector<64x8xf32>
    %99 = vector.shape_cast %98 : vector<64x8xf32> to vector<8x8x8xf32>
    %100 = vector.extract_strided_slice %95 {offsets = [0, 0], sizes = [64, 8], strides = [1, 1]} : vector<64x32xf32> to vector<64x8xf32>
    %101 = vector.shape_cast %100 : vector<64x8xf32> to vector<8x8x8xf32>
    %102 = vector.extract_strided_slice %96 {offsets = [0, 0], sizes = [64, 8], strides = [1, 1]} : vector<64x32xf32> to vector<64x8xf32>
    %103 = vector.shape_cast %102 : vector<64x8xf32> to vector<8x8x8xf32>
    "tpu.trace_start"() <{level = 10 : i32, message = "bqd,bkd->bqk"}> : () -> ()
    %cst_43 = arith.constant dense<0.000000e+00> : vector<8x8x8xf32>
    %104 = tpu.matmul %99, %101, %cst_43 {dimension_numbers = #tpu.dot_dimension_numbers<[2], [2], [1], [1], [0, 0, 0, 1, 1, 1], [0], [0]>} : vector<8x8x8xf32>, vector<8x8x8xf32>, vector<8x8x8xf32> -> vector<8x8x8xf32>
    "tpu.trace_stop"() : () -> ()
    %cst_44 = arith.constant dense<0xFF800000> : vector<8x8xf32>
    %105 = vector.multi_reduction <maximumf>, %104, %cst_44 [2] : vector<8x8x8xf32> to vector<8x8xf32>
    %106 = vector.shape_cast %105 : vector<8x8xf32> to vector<8x8x1xf32>
    %107 = vector.broadcast %106 : vector<8x8x1xf32> to vector<8x8x8xf32>
    %108 = arith.subf %104, %107 : vector<8x8x8xf32>
    %109 = math.exp %108 : vector<8x8x8xf32>
    %cst_45 = arith.constant dense<0.000000e+00> : vector<8x8xf32>
    %110 = vector.multi_reduction <add>, %109, %cst_45 [2] : vector<8x8x8xf32> to vector<8x8xf32>
    %111 = vector.shape_cast %110 : vector<8x8xf32> to vector<8x8x1xf32>
    %112 = tpu.reciprocal %111 {approx = true} : vector<8x8x1xf32> -> vector<8x8x1xf32>
    %113 = vector.broadcast %112 : vector<8x8x1xf32> to vector<8x8x8xf32>
    %114 = arith.mulf %109, %113 : vector<8x8x8xf32>
    "tpu.trace_start"() <{level = 10 : i32, message = "bqk,bkd->bqd"}> : () -> ()
    %cst_46 = arith.constant dense<0.000000e+00> : vector<8x8x8xf32>
    %115 = tpu.matmul %114, %103, %cst_46 {dimension_numbers = #tpu.dot_dimension_numbers<[2], [1], [1], [2], [0, 0, 0, 1, 1, 2], [0], [0]>} : vector<8x8x8xf32>, vector<8x8x8xf32>, vector<8x8x8xf32> -> vector<8x8x8xf32>
    "tpu.trace_stop"() : () -> ()
    %116 = vector.shape_cast %115 : vector<8x8x8xf32> to vector<64x8xf32>
    %c1_47 = arith.constant 1 : index
    %c0_48 = arith.constant 0 : index
    %c0_49 = arith.constant 0 : index
    %117 = vector.load %arg4[%c1_47, %c0_48, %c0_49] : memref<2x192x32xf32, #tpu.memory_space<vmem>>, vector<1x8x32xf32>
    %118 = vector.shape_cast %117 : vector<1x8x32xf32> to vector<8x32xf32>
    %cst_50 = arith.constant dense<0.000000e+00> : vector<64x32xf32>
    %119 = tpu.matmul %116, %118, %cst_50 {dimension_numbers = #tpu.dot_dimension_numbers<[1], [0], [0], [1], [0, 0, 1, 1], [], []>} : vector<64x8xf32>, vector<8x32xf32>, vector<64x32xf32> -> vector<64x32xf32>
    %120 = arith.addf %97, %119 : vector<64x32xf32>
    %121 = vector.extract_strided_slice %94 {offsets = [0, 8], sizes = [64, 8], strides = [1, 1]} : vector<64x32xf32> to vector<64x8xf32>
    %122 = vector.shape_cast %121 : vector<64x8xf32> to vector<8x8x8xf32>
    %123 = vector.extract_strided_slice %95 {offsets = [0, 8], sizes = [64, 8], strides = [1, 1]} : vector<64x32xf32> to vector<64x8xf32>
    %124 = vector.shape_cast %123 : vector<64x8xf32> to vector<8x8x8xf32>
    %125 = vector.extract_strided_slice %96 {offsets = [0, 8], sizes = [64, 8], strides = [1, 1]} : vector<64x32xf32> to vector<64x8xf32>
    %126 = vector.shape_cast %125 : vector<64x8xf32> to vector<8x8x8xf32>
    "tpu.trace_start"() <{level = 10 : i32, message = "bqd,bkd->bqk"}> : () -> ()
    %cst_51 = arith.constant dense<0.000000e+00> : vector<8x8x8xf32>
    %127 = tpu.matmul %122, %124, %cst_51 {dimension_numbers = #tpu.dot_dimension_numbers<[2], [2], [1], [1], [0, 0, 0, 1, 1, 1], [0], [0]>} : vector<8x8x8xf32>, vector<8x8x8xf32>, vector<8x8x8xf32> -> vector<8x8x8xf32>
    "tpu.trace_stop"() : () -> ()
    %cst_52 = arith.constant dense<0xFF800000> : vector<8x8xf32>
    %128 = vector.multi_reduction <maximumf>, %127, %cst_52 [2] : vector<8x8x8xf32> to vector<8x8xf32>
    %129 = vector.shape_cast %128 : vector<8x8xf32> to vector<8x8x1xf32>
    %130 = vector.broadcast %129 : vector<8x8x1xf32> to vector<8x8x8xf32>
    %131 = arith.subf %127, %130 : vector<8x8x8xf32>
    %132 = math.exp %131 : vector<8x8x8xf32>
    %cst_53 = arith.constant dense<0.000000e+00> : vector<8x8xf32>
    %133 = vector.multi_reduction <add>, %132, %cst_53 [2] : vector<8x8x8xf32> to vector<8x8xf32>
    %134 = vector.shape_cast %133 : vector<8x8xf32> to vector<8x8x1xf32>
    %135 = tpu.reciprocal %134 {approx = true} : vector<8x8x1xf32> -> vector<8x8x1xf32>
    %136 = vector.broadcast %135 : vector<8x8x1xf32> to vector<8x8x8xf32>
    %137 = arith.mulf %132, %136 : vector<8x8x8xf32>
    "tpu.trace_start"() <{level = 10 : i32, message = "bqk,bkd->bqd"}> : () -> ()
    %cst_54 = arith.constant dense<0.000000e+00> : vector<8x8x8xf32>
    %138 = tpu.matmul %137, %126, %cst_54 {dimension_numbers = #tpu.dot_dimension_numbers<[2], [1], [1], [2], [0, 0, 0, 1, 1, 2], [0], [0]>} : vector<8x8x8xf32>, vector<8x8x8xf32>, vector<8x8x8xf32> -> vector<8x8x8xf32>
    "tpu.trace_stop"() : () -> ()
    %139 = vector.shape_cast %138 : vector<8x8x8xf32> to vector<64x8xf32>
    %c1_55 = arith.constant 1 : index
    %c8_56 = arith.constant 8 : index
    %c0_57 = arith.constant 0 : index
    %140 = vector.load %arg4[%c1_55, %c8_56, %c0_57] : memref<2x192x32xf32, #tpu.memory_space<vmem>>, vector<1x8x32xf32>
    %141 = vector.shape_cast %140 : vector<1x8x32xf32> to vector<8x32xf32>
    %cst_58 = arith.constant dense<0.000000e+00> : vector<64x32xf32>
    %142 = tpu.matmul %139, %141, %cst_58 {dimension_numbers = #tpu.dot_dimension_numbers<[1], [0], [0], [1], [0, 0, 1, 1], [], []>} : vector<64x8xf32>, vector<8x32xf32>, vector<64x32xf32> -> vector<64x32xf32>
    %143 = arith.addf %120, %142 : vector<64x32xf32>
    %144 = vector.extract_strided_slice %94 {offsets = [0, 16], sizes = [64, 8], strides = [1, 1]} : vector<64x32xf32> to vector<64x8xf32>
    %145 = vector.shape_cast %144 : vector<64x8xf32> to vector<8x8x8xf32>
    %146 = vector.extract_strided_slice %95 {offsets = [0, 16], sizes = [64, 8], strides = [1, 1]} : vector<64x32xf32> to vector<64x8xf32>
    %147 = vector.shape_cast %146 : vector<64x8xf32> to vector<8x8x8xf32>
    %148 = vector.extract_strided_slice %96 {offsets = [0, 16], sizes = [64, 8], strides = [1, 1]} : vector<64x32xf32> to vector<64x8xf32>
    %149 = vector.shape_cast %148 : vector<64x8xf32> to vector<8x8x8xf32>
    "tpu.trace_start"() <{level = 10 : i32, message = "bqd,bkd->bqk"}> : () -> ()
    %cst_59 = arith.constant dense<0.000000e+00> : vector<8x8x8xf32>
    %150 = tpu.matmul %145, %147, %cst_59 {dimension_numbers = #tpu.dot_dimension_numbers<[2], [2], [1], [1], [0, 0, 0, 1, 1, 1], [0], [0]>} : vector<8x8x8xf32>, vector<8x8x8xf32>, vector<8x8x8xf32> -> vector<8x8x8xf32>
    "tpu.trace_stop"() : () -> ()
    %cst_60 = arith.constant dense<0xFF800000> : vector<8x8xf32>
    %151 = vector.multi_reduction <maximumf>, %150, %cst_60 [2] : vector<8x8x8xf32> to vector<8x8xf32>
    %152 = vector.shape_cast %151 : vector<8x8xf32> to vector<8x8x1xf32>
    %153 = vector.broadcast %152 : vector<8x8x1xf32> to vector<8x8x8xf32>
    %154 = arith.subf %150, %153 : vector<8x8x8xf32>
    %155 = math.exp %154 : vector<8x8x8xf32>
    %cst_61 = arith.constant dense<0.000000e+00> : vector<8x8xf32>
    %156 = vector.multi_reduction <add>, %155, %cst_61 [2] : vector<8x8x8xf32> to vector<8x8xf32>
    %157 = vector.shape_cast %156 : vector<8x8xf32> to vector<8x8x1xf32>
    %158 = tpu.reciprocal %157 {approx = true} : vector<8x8x1xf32> -> vector<8x8x1xf32>
    %159 = vector.broadcast %158 : vector<8x8x1xf32> to vector<8x8x8xf32>
    %160 = arith.mulf %155, %159 : vector<8x8x8xf32>
    "tpu.trace_start"() <{level = 10 : i32, message = "bqk,bkd->bqd"}> : () -> ()
    %cst_62 = arith.constant dense<0.000000e+00> : vector<8x8x8xf32>
    %161 = tpu.matmul %160, %149, %cst_62 {dimension_numbers = #tpu.dot_dimension_numbers<[2], [1], [1], [2], [0, 0, 0, 1, 1, 2], [0], [0]>} : vector<8x8x8xf32>, vector<8x8x8xf32>, vector<8x8x8xf32> -> vector<8x8x8xf32>
    "tpu.trace_stop"() : () -> ()
    %162 = vector.shape_cast %161 : vector<8x8x8xf32> to vector<64x8xf32>
    %c1_63 = arith.constant 1 : index
    %c16 = arith.constant 16 : index
    %c0_64 = arith.constant 0 : index
    %163 = vector.load %arg4[%c1_63, %c16, %c0_64] : memref<2x192x32xf32, #tpu.memory_space<vmem>>, vector<1x8x32xf32>
    %164 = vector.shape_cast %163 : vector<1x8x32xf32> to vector<8x32xf32>
    %cst_65 = arith.constant dense<0.000000e+00> : vector<64x32xf32>
    %165 = tpu.matmul %162, %164, %cst_65 {dimension_numbers = #tpu.dot_dimension_numbers<[1], [0], [0], [1], [0, 0, 1, 1], [], []>} : vector<64x8xf32>, vector<8x32xf32>, vector<64x32xf32> -> vector<64x32xf32>
    %166 = arith.addf %143, %165 : vector<64x32xf32>
    %167 = vector.extract_strided_slice %94 {offsets = [0, 24], sizes = [64, 8], strides = [1, 1]} : vector<64x32xf32> to vector<64x8xf32>
    %168 = vector.shape_cast %167 : vector<64x8xf32> to vector<8x8x8xf32>
    %169 = vector.extract_strided_slice %95 {offsets = [0, 24], sizes = [64, 8], strides = [1, 1]} : vector<64x32xf32> to vector<64x8xf32>
    %170 = vector.shape_cast %169 : vector<64x8xf32> to vector<8x8x8xf32>
    %171 = vector.extract_strided_slice %96 {offsets = [0, 24], sizes = [64, 8], strides = [1, 1]} : vector<64x32xf32> to vector<64x8xf32>
    %172 = vector.shape_cast %171 : vector<64x8xf32> to vector<8x8x8xf32>
    "tpu.trace_start"() <{level = 10 : i32, message = "bqd,bkd->bqk"}> : () -> ()
    %cst_66 = arith.constant dense<0.000000e+00> : vector<8x8x8xf32>
    %173 = tpu.matmul %168, %170, %cst_66 {dimension_numbers = #tpu.dot_dimension_numbers<[2], [2], [1], [1], [0, 0, 0, 1, 1, 1], [0], [0]>} : vector<8x8x8xf32>, vector<8x8x8xf32>, vector<8x8x8xf32> -> vector<8x8x8xf32>
    "tpu.trace_stop"() : () -> ()
    %cst_67 = arith.constant dense<0xFF800000> : vector<8x8xf32>
    %174 = vector.multi_reduction <maximumf>, %173, %cst_67 [2] : vector<8x8x8xf32> to vector<8x8xf32>
    %175 = vector.shape_cast %174 : vector<8x8xf32> to vector<8x8x1xf32>
    %176 = vector.broadcast %175 : vector<8x8x1xf32> to vector<8x8x8xf32>
    %177 = arith.subf %173, %176 : vector<8x8x8xf32>
    %178 = math.exp %177 : vector<8x8x8xf32>
    %cst_68 = arith.constant dense<0.000000e+00> : vector<8x8xf32>
    %179 = vector.multi_reduction <add>, %178, %cst_68 [2] : vector<8x8x8xf32> to vector<8x8xf32>
    %180 = vector.shape_cast %179 : vector<8x8xf32> to vector<8x8x1xf32>
    %181 = tpu.reciprocal %180 {approx = true} : vector<8x8x1xf32> -> vector<8x8x1xf32>
    %182 = vector.broadcast %181 : vector<8x8x1xf32> to vector<8x8x8xf32>
    %183 = arith.mulf %178, %182 : vector<8x8x8xf32>
    "tpu.trace_start"() <{level = 10 : i32, message = "bqk,bkd->bqd"}> : () -> ()
    %cst_69 = arith.constant dense<0.000000e+00> : vector<8x8x8xf32>
    %184 = tpu.matmul %183, %172, %cst_69 {dimension_numbers = #tpu.dot_dimension_numbers<[2], [1], [1], [2], [0, 0, 0, 1, 1, 2], [0], [0]>} : vector<8x8x8xf32>, vector<8x8x8xf32>, vector<8x8x8xf32> -> vector<8x8x8xf32>
    "tpu.trace_stop"() : () -> ()
    %185 = vector.shape_cast %184 : vector<8x8x8xf32> to vector<64x8xf32>
    %c1_70 = arith.constant 1 : index
    %c24 = arith.constant 24 : index
    %c0_71 = arith.constant 0 : index
    %186 = vector.load %arg4[%c1_70, %c24, %c0_71] : memref<2x192x32xf32, #tpu.memory_space<vmem>>, vector<1x8x32xf32>
    %187 = vector.shape_cast %186 : vector<1x8x32xf32> to vector<8x32xf32>
    %cst_72 = arith.constant dense<0.000000e+00> : vector<64x32xf32>
    %188 = tpu.matmul %185, %187, %cst_72 {dimension_numbers = #tpu.dot_dimension_numbers<[1], [0], [0], [1], [0, 0, 1, 1], [], []>} : vector<64x8xf32>, vector<8x32xf32>, vector<64x32xf32> -> vector<64x32xf32>
    %189 = arith.addf %166, %188 : vector<64x32xf32>
    %190 = arith.addf %86, %189 : vector<64x32xf32>
    %c1_73 = arith.constant 1 : index
    %c6 = arith.constant 6 : index
    %c0_74 = arith.constant 0 : index
    %191 = vector.load %arg5[%c1_73, %c6, %c0_74] : memref<2x11x128xf32, #tpu.memory_space<vmem>>, vector<1x1x32xf32>
    %192 = vector.shape_cast %191 : vector<1x1x32xf32> to vector<1x32xf32>
    %193 = vector.broadcast %192 : vector<1x32xf32> to vector<64x32xf32>
    %194 = arith.addf %190, %193 : vector<64x32xf32>
    %c1_75 = arith.constant 1 : index
    %c0_76 = arith.constant 0 : index
    %c0_77 = arith.constant 0 : index
    %195 = vector.load %arg5[%c1_75, %c0_76, %c0_77] : memref<2x11x128xf32, #tpu.memory_space<vmem>>, vector<1x1x32xf32>
    %196 = vector.shape_cast %195 : vector<1x1x32xf32> to vector<1x32xf32>
    %c1_78 = arith.constant 1 : index
    %c1_79 = arith.constant 1 : index
    %c0_80 = arith.constant 0 : index
    %197 = vector.load %arg5[%c1_78, %c1_79, %c0_80] : memref<2x11x128xf32, #tpu.memory_space<vmem>>, vector<1x1x32xf32>
    %198 = vector.shape_cast %197 : vector<1x1x32xf32> to vector<1x32xf32>
    %cst_81 = arith.constant dense<0.000000e+00> : vector<64xf32>
    %199 = vector.multi_reduction <add>, %194, %cst_81 [1] : vector<64x32xf32> to vector<64xf32>
    %200 = vector.shape_cast %199 : vector<64xf32> to vector<64x1xf32>
    %cst_82 = arith.constant 3.200000e+01 : f32
    %201 = vector.broadcast %cst_82 : f32 to vector<64x1xf32>
    %202 = arith.divf %200, %201 : vector<64x1xf32>
    %203 = vector.broadcast %202 : vector<64x1xf32> to vector<64x32xf32>
    %204 = arith.subf %194, %203 : vector<64x32xf32>
    %205 = arith.mulf %204, %204 : vector<64x32xf32>
    %cst_83 = arith.constant dense<0.000000e+00> : vector<64xf32>
    %206 = vector.multi_reduction <add>, %205, %cst_83 [1] : vector<64x32xf32> to vector<64xf32>
    %207 = vector.shape_cast %206 : vector<64xf32> to vector<64x1xf32>
    %cst_84 = arith.constant 3.200000e+01 : f32
    %208 = vector.broadcast %cst_84 : f32 to vector<64x1xf32>
    %209 = arith.divf %207, %208 : vector<64x1xf32>
    %210 = vector.broadcast %202 : vector<64x1xf32> to vector<64x32xf32>
    %211 = arith.subf %194, %210 : vector<64x32xf32>
    %cst_85 = arith.constant 9.99999974E-6 : f32
    %212 = vector.broadcast %cst_85 : f32 to vector<64x1xf32>
    %213 = arith.addf %209, %212 : vector<64x1xf32>
    %214 = math.rsqrt %213 : vector<64x1xf32>
    %215 = vector.broadcast %214 : vector<64x1xf32> to vector<64x32xf32>
    %216 = arith.mulf %211, %215 : vector<64x32xf32>
    %217 = vector.broadcast %196 : vector<1x32xf32> to vector<64x32xf32>
    %218 = arith.mulf %216, %217 : vector<64x32xf32>
    %219 = vector.broadcast %198 : vector<1x32xf32> to vector<64x32xf32>
    %220 = arith.addf %218, %219 : vector<64x32xf32>
    %c1_86 = arith.constant 1 : index
    %c32_87 = arith.constant 32 : index
    %c0_88 = arith.constant 0 : index
    %221 = vector.load %arg4[%c1_86, %c32_87, %c0_88] : memref<2x192x32xf32, #tpu.memory_space<vmem>>, vector<1x32x32xf32>
    %222 = vector.shape_cast %221 : vector<1x32x32xf32> to vector<32x32xf32>
    %cst_89 = arith.constant dense<0.000000e+00> : vector<8x32xf32>
    %223 = tpu.matmul %0, %222, %cst_89 {dimension_numbers = #tpu.dot_dimension_numbers<[1], [0], [0], [1], [0, 0, 1, 1], [], []>} : vector<8x32xf32>, vector<32x32xf32>, vector<8x32xf32> -> vector<8x32xf32>
    %c1_90 = arith.constant 1 : index
    %c7_91 = arith.constant 7 : index
    %c0_92 = arith.constant 0 : index
    %224 = vector.load %arg5[%c1_90, %c7_91, %c0_92] : memref<2x11x128xf32, #tpu.memory_space<vmem>>, vector<1x1x32xf32>
    %225 = vector.shape_cast %224 : vector<1x1x32xf32> to vector<1x32xf32>
    %226 = vector.broadcast %225 : vector<1x32xf32> to vector<8x32xf32>
    %227 = arith.addf %223, %226 : vector<8x32xf32>
    %228 = vector.shape_cast %227 : vector<8x32xf32> to vector<8x1x32xf32>
    %229 = vector.shape_cast %228 : vector<8x1x32xf32> to vector<8x1x32xf32>
    %230 = vector.broadcast %229 : vector<8x1x32xf32> to vector<8x8x32xf32>
    %231 = vector.shape_cast %230 : vector<8x8x32xf32> to vector<64x32xf32>
    %232 = arith.addf %220, %231 : vector<64x32xf32>
    %c1_93 = arith.constant 1 : index
    %c2_94 = arith.constant 2 : index
    %c0_95 = arith.constant 0 : index
    %233 = vector.load %arg5[%c1_93, %c2_94, %c0_95] : memref<2x11x128xf32, #tpu.memory_space<vmem>>, vector<1x1x32xf32>
    %234 = vector.shape_cast %233 : vector<1x1x32xf32> to vector<1x32xf32>
    %c1_96 = arith.constant 1 : index
    %c3_97 = arith.constant 3 : index
    %c0_98 = arith.constant 0 : index
    %235 = vector.load %arg5[%c1_96, %c3_97, %c0_98] : memref<2x11x128xf32, #tpu.memory_space<vmem>>, vector<1x1x32xf32>
    %236 = vector.shape_cast %235 : vector<1x1x32xf32> to vector<1x32xf32>
    %cst_99 = arith.constant dense<0.000000e+00> : vector<64xf32>
    %237 = vector.multi_reduction <add>, %232, %cst_99 [1] : vector<64x32xf32> to vector<64xf32>
    %238 = vector.shape_cast %237 : vector<64xf32> to vector<64x1xf32>
    %cst_100 = arith.constant 3.200000e+01 : f32
    %239 = vector.broadcast %cst_100 : f32 to vector<64x1xf32>
    %240 = arith.divf %238, %239 : vector<64x1xf32>
    %241 = vector.broadcast %240 : vector<64x1xf32> to vector<64x32xf32>
    %242 = arith.subf %232, %241 : vector<64x32xf32>
    %243 = arith.mulf %242, %242 : vector<64x32xf32>
    %cst_101 = arith.constant dense<0.000000e+00> : vector<64xf32>
    %244 = vector.multi_reduction <add>, %243, %cst_101 [1] : vector<64x32xf32> to vector<64xf32>
    %245 = vector.shape_cast %244 : vector<64xf32> to vector<64x1xf32>
    %cst_102 = arith.constant 3.200000e+01 : f32
    %246 = vector.broadcast %cst_102 : f32 to vector<64x1xf32>
    %247 = arith.divf %245, %246 : vector<64x1xf32>
    %248 = vector.broadcast %240 : vector<64x1xf32> to vector<64x32xf32>
    %249 = arith.subf %232, %248 : vector<64x32xf32>
    %cst_103 = arith.constant 9.99999974E-6 : f32
    %250 = vector.broadcast %cst_103 : f32 to vector<64x1xf32>
    %251 = arith.addf %247, %250 : vector<64x1xf32>
    %252 = math.rsqrt %251 : vector<64x1xf32>
    %253 = vector.broadcast %252 : vector<64x1xf32> to vector<64x32xf32>
    %254 = arith.mulf %249, %253 : vector<64x32xf32>
    %255 = vector.broadcast %234 : vector<1x32xf32> to vector<64x32xf32>
    %256 = arith.mulf %254, %255 : vector<64x32xf32>
    %257 = vector.broadcast %236 : vector<1x32xf32> to vector<64x32xf32>
    %258 = arith.addf %256, %257 : vector<64x32xf32>
    %c1_104 = arith.constant 1 : index
    %c32_105 = arith.constant 32 : index
    %c0_106 = arith.constant 0 : index
    %259 = vector.load %arg3[%c1_104, %c32_105, %c0_106] : memref<2x64x128xf32, #tpu.memory_space<vmem>>, vector<1x32x128xf32>
    %260 = vector.shape_cast %259 : vector<1x32x128xf32> to vector<32x128xf32>
    %cst_107 = arith.constant dense<0.000000e+00> : vector<64x128xf32>
    %261 = tpu.matmul %258, %260, %cst_107 {dimension_numbers = #tpu.dot_dimension_numbers<[1], [0], [0], [1], [0, 0, 1, 1], [], []>} : vector<64x32xf32>, vector<32x128xf32>, vector<64x128xf32> -> vector<64x128xf32>
    %c1_108 = arith.constant 1 : index
    %c10_109 = arith.constant 10 : index
    %c0_110 = arith.constant 0 : index
    %262 = vector.load %arg5[%c1_108, %c10_109, %c0_110] : memref<2x11x128xf32, #tpu.memory_space<vmem>>, vector<1x1x128xf32>
    %263 = vector.shape_cast %262 : vector<1x1x128xf32> to vector<1x128xf32>
    %264 = vector.broadcast %263 : vector<1x128xf32> to vector<64x128xf32>
    %265 = arith.addf %261, %264 : vector<64x128xf32>
    %cst_111 = arith.constant 0.000000e+00 : f32
    %266 = vector.broadcast %cst_111 : f32 to vector<64x128xf32>
    %267 = arith.maximumf %265, %266 : vector<64x128xf32>
    %c1_112 = arith.constant 1 : index
    %c64_113 = arith.constant 64 : index
    %c0_114 = arith.constant 0 : index
    %268 = vector.load %arg4[%c1_112, %c64_113, %c0_114] : memref<2x192x32xf32, #tpu.memory_space<vmem>>, vector<1x128x32xf32>
    %269 = vector.shape_cast %268 : vector<1x128x32xf32> to vector<128x32xf32>
    %cst_115 = arith.constant dense<0.000000e+00> : vector<64x32xf32>
    %270 = tpu.matmul %267, %269, %cst_115 {dimension_numbers = #tpu.dot_dimension_numbers<[1], [0], [0], [1], [0, 0, 1, 1], [], []>} : vector<64x128xf32>, vector<128x32xf32>, vector<64x32xf32> -> vector<64x32xf32>
    %271 = arith.addf %258, %270 : vector<64x32xf32>
    %c1_116 = arith.constant 1 : index
    %c8_117 = arith.constant 8 : index
    %c0_118 = arith.constant 0 : index
    %272 = vector.load %arg5[%c1_116, %c8_117, %c0_118] : memref<2x11x128xf32, #tpu.memory_space<vmem>>, vector<1x1x32xf32>
    %273 = vector.shape_cast %272 : vector<1x1x32xf32> to vector<1x32xf32>
    %274 = vector.broadcast %273 : vector<1x32xf32> to vector<64x32xf32>
    %275 = arith.addf %271, %274 : vector<64x32xf32>
    %c1_119 = arith.constant 1 : index
    %c4_120 = arith.constant 4 : index
    %c0_121 = arith.constant 0 : index
    %276 = vector.load %arg5[%c1_119, %c4_120, %c0_121] : memref<2x11x128xf32, #tpu.memory_space<vmem>>, vector<1x1x32xf32>
    %277 = vector.shape_cast %276 : vector<1x1x32xf32> to vector<1x32xf32>
    %c1_122 = arith.constant 1 : index
    %c5_123 = arith.constant 5 : index
    %c0_124 = arith.constant 0 : index
    %278 = vector.load %arg5[%c1_122, %c5_123, %c0_124] : memref<2x11x128xf32, #tpu.memory_space<vmem>>, vector<1x1x32xf32>
    %279 = vector.shape_cast %278 : vector<1x1x32xf32> to vector<1x32xf32>
    %cst_125 = arith.constant dense<0.000000e+00> : vector<64xf32>
    %280 = vector.multi_reduction <add>, %275, %cst_125 [1] : vector<64x32xf32> to vector<64xf32>
    %281 = vector.shape_cast %280 : vector<64xf32> to vector<64x1xf32>
    %cst_126 = arith.constant 3.200000e+01 : f32
    %282 = vector.broadcast %cst_126 : f32 to vector<64x1xf32>
    %283 = arith.divf %281, %282 : vector<64x1xf32>
    %284 = vector.broadcast %283 : vector<64x1xf32> to vector<64x32xf32>
    %285 = arith.subf %275, %284 : vector<64x32xf32>
    %286 = arith.mulf %285, %285 : vector<64x32xf32>
    %cst_127 = arith.constant dense<0.000000e+00> : vector<64xf32>
    %287 = vector.multi_reduction <add>, %286, %cst_127 [1] : vector<64x32xf32> to vector<64xf32>
    %288 = vector.shape_cast %287 : vector<64xf32> to vector<64x1xf32>
    %cst_128 = arith.constant 3.200000e+01 : f32
    %289 = vector.broadcast %cst_128 : f32 to vector<64x1xf32>
    %290 = arith.divf %288, %289 : vector<64x1xf32>
    %291 = vector.broadcast %283 : vector<64x1xf32> to vector<64x32xf32>
    %292 = arith.subf %275, %291 : vector<64x32xf32>
    %cst_129 = arith.constant 9.99999974E-6 : f32
    %293 = vector.broadcast %cst_129 : f32 to vector<64x1xf32>
    %294 = arith.addf %290, %293 : vector<64x1xf32>
    %295 = math.rsqrt %294 : vector<64x1xf32>
    %296 = vector.broadcast %295 : vector<64x1xf32> to vector<64x32xf32>
    %297 = arith.mulf %292, %296 : vector<64x32xf32>
    %298 = vector.broadcast %277 : vector<1x32xf32> to vector<64x32xf32>
    %299 = arith.mulf %297, %298 : vector<64x32xf32>
    %300 = vector.broadcast %279 : vector<1x32xf32> to vector<64x32xf32>
    %301 = arith.addf %299, %300 : vector<64x32xf32>
    %c0_130 = arith.constant 0 : index
    %c0_131 = arith.constant 0 : index
    %302 = vector.load %arg6[%c0_130, %c0_131] : memref<105x64xf32, #tpu.memory_space<vmem>>, vector<32x64xf32>
    %cst_132 = arith.constant dense<0.000000e+00> : vector<64x64xf32>
    %303 = tpu.matmul %301, %302, %cst_132 {dimension_numbers = #tpu.dot_dimension_numbers<[1], [0], [0], [1], [0, 0, 1, 1], [], []>} : vector<64x32xf32>, vector<32x64xf32>, vector<64x64xf32> -> vector<64x64xf32>
    %c32_133 = arith.constant 32 : index
    %c0_134 = arith.constant 0 : index
    %304 = vector.load %arg6[%c32_133, %c0_134] : memref<105x64xf32, #tpu.memory_space<vmem>>, vector<1x64xf32>
    %305 = vector.broadcast %304 : vector<1x64xf32> to vector<64x64xf32>
    %306 = arith.addf %303, %305 : vector<64x64xf32>
    %cst_135 = arith.constant 0.000000e+00 : f32
    %307 = vector.broadcast %cst_135 : f32 to vector<64x64xf32>
    %308 = arith.maximumf %306, %307 : vector<64x64xf32>
    %c40 = arith.constant 40 : index
    %c0_136 = arith.constant 0 : index
    %309 = vector.load %arg6[%c40, %c0_136] : memref<105x64xf32, #tpu.memory_space<vmem>>, vector<64x64xf32>
    %cst_137 = arith.constant dense<0.000000e+00> : vector<64x64xf32>
    %310 = tpu.matmul %308, %309, %cst_137 {dimension_numbers = #tpu.dot_dimension_numbers<[1], [0], [0], [1], [0, 0, 1, 1], [], []>} : vector<64x64xf32>, vector<64x64xf32>, vector<64x64xf32> -> vector<64x64xf32>
    %c104 = arith.constant 104 : index
    %c0_138 = arith.constant 0 : index
    %311 = vector.load %arg6[%c104, %c0_138] : memref<105x64xf32, #tpu.memory_space<vmem>>, vector<1x64xf32>
    %312 = vector.broadcast %311 : vector<1x64xf32> to vector<64x64xf32>
    %313 = arith.addf %310, %312 : vector<64x64xf32>
    %314 = math.tanh %313 : vector<64x64xf32>
    %315 = vector.shape_cast %314 : vector<64x64xf32> to vector<8x8x64xf32>
    %316 = vector.extract_strided_slice %315 {offsets = [0, 0, 0], sizes = [8, 1, 64], strides = [1, 1, 1]} : vector<8x8x64xf32> to vector<8x1x64xf32>
    %317 = vector.shape_cast %316 : vector<8x1x64xf32> to vector<8x64xf32>
    %c0_139 = arith.constant 0 : index
    %c0_140 = arith.constant 0 : index
    %318 = vector.load %arg7[%c0_139, %c0_140] : memref<8x512xf32, #tpu.memory_space<vmem>>, vector<8x64xf32>
    tpu.vector_store %arg7[%c0_139, %c0_140], %317 {strides = array<i32>} : memref<8x512xf32, #tpu.memory_space<vmem>>, vector<8x64xf32>,
    %319 = vector.extract_strided_slice %315 {offsets = [0, 1, 0], sizes = [8, 1, 64], strides = [1, 1, 1]} : vector<8x8x64xf32> to vector<8x1x64xf32>
    %320 = vector.shape_cast %319 : vector<8x1x64xf32> to vector<8x64xf32>
    %c0_141 = arith.constant 0 : index
    %c64_142 = arith.constant 64 : index
    %321 = vector.load %arg7[%c0_141, %c64_142] : memref<8x512xf32, #tpu.memory_space<vmem>>, vector<8x64xf32>
    tpu.vector_store %arg7[%c0_141, %c64_142], %320 {strides = array<i32>} : memref<8x512xf32, #tpu.memory_space<vmem>>, vector<8x64xf32>,
    %322 = vector.extract_strided_slice %315 {offsets = [0, 2, 0], sizes = [8, 1, 64], strides = [1, 1, 1]} : vector<8x8x64xf32> to vector<8x1x64xf32>
    %323 = vector.shape_cast %322 : vector<8x1x64xf32> to vector<8x64xf32>
    %c0_143 = arith.constant 0 : index
    %c128 = arith.constant 128 : index
    %324 = vector.load %arg7[%c0_143, %c128] : memref<8x512xf32, #tpu.memory_space<vmem>>, vector<8x64xf32>
    tpu.vector_store %arg7[%c0_143, %c128], %323 {strides = array<i32>} : memref<8x512xf32, #tpu.memory_space<vmem>>, vector<8x64xf32>,
    %325 = vector.extract_strided_slice %315 {offsets = [0, 3, 0], sizes = [8, 1, 64], strides = [1, 1, 1]} : vector<8x8x64xf32> to vector<8x1x64xf32>
    %326 = vector.shape_cast %325 : vector<8x1x64xf32> to vector<8x64xf32>
    %c0_144 = arith.constant 0 : index
    %c192 = arith.constant 192 : index
    %327 = vector.load %arg7[%c0_144, %c192] : memref<8x512xf32, #tpu.memory_space<vmem>>, vector<8x64xf32>
    tpu.vector_store %arg7[%c0_144, %c192], %326 {strides = array<i32>} : memref<8x512xf32, #tpu.memory_space<vmem>>, vector<8x64xf32>,
    %328 = vector.extract_strided_slice %315 {offsets = [0, 4, 0], sizes = [8, 1, 64], strides = [1, 1, 1]} : vector<8x8x64xf32> to vector<8x1x64xf32>
    %329 = vector.shape_cast %328 : vector<8x1x64xf32> to vector<8x64xf32>
    %c0_145 = arith.constant 0 : index
    %c256 = arith.constant 256 : index
    %330 = vector.load %arg7[%c0_145, %c256] : memref<8x512xf32, #tpu.memory_space<vmem>>, vector<8x64xf32>
    tpu.vector_store %arg7[%c0_145, %c256], %329 {strides = array<i32>} : memref<8x512xf32, #tpu.memory_space<vmem>>, vector<8x64xf32>,
    %331 = vector.extract_strided_slice %315 {offsets = [0, 5, 0], sizes = [8, 1, 64], strides = [1, 1, 1]} : vector<8x8x64xf32> to vector<8x1x64xf32>
    %332 = vector.shape_cast %331 : vector<8x1x64xf32> to vector<8x64xf32>
    %c0_146 = arith.constant 0 : index
    %c320 = arith.constant 320 : index
    %333 = vector.load %arg7[%c0_146, %c320] : memref<8x512xf32, #tpu.memory_space<vmem>>, vector<8x64xf32>
    tpu.vector_store %arg7[%c0_146, %c320], %332 {strides = array<i32>} : memref<8x512xf32, #tpu.memory_space<vmem>>, vector<8x64xf32>,
    %334 = vector.extract_strided_slice %315 {offsets = [0, 6, 0], sizes = [8, 1, 64], strides = [1, 1, 1]} : vector<8x8x64xf32> to vector<8x1x64xf32>
    %335 = vector.shape_cast %334 : vector<8x1x64xf32> to vector<8x64xf32>
    %c0_147 = arith.constant 0 : index
    %c384 = arith.constant 384 : index
    %336 = vector.load %arg7[%c0_147, %c384] : memref<8x512xf32, #tpu.memory_space<vmem>>, vector<8x64xf32>
    tpu.vector_store %arg7[%c0_147, %c384], %335 {strides = array<i32>} : memref<8x512xf32, #tpu.memory_space<vmem>>, vector<8x64xf32>,
    %337 = vector.extract_strided_slice %315 {offsets = [0, 7, 0], sizes = [8, 1, 64], strides = [1, 1, 1]} : vector<8x8x64xf32> to vector<8x1x64xf32>
    %338 = vector.shape_cast %337 : vector<8x1x64xf32> to vector<8x64xf32>
    %c0_148 = arith.constant 0 : index
    %c448 = arith.constant 448 : index
    %339 = vector.load %arg7[%c0_148, %c448] : memref<8x512xf32, #tpu.memory_space<vmem>>, vector<8x64xf32>
    tpu.vector_store %arg7[%c0_148, %c448], %338 {strides = array<i32>} : memref<8x512xf32, #tpu.memory_space<vmem>>, vector<8x64xf32>,
    return
  }
  func.func @transform_0(%arg0: i32) -> (i32, i32) {
    %c0_i32 = arith.constant 0 : i32
    %c0_i32_0 = arith.constant 0 : i32
    return %arg0, %c0_i32 : i32, i32
  }
  func.func @transform_1(%arg0: i32) -> (i32, i32) {
    %c0_i32 = arith.constant 0 : i32
    %c0_i32_0 = arith.constant 0 : i32
    %c0_i32_1 = arith.constant 0 : i32
    return %c0_i32, %c0_i32_0 : i32, i32
  }
  func.func @transform_2(%arg0: i32) -> (i32, i32, i32) {
    %c0_i32 = arith.constant 0 : i32
    %c0_i32_0 = arith.constant 0 : i32
    %c0_i32_1 = arith.constant 0 : i32
    %c0_i32_2 = arith.constant 0 : i32
    return %c0_i32, %c0_i32_0, %c0_i32_1 : i32, i32, i32
  }
  func.func @transform_3(%arg0: i32) -> (i32, i32, i32) {
    %c0_i32 = arith.constant 0 : i32
    %c0_i32_0 = arith.constant 0 : i32
    %c0_i32_1 = arith.constant 0 : i32
    %c0_i32_2 = arith.constant 0 : i32
    return %c0_i32, %c0_i32_0, %c0_i32_1 : i32, i32, i32
  }
  func.func @transform_4(%arg0: i32) -> (i32, i32, i32) {
    %c0_i32 = arith.constant 0 : i32
    %c0_i32_0 = arith.constant 0 : i32
    %c0_i32_1 = arith.constant 0 : i32
    %c0_i32_2 = arith.constant 0 : i32
    return %c0_i32, %c0_i32_0, %c0_i32_1 : i32, i32, i32
  }
  func.func @transform_5(%arg0: i32) -> (i32, i32) {
    %c0_i32 = arith.constant 0 : i32
    %c0_i32_0 = arith.constant 0 : i32
    %c0_i32_1 = arith.constant 0 : i32
    return %c0_i32, %c0_i32_0 : i32, i32
  }
  func.func @transform_6(%arg0: i32) -> (i32, i32) {
    %c0_i32 = arith.constant 0 : i32
    %c0_i32_0 = arith.constant 0 : i32
    return %arg0, %c0_i32 : i32, i32
  }
}

</mosaic_0001>

<bundles_post_ra>
// kernel: vit_decoder_forward.1
= control target key start
LH: loop header
LB: loop body
LE: loop exit
PB: predicated region body
PF: predicated region fallthrough
CT: control target
= control target key end

     0   :  { %v9535_v0 = vmov 0.0|0.0   ;;  %vm9536_vm0 = vmmov 0   ;;  %v9537_v4 = vmov 0.0   ;;  %vm34_vm1 = vcmask 261120   ;;  %s9539_s22 = smov 96   ;;  %s9540_s23 = smov 64   ;;  %s11268_s3 = inlined_call_operand.vmem [shape: f32[2,192,32], index: 3, kind: input, shape index: {}]   ;;  %s11269_s0 = inlined_call_operand.vmem [shape: f32[8,32], index: 0, kind: input, shape index: {}]   ;;  %s11270_s4 = inlined_call_operand.vmem [shape: f32[2,11,128], index: 4, kind: input, shape index: {}]   ;;  %s11271_s1 = inlined_call_operand.vmem [shape: f32[8,32], index: 1, kind: input, shape index: {}]   ;;  %s11272_s2 = inlined_call_operand.vmem [shape: f32[2,64,128], index: 2, kind: input, shape index: {}]   ;;  %s11273_s5 = inlined_call_operand.vmem [shape: f32[105,64], index: 5, kind: input, shape index: {}]   ;;  %s11274_s6 = inlined_call_operand.vmem [shape: f32[8,512], index: 6, kind: output, shape index: {}]  }
   0x1   :  { %9147 = vmatprep.subr.bf16.mxu1 %v9535_v0  ;;  %v25_v1 = vld [vmem:[%s11268_s3 + $0x20] sm:$0xff]  ;;  %v26_v2 = vld [vmem:[%s11268_s3 + $0x28] sm:$0xff]  ;;  %v27_v3 = vld [vmem:[%s11268_s3 + $0x30] sm:$0xff]  ;;  %8561 = vmatprep.mubr.msk.f32.mxu1 %vm9536_vm0, %v9537_v4  ;;  %v9538_v9 = vmov 1966171168   ;;  %v113_v11 = vlaneseq  ;;  %vm898_vm2 = vcmask 64512  }
   0x2   :  { %v9148_v5 = vpack.c.bf16 %v26_v2, %v25_v1  ;;  %v28_v6 = vld [vmem:[%s11268_s3 + $0x38] sm:$0xff]  ;;  %v23_v8 = vld [vmem:[%s11269_s0] sm:$0xff]  ;;  %v111_v10 = vunpack.c.l.s4 %v9538_v9  ;;  %s9541_s24 = smov 120   ;;  %s9542_s25 = smov 88   ;;  %vm7740_vm3 = vcmask 523264   ;;  %vm7887_vm4 = vcmask 1041409  }
   0x3   :  { %v9151_v7 = vpack.c.bf16 %v28_v6, %v27_v3  ;;  %v114_v13 = vshrl.u32 %v113_v11, 7  ;;  %v8034_v14 = vld [vmem:[%s11270_s4 + $0x7] ss:$0 sm:$0xff]  ;;  %s9543_s26 = smov 56   ;;  %s9544_s27 = smov 112   ;;  %vm7890_vm5 = vcmask 1042434  }
   0x4   :  { %9149 = vmatpush3.bf16.msra.mxu1 %v9148_v5  ;;  %v112_v12 = vunpack.c.0.s8 %v111_v10  ;;  %v24_v25 = vld [vmem:[%s11271_s1] sm:$0xff]  ;;  %s9545_s28 = smov 80   ;;  %s9546_s29 = smov 48   ;;  %vm7893_vm6 = vcmask 1043459   ;;  %vm7896_vm7 = vcmask 1044484   ;;  %vm7899_vm8 = vcmask 1045509  }
   0x5   :  { %9150 = vmatprep.subr.bf16.mxu1 %v9535_v0  ;;  %v9611_v21 = vsub.s32 0, %v114_v13  ;;  %s9547_s10 = smov 104   ;;  %s9548_s1 = smov 72   ;;  %vm7902_vm9 = vcmask 1046534   ;;  %vm7905_vm10 = vcmask 1047559   ;;  %vm7926_vm11 = vcmask 1048064  }
   0x6   :  { %v9608_v15 = vsub.s32 %v112_v12, %v114_v13  ;;  %s9549_s13 = smov 40  }
   0x8   :  { %9152 = vmatpush3.bf16.msra.mxu1 %v9151_v7 }
   0xb   :  { %8562 = vmatmul.mubr.msk.f32.vlgmr.msra.gmra.mrb[0].mxu1 %vm34_vm1, %v23_v8 }
  0xde   :  { %v104_v16 = vpop.f32.mrb[0].mxu1 }
  0xdf   :  { %v105_v17 = vadd.f32 %v8034_v14, %v104_v16  ;;  %v8563_v18 = vpop.f32.mrb[1].mxu1 }
  0xe1   :  { %v109_v19 = vcombine.high %v105_v17, %v105_v17  ;;  %v116_v20 = vrot.slane %v105_v17, %v9608_v15 }
  0xe3   :  { %v123_v22 = vrot.slane %v109_v19, %v9608_v15  ;;  %v124_v23 = vcombine.high %v116_v20, %v116_v20  ;;  %v132_v24 = vrot.slane %v116_v20, %v9608_v15 }
  0xe5   :  { %v125_v26 = vcombine.high %v123_v22, %v123_v22  ;;  %v161_v27 = vrot.slane %v132_v24, %v9611_v21  ;;  %v154_v28 = vcombine.high %v132_v24, %v132_v24  ;;  %v146_v29 = vrot.slane %v124_v23, %v9608_v15 }
  0xe6   :  { %v139_v30 = vrot.slane %v123_v22, %v9608_v15 }
  0xe7   :  { %v198_v31 = vadd.f32 %v161_v27, %v24_v25  ;;  %v169_v32 = vrot.slane %v154_v28, %v9611_v21  ;;  %v165_v33 = vrot.slane %v146_v29, %v9611_v21  ;;  %v156_v34 = vcombine.high %v146_v29, %v146_v29 }
  0xe8   :  { %v177_v35 = vrot.slane %v139_v30, %v9611_v21  ;;  %v153_v36 = vrot.slane %v125_v26, %v9608_v15  ;;  %v155_v37 = vcombine.high %v139_v30, %v139_v30 }
  0xe9   :  { %v208_v38 = vsel %vm34_vm1, %v198_v31, 0.0  ;;  %v200_v39 = vadd.f32 %v169_v32, %v24_v25  ;;  %v199_v40 = vadd.f32 %v165_v33, %v24_v25  ;;  %v173_v41 = vrot.slane %v156_v34, %v9611_v21 }
  0xea   :  { %209 = vadd.xlane.f32.xlu0 %v208_v38  ;;  %v181_v44 = vrot.slane %v153_v36, %v9611_v21  ;;  %v157_v45 = vcombine.high %v153_v36, %v153_v36  ;;  %v202_v47 = vadd.f32 %v177_v35, %v24_v25  ;;  %v185_v48 = vrot.slane %v155_v37, %v9611_v21  ;;  %v337_v38 = vld [vmem:[%s11272_s2 + $0x20] sm:$0xff] }
  0xeb   :  { %v214_v42 = vsel %vm34_vm1, %v200_v39, 0.0  ;;  %v201_v43 = vadd.f32 %v173_v41, %v24_v25  ;;  %v211_v46 = vsel %vm34_vm1, %v199_v40, 0.0  ;;  %v339_v41 = vld [vmem:[%s11272_s2 + $0x30] sm:$0xff] }
  0xec   :  { %215 = vadd.xlane.f32.xlu1 %v214_v42  ;;  %v203_v50 = vadd.f32 %v181_v44, %v24_v25  ;;  %v189_v51 = vrot.slane %v157_v45, %v9611_v21  ;;  %v220_v52 = vsel %vm34_vm1, %v202_v47, 0.0  ;;  %v204_v53 = vadd.f32 %v185_v48, %v24_v25  ;;  %v340_v42 = vld [vmem:[%s11272_s2 + $0x38] sm:$0xff]  ;;  %v483_v44 = vld [vmem:[%s11268_s3 + $0x40] sm:$0xff]  ;;  %v484_v45 = vld [vmem:[%s11268_s3 + $0x48] sm:$0xff] }
  0xed   :  { %v217_v49 = vsel %vm34_vm1, %v201_v43, 0.0 }
  0xee   :  { %212 = vadd.xlane.f32.xlu0 %v211_v46  ;;  %v223_v54 = vsel %vm34_vm1, %v203_v50, 0.0  ;;  %v205_v55 = vadd.f32 %v189_v51, %v24_v25  ;;  %v226_v56 = vsel %vm34_vm1, %v204_v53, 0.0  ;;  %v9695_v46 = vpack.c.bf16 %v484_v45, %v483_v44 }
  0xf0   :  { %218 = vadd.xlane.f32.xlu1 %v217_v49  ;;  %v229_v57 = vsel %vm34_vm1, %v205_v55, 0.0 }
  0xf2   :  { %221 = vadd.xlane.f32.xlu0 %v220_v52 }
  0xf4   :  { %224 = vadd.xlane.f32.xlu1 %v223_v54 }
  0xf6   :  { %227 = vadd.xlane.f32.xlu0 %v226_v56 }
  0xf8   :  { %230 = vadd.xlane.f32.xlu1 %v229_v57 }
 0x177   :  { %v210_v58 = vpop.xlane.xlu0 %209 }
 0x178   :  { %v233_v59 = vmul.f32 0.03125, %v210_v58 }
 0x179   :  { %v216_v60 = vpop.xlane.xlu1 %215 }
 0x17a   :  { %v9637_v61 = vsub.f32 %v198_v31, %v233_v59  ;;  %v235_v62 = vmul.f32 0.03125, %v216_v60 }
 0x17b   :  { %v213_v63 = vpop.xlane.xlu0 %212 }
 0x17c   :  { %v9639_v1 = vsub.f32 %v200_v39, %v235_v62  ;;  %v234_v2 = vmul.f32 0.03125, %v213_v63  ;;  %v249_v3 = vmul.f32 %v9637_v61, %v9637_v61  ;;  %v338_v39 = vld [vmem:[%s11272_s2 + $0x28] sm:$0xff] }
 0x17d   :  { %v219_v5 = vpop.xlane.xlu1 %218 }
 0x17e   :  { %v9643_v6 = vsub.f32 %v199_v40, %v234_v2  ;;  %v236_v7 = vmul.f32 0.03125, %v219_v5  ;;  %v257_v8 = vsel %vm34_vm1, %v249_v3, 0.0  ;;  %v251_v9 = vmul.f32 %v9639_v1, %v9639_v1 }
 0x17f   :  { %v222_v10 = vpop.xlane.xlu0 %221  ;;  %258 = vadd.xlane.f32.xlu0 %v257_v8  ;;  %v9153_v40 = vpack.c.bf16 %v338_v39, %v337_v38  ;;  %v487_v38 = vld [vmem:[%s11268_s3 + $0x60] sm:$0xff]  ;;  %v488_v39 = vld [vmem:[%s11268_s3 + $0x68] sm:$0xff] }
 0x180   :  { %v9648_v11 = vsub.f32 %v201_v43, %v236_v7  ;;  %v237_v12 = vmul.f32 0.03125, %v222_v10  ;;  %v250_v13 = vmul.f32 %v9643_v6, %v9643_v6  ;;  %v263_v16 = vsel %vm34_vm1, %v251_v9, 0.0  ;;  %v8036_v10 = vld [vmem:[%s11270_s4 + $0x2] ss:$0 sm:$0xff] }
 0x181   :  { %v225_v14 = vpop.xlane.xlu1 %224  ;;  %9154 = vmatprep.subr.bf16.mxu0 %v9153_v40  ;;  %v9157_v43 = vpack.c.bf16 %v340_v42, %v339_v41  ;;  %v9169_v45 = vpack.c.bf16 %v488_v39, %v487_v38 }
 0x182   :  { %v9653_v17 = vsub.f32 %v202_v47, %v237_v12  ;;  %v238_v18 = vmul.f32 0.03125, %v225_v14  ;;  %v260_v19 = vsel %vm34_vm1, %v250_v13, 0.0  ;;  %v252_v20 = vmul.f32 %v9648_v11, %v9648_v11  ;;  %9156 = vmatpush3.bf16.msra.mxu0 %v9153_v40 }
 0x183   :  { %264 = vadd.xlane.f32.xlu0 %v263_v16  ;;  %v228_v22 = vpop.xlane.xlu0 %227  ;;  %261 = vadd.xlane.f32.xlu1 %v260_v19  ;;  %v8037_v16 = vld [vmem:[%s11270_s4 + $0x3] ss:$0 sm:$0xff] }
 0x184   :  { %v9658_v23 = vsub.f32 %v203_v50, %v238_v18  ;;  %v239_v24 = vmul.f32 0.03125, %v228_v22  ;;  %v253_v25 = vmul.f32 %v9653_v17, %v9653_v17  ;;  %v266_v27 = vsel %vm34_vm1, %v252_v20, 0.0  ;;  %9158 = vmatprep.subr.bf16.mxu0 %v9157_v43 }
 0x185   :  { %v231_v26 = vpop.xlane.xlu1 %230 }
 0x186   :  { %v9663_v28 = vsub.f32 %v204_v53, %v239_v24  ;;  %v240_v29 = vmul.f32 0.03125, %v231_v26  ;;  %v269_v30 = vsel %vm34_vm1, %v253_v25, 0.0  ;;  %v254_v31 = vmul.f32 %v9658_v23, %v9658_v23  ;;  %9160 = vmatpush3.bf16.msra.mxu0 %v9157_v43 }
 0x187   :  { %270 = vadd.xlane.f32.xlu0 %v269_v30  ;;  %267 = vadd.xlane.f32.xlu1 %v266_v27  ;;  %v485_v27 = vld [vmem:[%s11268_s3 + $0x50] sm:$0xff] }
 0x188   :  { %v9668_v32 = vsub.f32 %v205_v55, %v240_v29  ;;  %v255_v33 = vmul.f32 %v9663_v28, %v9663_v28  ;;  %v272_v35 = vsel %vm34_vm1, %v254_v31, 0.0  ;;  %9162 = vmatprep.subr.bf16.mxu0 %v9695_v46  ;;  %v486_v29 = vld [vmem:[%s11268_s3 + $0x58] sm:$0xff] }
 0x18a   :  { %v275_v34 = vsel %vm34_vm1, %v255_v33, 0.0  ;;  %v256_v36 = vmul.f32 %v9668_v32, %v9668_v32 }
 0x18b   :  { %276 = vadd.xlane.f32.xlu0 %v275_v34  ;;  %273 = vadd.xlane.f32.xlu1 %v272_v35 }
 0x18c   :  { %v278_v37 = vsel %vm34_vm1, %v256_v36, 0.0  ;;  %v9165_v36 = vpack.c.bf16 %v486_v29, %v485_v27 }
 0x18f   :  { %279 = vadd.xlane.f32.xlu1 %v278_v37 }
 0x20c   :  { %v259_v47 = vpop.xlane.xlu0 %258 }
 0x20d   :  { %v281_v48 = vmul.f32 0.03125, %v259_v47 }
 0x20f   :  { %v289_v49 = vadd.f32 1e-05, %v281_v48  ;;  %v489_v48 = vld [vmem:[%s11268_s3 + $0x70] sm:$0xff] }
 0x210   :  { %v265_v50 = vpop.xlane.xlu0 %264  ;;  %v262_v51 = vpop.xlane.xlu1 %261 }
 0x211   :  { %9310 = vrsqrt.f32 %v289_v49  ;;  %v283_v52 = vmul.f32 0.03125, %v265_v50  ;;  %v282_v53 = vmul.f32 0.03125, %v262_v51  ;;  %v490_v49 = vld [vmem:[%s11268_s3 + $0x78] sm:$0xff] }
 0x213   :  { %v291_v54 = vadd.f32 1e-05, %v283_v52  ;;  %v290_v55 = vadd.f32 1e-05, %v282_v53  ;;  %v9173_v52 = vpack.c.bf16 %v490_v49, %v489_v48 }
 0x214   :  { %v271_v56 = vpop.xlane.xlu0 %270  ;;  %v268_v57 = vpop.xlane.xlu1 %267 }
 0x215   :  { %9312 = vrsqrt.f32 %v291_v54  ;;  %v285_v58 = vmul.f32 0.03125, %v271_v56  ;;  %v284_v59 = vmul.f32 0.03125, %v268_v57  ;;  %v491_v54 = vld [vmem:[%s11268_s3 + $0x80] sm:$0xff]  ;;  %v493_v57 = vld [vmem:[%s11268_s3 + $0x90] sm:$0xff] }
 0x216   :  { %9314 = vrsqrt.f32 %v290_v55  ;;  %v492_v55 = vld [vmem:[%s11268_s3 + $0x88] sm:$0xff] }
 0x217   :  { %v293_v60 = vadd.f32 1e-05, %v285_v58  ;;  %v292_v62 = vadd.f32 1e-05, %v284_v59  ;;  %v9177_v56 = vpack.c.bf16 %v492_v55, %v491_v54  ;;  %v494_v58 = vld [vmem:[%s11268_s3 + $0x98] sm:$0xff] }
 0x218   :  { %v277_v63 = vpop.xlane.xlu0 %276  ;;  %v274_v2 = vpop.xlane.xlu1 %273  ;;  %v9181_v59 = vpack.c.bf16 %v494_v58, %v493_v57 }
 0x219   :  { %9316 = vrsqrt.f32 %v293_v60  ;;  %v287_v3 = vmul.f32 0.03125, %v277_v63  ;;  %v286_v5 = vmul.f32 0.03125, %v274_v2  ;;  %v495_v60 = vld [vmem:[%s11268_s3 + $0xa0] sm:$0xff]  ;;  %v497_v2 = vld [vmem:[%s11268_s3 + $0xb0] sm:$0xff] }
 0x21a   :  { %9318 = vrsqrt.f32 %v292_v62  ;;  %v496_v62 = vld [vmem:[%s11268_s3 + $0xa8] sm:$0xff] }
 0x21b   :  { %v9311_v7 = vpop.eup %9310  ;;  %v295_v8 = vadd.f32 1e-05, %v287_v3  ;;  %v294_v9 = vadd.f32 1e-05, %v286_v5  ;;  %v9185_v63 = vpack.c.bf16 %v496_v62, %v495_v60  ;;  %v498_v3 = vld [vmem:[%s11268_s3 + $0xb8] sm:$0xff] }
 0x21c   :  { %v280_v12 = vpop.xlane.xlu1 %279  ;;  %v305_v13 = vmul.f32 %v9311_v7, %v9637_v61  ;;  %v9189_v5 = vpack.c.bf16 %v498_v3, %v497_v2  ;;  %v8038_v7 = vld [vmem:[%s11270_s4 + $0xa] ss:$0 sm:$0xff] }
 0x21d   :  { %9320 = vrsqrt.f32 %v295_v8  ;;  %v288_v14 = vmul.f32 0.03125, %v280_v12 }
 0x21e   :  { %9322 = vrsqrt.f32 %v294_v9  ;;  %v317_v18 = vmul.f32 %v8036_v10, %v305_v13 }
 0x21f   :  { %v9313_v19 = vpop.eup %9312  ;;  %v296_v20 = vadd.f32 1e-05, %v288_v14 }
 0x220   :  { %v9315_v22 = vpop.eup %9314  ;;  %v9705_v24 = vadd.f32 %v8037_v16, %v317_v18  ;;  %v307_v25 = vmul.f32 %v9313_v19, %v9639_v1 }
 0x221   :  { %9324 = vrsqrt.f32 %v296_v20  ;;  %v306_v26 = vmul.f32 %v9315_v22, %v9643_v6 }
 0x222   :  { %8572 = vmatprep.mubr.msk.f32.mxu0 %vm34_vm1, %v9705_v24  ;;  %v319_v61 = vmul.f32 %v8036_v10, %v307_v25 }
 0x223   :  { %v9317_v30 = vpop.eup %9316  ;;  %v318_v31 = vmul.f32 %v8036_v10, %v306_v26 }
 0x224   :  { %v9319_v33 = vpop.eup %9318  ;;  %v9717_v34 = vadd.f32 %v8037_v16, %v319_v61  ;;  %v309_v1 = vmul.f32 %v9317_v30, %v9653_v17 }
 0x225   :  { %v9720_v6 = vadd.f32 %v8037_v16, %v318_v31  ;;  %v308_v35 = vmul.f32 %v9319_v33, %v9648_v11 }
 0x226   :  { %v321_v37 = vmul.f32 %v8036_v10, %v309_v1 }
 0x227   :  { %v9321_v40 = vpop.eup %9320  ;;  %8573 = vmatmul.mubr.msk.f32.vlgmr.msra.gmra.mrb[0].mxu0 %vm34_vm1, %v9720_v6  ;;  %v320_v41 = vmul.f32 %v8036_v10, %v308_v35 }
 0x228   :  { %v9323_v17 = vpop.eup %9322  ;;  %8575 = vmatprep.mubr.msk.f32.mxu0 %vm34_vm1, %v9717_v34  ;;  %v9733_v11 = vadd.f32 %v8037_v16, %v321_v37  ;;  %v311_v42 = vmul.f32 %v9321_v40, %v9663_v28  ;;  %9164 = vmatpush3.bf16.msra.mxu0 %v9695_v46  ;;  %v8047_v40 = vld [vmem:[%s11270_s4 + $0x8] ss:$0 sm:$0xff] }
 0x229   :  { %v9737_v43 = vadd.f32 %v8037_v16, %v320_v41  ;;  %v310_v44 = vmul.f32 %v9323_v17, %v9658_v23  ;;  %9166 = vmatprep.subr.bf16.mxu0 %v9165_v36 }
 0x22a   :  { %v323_v47 = vmul.f32 %v8036_v10, %v311_v42 }
 0x22b   :  { %v9325_v50 = vpop.eup %9324  ;;  %8576 = vmatmul.mubr.msk.f32.gmra.mrb[2].mxu0 %vm34_vm1, %v9737_v43  ;;  %v322_v28 = vmul.f32 %v8036_v10, %v310_v44 }
 0x22c   :  { %8578 = vmatprep.mubr.msk.f32.mxu0 %vm34_vm1, %v9733_v11  ;;  %v9750_v23 = vadd.f32 %v8037_v16, %v323_v47  ;;  %v312_v46 = vmul.f32 %v9325_v50, %v9668_v32  ;;  %9168 = vmatpush3.bf16.msra.mxu0 %v9165_v36 }
 0x22d   :  { %v9753_v51 = vadd.f32 %v8037_v16, %v322_v28  ;;  %9170 = vmatprep.subr.bf16.mxu0 %v9169_v45 }
 0x22e   :  { %v324_v53 = vmul.f32 %v8036_v10, %v312_v46 }
 0x22f   :  { %8579 = vmatmul.mubr.msk.f32.gmra.mrb[4].mxu0 %vm34_vm1, %v9753_v51 }
 0x230   :  { %8581 = vmatprep.mubr.msk.f32.mxu0 %vm34_vm1, %v9750_v23  ;;  %v9765_v32 = vadd.f32 %v8037_v16, %v324_v53  ;;  %9172 = vmatpush3.bf16.msra.mxu0 %v9169_v45 }
 0x231   :  { %9174 = vmatprep.subr.bf16.mxu0 %v9173_v52 }
 0x233   :  { %8582 = vmatmul.mubr.msk.f32.gmra.mrb[6].mxu0 %vm34_vm1, %v9765_v32 }
 0x234   :  { %9176 = vmatpush3.bf16.msra.mxu0 %v9173_v52 }
 0x235   :  { %9178 = vmatprep.subr.bf16.mxu0 %v9177_v56 }
 0x238   :  { %9180 = vmatpush3.bf16.msra.mxu0 %v9177_v56 }
 0x239   :  { %9182 = vmatprep.subr.bf16.mxu0 %v9181_v59 }
 0x23c   :  { %9184 = vmatpush3.bf16.msra.mxu0 %v9181_v59 }
 0x23d   :  { %9186 = vmatprep.subr.bf16.mxu0 %v9185_v63 }
 0x240   :  { %9188 = vmatpush3.bf16.msra.mxu0 %v9185_v63 }
 0x241   :  { %9190 = vmatprep.subr.bf16.mxu0 %v9189_v5 }
 0x244   :  { %9192 = vmatpush3.bf16.msra.mxu0 %v9189_v5 }
 0x245   :  { %8668 = vmatprep.subr.mxu0 %v9537_v4 }
 0x2fa   :  { %v8574_v8 = vpop.f32.mrb[0].mxu0 }
 0x2fb   :  { %v442_v9 = vadd.f32 %v8574_v8, %v8038_v7  ;;  %v436_v10 = vpop.f32.mrb[1].mxu0 }
 0x2fc   :  { %v437_v12 = vadd.f32 %v8038_v7, %v436_v10 }
 0x2fd   :  { %v476_v16 = vmax.f32 %v442_v9, 0.0 }
 0x2fe   :  { %v475_v13 = vmax.f32 %v437_v12, 0.0  ;;  %v8577_v14 = vpop.f32.mrb[2].mxu0 }
 0x2ff   :  { %v452_v18 = vadd.f32 %v8577_v14, %v8038_v7  ;;  %v446_v19 = vpop.f32.mrb[3].mxu0 }
 0x300   :  { %v447_v20 = vadd.f32 %v8038_v7, %v446_v19  ;;  %8616 = vmatprep.mubr.f32.mxu0 %v475_v13 }
 0x301   :  { %8617 = vmatmul.mubr.f32.vlgmr.msra.gmra.mrb[8].mxu0 %v476_v16  ;;  %v478_v26 = vmax.f32 %v452_v18, 0.0 }
 0x302   :  { %v477_v22 = vmax.f32 %v447_v20, 0.0  ;;  %v8580_v25 = vpop.f32.mrb[4].mxu0 }
 0x303   :  { %v462_v61 = vadd.f32 %v8580_v25, %v8038_v7  ;;  %v456_v27 = vpop.f32.mrb[5].mxu0 }
 0x304   :  { %v457_v29 = vadd.f32 %v8038_v7, %v456_v27  ;;  %8619 = vmatprep.mubr.f32.mxu0 %v477_v22 }
 0x305   :  { %8620 = vmatmul.mubr.f32.gmra.mrb[10].mxu0 %v478_v26  ;;  %v480_v33 = vmax.f32 %v462_v61, 0.0 }
 0x306   :  { %v479_v30 = vmax.f32 %v457_v29, 0.0  ;;  %v8583_v31 = vpop.f32.mrb[6].mxu0 }
 0x307   :  { %v472_v1 = vadd.f32 %v8583_v31, %v8038_v7  ;;  %v466_v35 = vpop.f32.mrb[7].mxu0 }
 0x308   :  { %v467_v36 = vadd.f32 %v8038_v7, %v466_v35  ;;  %8622 = vmatprep.mubr.f32.mxu0 %v479_v30 }
 0x309   :  { %8623 = vmatmul.mubr.f32.gmra.mrb[12].mxu0 %v480_v33  ;;  %v482_v38 = vmax.f32 %v472_v1, 0.0 }
 0x30a   :  { %v481_v37 = vmax.f32 %v467_v36, 0.0 }
 0x30c   :  { %8625 = vmatprep.mubr.f32.mxu0 %v481_v37 }
 0x30d   :  { %8626 = vmatmul.mubr.f32.gmra.mrb[14].mxu0 %v482_v38 }
 0x30e   :  { %8670 = vmatprep.mubr.msk.f32.mxu0 %vm9536_vm0, %v9537_v4 }
 0x3d4   :  { %v8618_v39 = vpop.f32.mrb[8].mxu0 }
 0x3d5   :  { %v605_v41 = vadd.f32 %v8618_v39, %v9720_v6  ;;  %v565_v17 = vpop.f32.mrb[9].mxu0 }
 0x3d6   :  { %v604_v42 = vadd.f32 %v565_v17, %v9705_v24 }
 0x3d7   :  { %v618_v44 = vadd.f32 %v8047_v40, %v605_v41 }
 0x3d8   :  { %v8621_v45 = vpop.f32.mrb[10].mxu0  ;;  %v617_v47 = vadd.f32 %v8047_v40, %v604_v42 }
 0x3d9   :  { %v607_v48 = vadd.f32 %v8621_v45, %v9737_v43  ;;  %v575_v49 = vpop.f32.mrb[11].mxu0  ;;  %v630_v50 = vsel %vm34_vm1, %v618_v44, 0.0 }
 0x3da   :  { %v606_v28 = vadd.f32 %v575_v49, %v9717_v34  ;;  %631 = vadd.xlane.f32.xlu1 %v630_v50  ;;  %v627_v46 = vsel %vm34_vm1, %v617_v47, 0.0 }
 0x3db   :  { %628 = vadd.xlane.f32.xlu0 %v627_v46  ;;  %v620_v52 = vadd.f32 %v8047_v40, %v607_v48 }
 0x3dc   :  { %v8624_v53 = vpop.f32.mrb[12].mxu0  ;;  %v619_v6 = vadd.f32 %v8047_v40, %v606_v28 }
 0x3dd   :  { %v609_v54 = vadd.f32 %v8624_v53, %v9753_v51  ;;  %v585_v24 = vpop.f32.mrb[13].mxu0  ;;  %v636_v55 = vsel %vm34_vm1, %v620_v52, 0.0  ;;  %v8051_v53 = vld [vmem:[%s11272_s2 + $0x48] sm:$0xff] }
 0x3de   :  { %v608_v56 = vadd.f32 %v585_v24, %v9733_v11  ;;  %637 = vadd.xlane.f32.xlu1 %v636_v55  ;;  %v633_v43 = vsel %vm34_vm1, %v619_v6, 0.0  ;;  %v8053_v24 = vld [vmem:[%s11272_s2 + $0x58] sm:$0xff] }
 0x3df   :  { %634 = vadd.xlane.f32.xlu0 %v633_v43  ;;  %v622_v57 = vadd.f32 %v8047_v40, %v609_v54  ;;  %v8052_v54 = vld [vmem:[%s11272_s2 + $0x50] sm:$0xff] }
 0x3e0   :  { %v8627_v34 = vpop.f32.mrb[14].mxu0  ;;  %v621_v58 = vadd.f32 %v8047_v40, %v608_v56  ;;  %v9197_v55 = vpack.c.bf16 %v8053_v24, %v8052_v54 }
 0x3e1   :  { %v611_v59 = vadd.f32 %v8627_v34, %v9765_v32  ;;  %v595_v60 = vpop.f32.mrb[15].mxu0  ;;  %v642_v62 = vsel %vm34_vm1, %v622_v57, 0.0 }
 0x3e2   :  { %v610_v63 = vadd.f32 %v595_v60, %v9750_v23  ;;  %643 = vadd.xlane.f32.xlu1 %v642_v62  ;;  %v639_v51 = vsel %vm34_vm1, %v621_v58, 0.0 }
 0x3e3   :  { %640 = vadd.xlane.f32.xlu0 %v639_v51  ;;  %v624_v2 = vadd.f32 %v8047_v40, %v611_v59 }
 0x3e4   :  { %v623_v11 = vadd.f32 %v8047_v40, %v610_v63 }
 0x3e5   :  { %v648_v3 = vsel %vm34_vm1, %v624_v2, 0.0 }
 0x3e6   :  { %649 = vadd.xlane.f32.xlu1 %v648_v3  ;;  %v645_v5 = vsel %vm34_vm1, %v623_v11, 0.0 }
 0x3e7   :  { %646 = vadd.xlane.f32.xlu0 %v645_v5 }
 0x467   :  { %v632_v7 = vpop.xlane.xlu1 %631 }
 0x468   :  { %v652_v8 = vmul.f32 0.03125, %v632_v7  ;;  %v629_v32 = vpop.xlane.xlu0 %628 }
 0x469   :  { %v651_v9 = vmul.f32 0.03125, %v629_v32 }
 0x46a   :  { %v9812_v10 = vsub.f32 %v618_v44, %v652_v8 }
 0x46b   :  { %v9814_v12 = vsub.f32 %v617_v47, %v651_v9  ;;  %v638_v23 = vpop.xlane.xlu1 %637 }
 0x46c   :  { %v654_v13 = vmul.f32 0.03125, %v638_v23  ;;  %v635_v14 = vpop.xlane.xlu0 %634  ;;  %v668_v16 = vmul.f32 %v9812_v10, %v9812_v10 }
 0x46d   :  { %v653_v18 = vmul.f32 0.03125, %v635_v14  ;;  %v667_v19 = vmul.f32 %v9814_v12, %v9814_v12 }
 0x46e   :  { %v9820_v20 = vsub.f32 %v620_v52, %v654_v13  ;;  %v678_v22 = vsel %vm34_vm1, %v668_v16, 0.0  ;;  %v8050_v52 = vld [vmem:[%s11272_s2 + $0x40] sm:$0xff] }
 0x46f   :  { %v9823_v25 = vsub.f32 %v619_v6, %v653_v18  ;;  %v644_v26 = vpop.xlane.xlu1 %643  ;;  %679 = vadd.xlane.f32.xlu1 %v678_v22  ;;  %v675_v61 = vsel %vm34_vm1, %v667_v19, 0.0  ;;  %v9193_v6 = vpack.c.bf16 %v8051_v53, %v8050_v52  ;;  %v8048_v22 = vld [vmem:[%s11270_s4 + $0x4] ss:$0 sm:$0xff] }
 0x470   :  { %v656_v27 = vmul.f32 0.03125, %v644_v26  ;;  %v641_v29 = vpop.xlane.xlu0 %640  ;;  %676 = vadd.xlane.f32.xlu0 %v675_v61  ;;  %v670_v30 = vmul.f32 %v9820_v20, %v9820_v20 }
 0x471   :  { %v655_v31 = vmul.f32 0.03125, %v641_v29  ;;  %v669_v33 = vmul.f32 %v9823_v25, %v9823_v25  ;;  %9194 = vmatprep.subr.bf16.mxu1 %v9193_v6 }
 0x472   :  { %v9830_v1 = vsub.f32 %v622_v57, %v656_v27  ;;  %v684_v35 = vsel %vm34_vm1, %v670_v30, 0.0  ;;  %9196 = vmatpush3.bf16.msra.mxu1 %v9193_v6  ;;  %v8049_v30 = vld [vmem:[%s11270_s4 + $0x5] ss:$0 sm:$0xff] }
 0x473   :  { %v9833_v36 = vsub.f32 %v621_v58, %v655_v31  ;;  %685 = vadd.xlane.f32.xlu1 %v684_v35  ;;  %v650_v37 = vpop.xlane.xlu1 %649  ;;  %v681_v38 = vsel %vm34_vm1, %v669_v33, 0.0  ;;  %9198 = vmatprep.subr.bf16.mxu1 %v9197_v55 }
 0x474   :  { %v658_v39 = vmul.f32 0.03125, %v650_v37  ;;  %682 = vadd.xlane.f32.xlu0 %v681_v38  ;;  %v647_v40 = vpop.xlane.xlu0 %646  ;;  %v672_v41 = vmul.f32 %v9830_v1, %v9830_v1 }
 0x475   :  { %v657_v17 = vmul.f32 0.03125, %v647_v40  ;;  %v671_v42 = vmul.f32 %v9833_v36, %v9833_v36 }
 0x476   :  { %v9840_v44 = vsub.f32 %v624_v2, %v658_v39  ;;  %v690_v45 = vsel %vm34_vm1, %v672_v41, 0.0  ;;  %9200 = vmatpush3.bf16.msra.mxu1 %v9197_v55 }
 0x477   :  { %v9843_v47 = vsub.f32 %v623_v11, %v657_v17  ;;  %691 = vadd.xlane.f32.xlu1 %v690_v45  ;;  %v687_v48 = vsel %vm34_vm1, %v671_v42, 0.0  ;;  %8648 = vmatprep.subr.mxu1 %v9537_v4 }
 0x478   :  { %688 = vadd.xlane.f32.xlu0 %v687_v48  ;;  %v674_v49 = vmul.f32 %v9840_v44, %v9840_v44 }
 0x479   :  { %v673_v50 = vmul.f32 %v9843_v47, %v9843_v47 }
 0x47a   :  { %v696_v28 = vsel %vm34_vm1, %v674_v49, 0.0 }
 0x47b   :  { %697 = vadd.xlane.f32.xlu1 %v696_v28  ;;  %v693_v46 = vsel %vm34_vm1, %v673_v50, 0.0 }
 0x47c   :  { %694 = vadd.xlane.f32.xlu0 %v693_v46 }
 0x4fc   :  { %v680_v56 = vpop.xlane.xlu1 %679 }
 0x4fd   :  { %v700_v43 = vmul.f32 0.03125, %v680_v56  ;;  %v677_v57 = vpop.xlane.xlu0 %676 }
 0x4fe   :  { %v699_v34 = vmul.f32 0.03125, %v677_v57 }
 0x4ff   :  { %v708_v58 = vadd.f32 1e-05, %v700_v43 }
 0x500   :  { %v707_v59 = vadd.f32 1e-05, %v699_v34  ;;  %v686_v60 = vpop.xlane.xlu1 %685 }
 0x501   :  { %9326 = vrsqrt.f32 %v708_v58  ;;  %v702_v62 = vmul.f32 0.03125, %v686_v60  ;;  %v683_v63 = vpop.xlane.xlu0 %682 }
 0x502   :  { %9328 = vrsqrt.f32 %v707_v59  ;;  %v701_v51 = vmul.f32 0.03125, %v683_v63 }
 0x503   :  { %v710_v2 = vadd.f32 1e-05, %v702_v62 }
 0x504   :  { %v709_v11 = vadd.f32 1e-05, %v701_v51  ;;  %v692_v3 = vpop.xlane.xlu1 %691 }
 0x505   :  { %9330 = vrsqrt.f32 %v710_v2  ;;  %v704_v5 = vmul.f32 0.03125, %v692_v3  ;;  %v689_v7 = vpop.xlane.xlu0 %688 }
 0x506   :  { %9332 = vrsqrt.f32 %v709_v11  ;;  %v703_v8 = vmul.f32 0.03125, %v689_v7 }
 0x507   :  { %v712_v32 = vadd.f32 1e-05, %v704_v5 }
 0x508   :  { %v711_v9 = vadd.f32 1e-05, %v703_v8  ;;  %v698_v23 = vpop.xlane.xlu1 %697 }
 0x509   :  { %9334 = vrsqrt.f32 %v712_v32  ;;  %v706_v13 = vmul.f32 0.03125, %v698_v23  ;;  %v695_v14 = vpop.xlane.xlu0 %694 }
 0x50a   :  { %9336 = vrsqrt.f32 %v711_v9  ;;  %v705_v16 = vmul.f32 0.03125, %v695_v14 }
 0x50b   :  { %v9327_v18 = vpop.eup %9326  ;;  %v714_v19 = vadd.f32 1e-05, %v706_v13 }
 0x50c   :  { %v9329_v26 = vpop.eup %9328  ;;  %v724_v61 = vmul.f32 %v9327_v18, %v9812_v10  ;;  %v713_v27 = vadd.f32 1e-05, %v705_v16 }
 0x50d   :  { %9338 = vrsqrt.f32 %v714_v19  ;;  %v723_v29 = vmul.f32 %v9329_v26, %v9814_v12 }
 0x50e   :  { %9340 = vrsqrt.f32 %v713_v27  ;;  %v736_v31 = vmul.f32 %v8048_v22, %v724_v61 }
 0x50f   :  { %v9331_v33 = vpop.eup %9330  ;;  %v735_v35 = vmul.f32 %v8048_v22, %v723_v29 }
 0x510   :  { %v9333_v37 = vpop.eup %9332  ;;  %v726_v38 = vmul.f32 %v9331_v33, %v9820_v20  ;;  %v9877_v10 = vadd.f32 %v8049_v30, %v736_v31 }
 0x511   :  { %v9874_v39 = vadd.f32 %v8049_v30, %v735_v35  ;;  %v725_v40 = vmul.f32 %v9333_v37, %v9823_v25 }
 0x512   :  { %v738_v41 = vmul.f32 %v8048_v22, %v726_v38 }
 0x513   :  { %v9335_v17 = vpop.eup %9334  ;;  %8636 = vmatprep.mubr.msk.f32.mxu1 %vm34_vm1, %v9874_v39  ;;  %v737_v12 = vmul.f32 %v8048_v22, %v725_v40 }
 0x514   :  { %v9337_v42 = vpop.eup %9336  ;;  %8637 = vmatmul.mubr.msk.f32.vlgmr.msra.gmra.mrb[2].mxu1 %vm34_vm1, %v9877_v10  ;;  %v728_v45 = vmul.f32 %v9335_v17, %v9830_v1  ;;  %v9887_v49 = vadd.f32 %v8049_v30, %v738_v41 }
 0x515   :  { %v9884_v48 = vadd.f32 %v8049_v30, %v737_v12  ;;  %v727_v20 = vmul.f32 %v9337_v42, %v9833_v36 }
 0x516   :  { %v740_v25 = vmul.f32 %v8048_v22, %v728_v45 }
 0x517   :  { %v9339_v50 = vpop.eup %9338  ;;  %8639 = vmatprep.mubr.msk.f32.mxu1 %vm34_vm1, %v9884_v48  ;;  %v739_v28 = vmul.f32 %v8048_v22, %v727_v20 }
 0x518   :  { %v9341_v46 = vpop.eup %9340  ;;  %8640 = vmatmul.mubr.msk.f32.gmra.mrb[4].mxu1 %vm34_vm1, %v9887_v49  ;;  %v730_v52 = vmul.f32 %v9339_v50, %v9840_v44  ;;  %v9897_v6 = vadd.f32 %v8049_v30, %v740_v25  ;;  %v8055_v44 = vld [vmem:[%s11270_s4 + $0x19] ss:$0 sm:$0xff] }
 0x519   :  { %v9894_v53 = vadd.f32 %v8049_v30, %v739_v28  ;;  %v729_v1 = vmul.f32 %v9341_v46, %v9843_v47 }
 0x51a   :  { %v742_v36 = vmul.f32 %v8048_v22, %v730_v52 }
 0x51b   :  { %8642 = vmatprep.mubr.msk.f32.mxu1 %vm34_vm1, %v9894_v53  ;;  %v741_v54 = vmul.f32 %v8048_v22, %v729_v1 }
 0x51c   :  { %8643 = vmatmul.mubr.msk.f32.gmra.mrb[6].mxu1 %vm34_vm1, %v9897_v6  ;;  %v9905_v55 = vadd.f32 %v8049_v30, %v742_v36 }
 0x51d   :  { %v9903_v24 = vadd.f32 %v8049_v30, %v741_v54 }
 0x51f   :  { %8645 = vmatprep.mubr.msk.f32.mxu1 %vm34_vm1, %v9903_v24 }
 0x520   :  { %8646 = vmatmul.mubr.msk.f32.gmra.mrb[8].mxu1 %vm34_vm1, %v9905_v55 }
 0x521   :  { %8650 = vmatprep.mubr.msk.f32.mxu1 %vm9536_vm0, %v9537_v4 }
 0x5e7   :  { %v8638_v47 = vpop.f32.mrb[2].mxu1 }
 0x5e8   :  { %v9916_v56 = vadd.f32 %v8638_v47, %v8055_v44  ;;  %v856_v43 = vpop.f32.mrb[3].mxu1 }
 0x5e9   :  { %v9918_v57 = vadd.f32 %v8055_v44, %v856_v43 }
 0x5ea   :  { %974 = vrot.lane.b32.xlu1 %v9916_v56, %s9539_s22 }
 0x5eb   :  { %v8641_v34 = vpop.f32.mrb[4].mxu1  ;;  %896 = vrot.lane.b32.xlu0 %v9918_v57, %s9539_s22 }
 0x5ec   :  { %v866_v58 = vpop.f32.mrb[5].mxu1  ;;  %v9927_v51 = vadd.f32 %v8641_v34, %v8055_v44 }
 0x5ed   :  { %v9922_v59 = vadd.f32 %v8055_v44, %v866_v58 }
 0x5ef   :  { %v8644_v60 = vpop.f32.mrb[6].mxu1  ;;  %1051 = vrot.lane.b32.xlu1 %v9922_v59, %s9539_s22 }
 0x5f0   :  { %v9925_v62 = vadd.f32 %v8644_v60, %v8055_v44  ;;  %v876_v63 = vpop.f32.mrb[7].mxu1 }
 0x5f1   :  { %v9931_v11 = vadd.f32 %v8055_v44, %v876_v63 }
 0x5f2   :  { %1282 = vrot.lane.b32.xlu0 %v9925_v62, %s9539_s22 }
 0x5f3   :  { %v8647_v2 = vpop.f32.mrb[8].mxu1  ;;  %1128 = vrot.lane.b32.xlu1 %v9927_v51, %s9539_s22 }
 0x5f4   :  { %v9933_v3 = vadd.f32 %v8647_v2, %v8055_v44  ;;  %v886_v5 = vpop.f32.mrb[9].mxu1 }
 0x5f5   :  { %v9937_v7 = vadd.f32 %v8055_v44, %v886_v5 }
 0x5f6   :  { %1205 = vrot.lane.b32.xlu0 %v9931_v11, %s9539_s22 }
 0x5f7   :  { %1436 = vrot.lane.b32.xlu1 %v9933_v3, %s9539_s22 }
 0x5fb   :  { %1359 = vrot.lane.b32.xlu1 %v9937_v7, %s9539_s22 }
 0x65c   :  { %v975_v8 = vpop.permute.xlu1 %974 }
 0x65d   :  { %v897_v32 = vpop.permute.xlu0 %896 }
 0x65e   :  { %8649 = vmatpush3.xpose.msk.msra.mxu1 %vm898_vm2, %v897_v32 }
 0x65f   :  { %8653 = vmatprep.subr.mxu1 %v9537_v4 }
 0x661   :  { %v1052_v9 = vpop.permute.xlu1 %1051  ;;  %8651 = vmatmul.mubr.msk.f32.vlgmr.msra.gmra.mrb[10].mxu1 %vm898_vm2, %v9918_v57 }
 0x662   :  { %8654 = vmatpush3.xpose.msk.msra.mxu1 %vm898_vm2, %v975_v8  ;;  %8655 = vmatprep.mubr.msk.f32.mxu1 %vm9536_vm0, %v9537_v4 }
 0x663   :  { %8658 = vmatprep.subr.mxu1 %v9537_v4 }
 0x664   :  { %v1283_v23 = vpop.permute.xlu0 %1282 }
 0x665   :  { %v1129_v13 = vpop.permute.xlu1 %1128  ;;  %8656 = vmatmul.mubr.msk.f32.vlgmr.msra.gmra.mrb[12].mxu1 %vm898_vm2, %v9916_v56 }
 0x666   :  { %8659 = vmatpush3.xpose.msk.msra.mxu1 %vm898_vm2, %v1052_v9  ;;  %8660 = vmatprep.mubr.msk.f32.mxu1 %vm9536_vm0, %v9537_v4 }
 0x667   :  { %8663 = vmatprep.subr.mxu1 %v9537_v4 }
 0x668   :  { %v1206_v14 = vpop.permute.xlu0 %1205 }
 0x669   :  { %v1437_v16 = vpop.permute.xlu1 %1436  ;;  %8661 = vmatmul.mubr.msk.f32.vlgmr.msra.gmra.mrb[14].mxu1 %vm898_vm2, %v9922_v59  ;;  %8669 = vmatpush3.xpose.msk.msra.mxu0 %vm898_vm2, %v1206_v14 }
 0x66a   :  { %8664 = vmatpush3.xpose.msk.msra.mxu1 %vm898_vm2, %v1129_v13  ;;  %8665 = vmatprep.mubr.msk.f32.mxu1 %vm9536_vm0, %v9537_v4 }
 0x66b   :  { %8673 = vmatprep.subr.mxu1 %v9537_v4  ;;  %8678 = vmatprep.subr.mxu0 %v9537_v4 }
 0x66c   :  { %8671 = vmatmul.mubr.msk.f32.vlgmr.msra.gmra.mrb[16].mxu0 %vm898_vm2, %v9931_v11 }
 0x66d   :  { %v1360_v18 = vpop.permute.xlu1 %1359  ;;  %8666 = vmatmul.mubr.msk.f32.vlgmr.msra.gmra.mrb[16].mxu1 %vm898_vm2, %v9927_v51  ;;  %8680 = vmatprep.mubr.msk.f32.mxu0 %vm9536_vm0, %v9537_v4 }
 0x66e   :  { %8674 = vmatpush3.xpose.msk.msra.mxu1 %vm898_vm2, %v1283_v23  ;;  %8679 = vmatpush3.xpose.msk.msra.mxu0 %vm898_vm2, %v1360_v18 }
 0x66f   :  { %8675 = vmatprep.mubr.msk.f32.mxu1 %vm9536_vm0, %v9537_v4  ;;  %8683 = vmatprep.subr.mxu1 %v9537_v4 }
 0x670   :  { %8688 = vmatprep.subr.mxu0 %v9537_v4 }
 0x671   :  { %8676 = vmatmul.mubr.msk.f32.vlgmr.msra.gmra.mrb[18].mxu1 %vm898_vm2, %v9925_v62  ;;  %8681 = vmatmul.mubr.msk.f32.vlgmr.msra.gmra.mrb[18].mxu0 %vm898_vm2, %v9937_v7 }
 0x672   :  { %8684 = vmatpush3.xpose.msk.msra.mxu1 %vm898_vm2, %v1437_v16  ;;  %8685 = vmatprep.mubr.msk.f32.mxu1 %vm9536_vm0, %v9537_v4 }
 0x673   :  { %8693 = vmatprep.subr.mxu1 %v9537_v4  ;;  %8690 = vmatprep.mubr.msk.f32.mxu0 %vm9536_vm0, %v9537_v4 }
 0x675   :  { %8686 = vmatmul.mubr.msk.f32.vlgmr.msra.gmra.mrb[20].mxu1 %vm898_vm2, %v9933_v3 }
 0x676   :  { %8695 = vmatprep.mubr.msk.f32.mxu1 %vm9536_vm0, %v9537_v4 }
 0x734   :  { %v9988_v19 = vpop.f32.mrb[10].mxu1 }
 0x735   :  { %v8652_v22 = vpop.f32.mrb[11].mxu1  ;;  %v1512_v13 = vsel %vm898_vm2, %v9988_v19, -inf }
 0x738   :  { %v1046_v26 = vpop.f32.mrb[12].mxu1 }
 0x739   :  { %v8657_v61 = vpop.f32.mrb[13].mxu1  ;;  %v1515_v27 = vsel %vm898_vm2, %v1046_v26, -inf }
 0x73a   :  { %1516 = vmax.xlane.f32.xlu0 %v1515_v27 }
 0x73c   :  { %v9991_v29 = vpop.f32.mrb[14].mxu1 }
 0x73d   :  { %v8662_v30 = vpop.f32.mrb[15].mxu1  ;;  %v1518_v18 = vsel %vm898_vm2, %v9991_v29, -inf }
 0x73f   :  { %v9993_v31 = vpop.f32.mrb[16].mxu0 }
 0x740   :  { %v1200_v33 = vpop.f32.mrb[16].mxu1  ;;  %v8672_v35 = vpop.f32.mrb[17].mxu0  ;;  %v1524_v14 = vsel %vm898_vm2, %v9993_v31, -inf }
 0x741   :  { %v8667_v37 = vpop.f32.mrb[17].mxu1  ;;  %v1521_v38 = vsel %vm898_vm2, %v1200_v33, -inf }
 0x742   :  { %1522 = vmax.xlane.f32.xlu1 %v1521_v38 }
 0x744   :  { %v1354_v40 = vpop.f32.mrb[18].mxu1  ;;  %v9996_v41 = vpop.f32.mrb[18].mxu0 }
 0x745   :  { %v8677_v17 = vpop.f32.mrb[19].mxu1  ;;  %v8682_v12 = vpop.f32.mrb[19].mxu0  ;;  %v1527_v42 = vsel %vm898_vm2, %v1354_v40, -inf  ;;  %v1530_v16 = vsel %vm898_vm2, %v9996_v41, -inf }
 0x746   :  { %1528 = vmax.xlane.f32.xlu0 %v1527_v42 }
 0x748   :  { %v1508_v45 = vpop.f32.mrb[20].mxu1 }
 0x749   :  { %v8687_v20 = vpop.f32.mrb[21].mxu1  ;;  %v1533_v25 = vsel %vm898_vm2, %v1508_v45, -inf }
 0x74a   :  { %1534 = vmax.xlane.f32.xlu0 %v1533_v25 }
 0x7c7   :  { %v1517_v50 = vpop.xlane.xlu0 %1516 }
 0x7c8   :  { %v1537_v28 = vsub.f32 %v1046_v26, %v1517_v50 }
 0x7ca   :  { %v1546_v46 = vmul.f32 1.442695, %v1537_v28 }
 0x7cc   :  { %9342 = vpow2.f32 %v1546_v46 }
 0x7cf   :  { %v1523_v52 = vpop.xlane.xlu1 %1522 }
 0x7d0   :  { %v1539_v1 = vsub.f32 %v1200_v33, %v1523_v52 }
 0x7d2   :  { %v1550_v36 = vmul.f32 1.442695, %v1539_v1 }
 0x7d3   :  { %v1529_v54 = vpop.xlane.xlu0 %1528 }
 0x7d4   :  { %9344 = vpow2.f32 %v1550_v36  ;;  %v1541_v44 = vsub.f32 %v1354_v40, %v1529_v54 }
 0x7d6   :  { %v9343_v47 = vpop.eup %9342  ;;  %v1554_v43 = vmul.f32 1.442695, %v1541_v44 }
 0x7d7   :  { %v1563_v34 = vsel %vm898_vm2, %v9343_v47, 0.0  ;;  %v1535_v5 = vpop.xlane.xlu0 %1534 }
 0x7d8   :  { %9346 = vpow2.f32 %v1554_v43  ;;  %1564 = vadd.xlane.f32.xlu0 %v1563_v34  ;;  %v1543_v8 = vsub.f32 %v1508_v45, %v1535_v5 }
 0x7da   :  { %v1558_v32 = vmul.f32 1.442695, %v1543_v8 }
 0x7dc   :  { %9348 = vpow2.f32 %v1558_v32 }
 0x7de   :  { %v9345_v58 = vpop.eup %9344 }
 0x7df   :  { %v1569_v60 = vsel %vm898_vm2, %v9345_v58, 0.0 }
 0x7e0   :  { %1570 = vadd.xlane.f32.xlu1 %v1569_v60 }
 0x7e2   :  { %v9347_v63 = vpop.eup %9346 }
 0x7e3   :  { %v1575_v2 = vsel %vm898_vm2, %v9347_v63, 0.0 }
 0x7e4   :  { %1576 = vadd.xlane.f32.xlu0 %v1575_v2 }
 0x7e6   :  { %v9349_v9 = vpop.eup %9348 }
 0x7e7   :  { %v1581_v23 = vsel %vm898_vm2, %v9349_v9, 0.0 }
 0x7f1   :  { %1828 = vrot.lane.b32.xlu1 %v9927_v51, %s9540_s23 }
 0x7f5   :  { %1980 = vrot.lane.b32.xlu1 %v9925_v62, %s9540_s23 }
 0x7f9   :  { %2132 = vrot.lane.b32.xlu1 %v9933_v3, %s9540_s23 }
 0x7fa   :  { %1676 = vrot.lane.b32.xlu0 %v9916_v56, %s9540_s23 }
 0x7fd   :  { %2288 = vrot.lane.b32.xlu1 %v9916_v56, %s9541_s24 }
 0x7fe   :  { %2290 = vrot.lane.b32.xlu0 %v9916_v56, %s9542_s25 }
 0x802   :  { %2446 = vrot.lane.b32.xlu0 %v9927_v51, %s9542_s25 }
 0x806   :  { %2602 = vrot.lane.b32.xlu0 %v9925_v62, %s9542_s25 }
 0x80a   :  { %2758 = vrot.lane.b32.xlu0 %v9933_v3, %s9542_s25 }
 0x821   :  { %1582 = vadd.xlane.f32.xlu1 %v1581_v23 }
 0x829   :  { %1513 = vmax.xlane.f32.xlu0 %v1512_v13 }
 0x82d   :  { %1525 = vmax.xlane.f32.xlu0 %v1524_v14 }
 0x831   :  { %1531 = vmax.xlane.f32.xlu0 %v1530_v16 }
 0x832   :  { %2444 = vrot.lane.b32.xlu1 %v9927_v51, %s9541_s24 }
 0x836   :  { %2600 = vrot.lane.b32.xlu1 %v9925_v62, %s9541_s24 }
 0x83a   :  { %2756 = vrot.lane.b32.xlu1 %v9933_v3, %s9541_s24 }
 0x85e   :  { %1519 = vmax.xlane.f32.xlu1 %v1518_v18 }
 0x865   :  { %v1565_v22 = vpop.xlane.xlu0 %1564 }
 0x866   :  { %9350 = vrcp.f32 %v1565_v22 }
 0x86d   :  { %v1571_v26 = vpop.xlane.xlu1 %1570 }
 0x86e   :  { %9352 = vrcp.f32 %v1571_v26 }
 0x870   :  { %v9351_v27 = vpop.eup %9350 }
 0x871   :  { %v1577_v61 = vpop.xlane.xlu0 %1576  ;;  %v1829_v30 = vpop.permute.xlu1 %1828  ;;  %v1593_v35 = vmul.f32 %v9351_v27, %v9343_v47 }
 0x872   :  { %9354 = vrcp.f32 %v1577_v61 }
 0x875   :  { %v1677_v33 = vpop.permute.xlu0 %1676  ;;  %v1981_v38 = vpop.permute.xlu1 %1980 }
 0x876   :  { %8694 = vmatpush3.msra.mxu1 %v1677_v33 }
 0x877   :  { %8696 = vmatmul.mubr.msk.f32.vlgmr.msra.gmra.mrb[22].mxu1 %vm898_vm2, %v1593_v35  ;;  %8703 = vmatprep.subr.mxu1 %v9537_v4 }
 0x878   :  { %v9353_v37 = vpop.eup %9352  ;;  %8704 = vmatpush3.msra.mxu1 %v1829_v30  ;;  %8705 = vmatprep.mubr.msk.f32.mxu1 %vm9536_vm0, %v9537_v4 }
 0x879   :  { %8713 = vmatprep.subr.mxu1 %v9537_v4  ;;  %v1595_v40 = vmul.f32 %v9353_v37, %v9345_v58  ;;  %v2133_v42 = vpop.permute.xlu1 %2132  ;;  %v2291_v45 = vpop.permute.xlu0 %2290 }
 0x87b   :  { %8706 = vmatmul.mubr.msk.f32.vlgmr.msra.gmra.mrb[24].mxu1 %vm898_vm2, %v1595_v40 }
 0x87c   :  { %v9355_v17 = vpop.eup %9354  ;;  %8714 = vmatpush3.msra.mxu1 %v1981_v38  ;;  %8715 = vmatprep.mubr.msk.f32.mxu1 %vm9536_vm0, %v9537_v4 }
 0x87d   :  { %8723 = vmatprep.subr.mxu1 %v9537_v4  ;;  %v1597_v12 = vmul.f32 %v9355_v17, %v9347_v63  ;;  %v2447_v20 = vpop.permute.xlu0 %2446  ;;  %v2289_v25 = vpop.permute.xlu1 %2288 }
 0x87f   :  { %8716 = vmatmul.mubr.msk.f32.vlgmr.msra.gmra.mrb[26].mxu1 %vm898_vm2, %v1597_v12 }
 0x880   :  { %8724 = vmatpush3.msra.mxu1 %v2133_v42  ;;  %8725 = vmatprep.mubr.msk.f32.mxu1 %vm9536_vm0, %v9537_v4 }
 0x881   :  { %8733 = vmatprep.subr.mxu1 %v9537_v4  ;;  %v2603_v50 = vpop.permute.xlu0 %2602 }
 0x885   :  { %v2759_v46 = vpop.permute.xlu0 %2758 }
 0x8ae   :  { %v1583_v28 = vpop.xlane.xlu1 %1582 }
 0x8af   :  { %9356 = vrcp.f32 %v1583_v28 }
 0x8b2   :  { %v2445_v58 = vpop.permute.xlu1 %2444 }
 0x8b6   :  { %v1514_v52 = vpop.xlane.xlu0 %1513 }
 0x8b7   :  { %v1536_v1 = vsub.f32 %v9988_v19, %v1514_v52 }
 0x8b9   :  { %v9357_v36 = vpop.eup %9356  ;;  %v1544_v54 = vmul.f32 1.442695, %v1536_v1 }
 0x8ba   :  { %v1526_v44 = vpop.xlane.xlu0 %1525  ;;  %v1599_v47 = vmul.f32 %v9357_v36, %v9349_v9 }
 0x8bb   :  { %9358 = vpow2.f32 %v1544_v54  ;;  %v1540_v43 = vsub.f32 %v9993_v31, %v1526_v44  ;;  %v2601_v31 = vpop.permute.xlu1 %2600 }
 0x8bc   :  { %8726 = vmatmul.mubr.msk.f32.vlgmr.msra.gmra.mrb[28].mxu1 %vm898_vm2, %v1599_v47 }
 0x8bd   :  { %v1552_v34 = vmul.f32 1.442695, %v1540_v43  ;;  %8734 = vmatpush3.xpose.msk.msra.mxu1 %vm898_vm2, %v2291_v45  ;;  %8735 = vmatprep.mubr.msk.f32.mxu1 %vm9536_vm0, %v9537_v4 }
 0x8be   :  { %8743 = vmatprep.subr.mxu1 %v9537_v4  ;;  %v1532_v8 = vpop.xlane.xlu0 %1531 }
 0x8bf   :  { %9360 = vpow2.f32 %v1552_v34  ;;  %v2757_v5 = vpop.permute.xlu1 %2756  ;;  %v1542_v32 = vsub.f32 %v9996_v41, %v1532_v8 }
 0x8c0   :  { %8736 = vmatmul.mubr.msk.f32.vlgmr.msra.gmra.mrb[30].mxu1 %vm898_vm2, %v2289_v25 }
 0x8c1   :  { %8744 = vmatpush3.xpose.msk.msra.mxu1 %vm898_vm2, %v2447_v20  ;;  %8745 = vmatprep.mubr.msk.f32.mxu1 %vm9536_vm0, %v9537_v4  ;;  %v1556_v13 = vmul.f32 1.442695, %v1542_v32 }
 0x8c2   :  { %8753 = vmatprep.subr.mxu1 %v9537_v4 }
 0x8c4   :  { %8746 = vmatmul.mubr.msk.f32.vlgmr.msra.gmra.mrb[32].mxu1 %vm898_vm2, %v2445_v58 }
 0x8c5   :  { %v9359_v19 = vpop.eup %9358  ;;  %8754 = vmatpush3.xpose.msk.msra.mxu1 %vm898_vm2, %v2603_v50  ;;  %8755 = vmatprep.mubr.msk.f32.mxu1 %vm9536_vm0, %v9537_v4 }
 0x8c6   :  { %8763 = vmatprep.subr.mxu1 %v9537_v4  ;;  %v1560_v60 = vsel %vm898_vm2, %v9359_v19, 0.0 }
 0x8c7   :  { %1561 = vadd.xlane.f32.xlu0 %v1560_v60 }
 0x8c8   :  { %8756 = vmatmul.mubr.msk.f32.vlgmr.msra.gmra.mrb[34].mxu1 %vm898_vm2, %v2601_v31 }
 0x8c9   :  { %v10068_v63 = vpop.eup %9360  ;;  %8764 = vmatpush3.xpose.msk.msra.mxu1 %vm898_vm2, %v2759_v46  ;;  %8765 = vmatprep.mubr.msk.f32.mxu1 %vm9536_vm0, %v9537_v4 }
 0x8ca   :  { %v1572_v2 = vsel %vm898_vm2, %v10068_v63, 0.0  ;;  %8773 = vmatprep.subr.mxu1 %v9537_v4 }
 0x8cb   :  { %1573 = vadd.xlane.f32.xlu0 %v1572_v2 }
 0x8cc   :  { %8766 = vmatmul.mubr.msk.f32.vlgmr.msra.gmra.mrb[36].mxu1 %vm898_vm2, %v2757_v5 }
 0x8cd   :  { %8775 = vmatprep.mubr.msk.f32.mxu1 %vm9536_vm0, %v9537_v4 }
 0x8e1   :  { %1600 = vrot.lane.b32.xlu0 %v9918_v57, %s9540_s23 }
 0x8e5   :  { %2212 = vrot.lane.b32.xlu0 %v9918_v57, %s9542_s25 }
 0x8e9   :  { %2368 = vrot.lane.b32.xlu0 %v9922_v59, %s9542_s25 }
 0x8eb   :  { %v1520_v9 = vpop.xlane.xlu1 %1519 }
 0x8ec   :  { %v1538_v23 = vsub.f32 %v9991_v29, %v1520_v9 }
 0x8ed   :  { %2524 = vrot.lane.b32.xlu0 %v9931_v11, %s9542_s25 }
 0x8ee   :  { %v1548_v14 = vmul.f32 1.442695, %v1538_v23 }
 0x8f0   :  { %9362 = vpow2.f32 %v1548_v14 }
 0x8f1   :  { %2680 = vrot.lane.b32.xlu0 %v9937_v7, %s9542_s25  ;;  %9364 = vpow2.f32 %v1556_v13 }
 0x8fa   :  { %v9363_v16 = vpop.eup %9362 }
 0x8fb   :  { %v1566_v18 = vsel %vm898_vm2, %v9363_v16, 0.0  ;;  %v10092_v22 = vpop.eup %9364 }
 0x8fc   :  { %1567 = vadd.xlane.f32.xlu1 %v1566_v18  ;;  %v1578_v41 = vsel %vm898_vm2, %v10092_v22, 0.0 }
 0x900   :  { %1579 = vadd.xlane.f32.xlu1 %v1578_v41 }
 0x911   :  { %1752 = vrot.lane.b32.xlu1 %v9922_v59, %s9540_s23 }
 0x915   :  { %1904 = vrot.lane.b32.xlu1 %v9931_v11, %s9540_s23 }
 0x919   :  { %2056 = vrot.lane.b32.xlu1 %v9937_v7, %s9540_s23 }
 0x91d   :  { %2210 = vrot.lane.b32.xlu1 %v9918_v57, %s9541_s24 }
 0x921   :  { %2366 = vrot.lane.b32.xlu1 %v9922_v59, %s9541_s24 }
 0x925   :  { %2522 = vrot.lane.b32.xlu1 %v9931_v11, %s9541_s24 }
 0x929   :  { %2678 = vrot.lane.b32.xlu1 %v9937_v7, %s9541_s24 }
 0x94a   :  { %v10110_v29 = vpop.f32.mrb[22].mxu1 }
 0x94b   :  { %v8697_v26 = vpop.f32.mrb[23].mxu1 }
 0x94e   :  { %v10112_v61 = vpop.f32.mrb[24].mxu1 }
 0x94f   :  { %v8707_v27 = vpop.f32.mrb[25].mxu1 }
 0x952   :  { %v10114_v30 = vpop.f32.mrb[26].mxu1 }
 0x953   :  { %v8717_v33 = vpop.f32.mrb[27].mxu1 }
 0x954   :  { %v1562_v35 = vpop.xlane.xlu0 %1561 }
 0x955   :  { %9366 = vrcp.f32 %v1562_v35 }
 0x958   :  { %v1574_v37 = vpop.xlane.xlu0 %1573 }
 0x95c   :  { %v1601_v38 = vpop.permute.xlu0 %1600 }
 0x95d   :  { %8689 = vmatpush3.msra.mxu0 %v1601_v38 }
 0x95e   :  { %8698 = vmatprep.subr.mxu0 %v9537_v4 }
 0x95f   :  { %v9367_v40 = vpop.eup %9366 }
 0x960   :  { %v1592_v17 = vmul.f32 %v9367_v40, %v9359_v19  ;;  %v2213_v60 = vpop.permute.xlu0 %2212 }
 0x962   :  { %8691 = vmatmul.mubr.msk.f32.vlgmr.msra.gmra.mrb[20].mxu0 %vm898_vm2, %v1592_v17 }
 0x963   :  { %8700 = vmatprep.mubr.msk.f32.mxu0 %vm9536_vm0, %v9537_v4 }
 0x964   :  { %v2369_v13 = vpop.permute.xlu0 %2368 }
 0x989   :  { %v1568_v12 = vpop.xlane.xlu1 %1567 }
 0x98a   :  { %9368 = vrcp.f32 %v1568_v12 }
 0x98b   :  { %9370 = vrcp.f32 %v1574_v37 }
 0x98d   :  { %v1580_v42 = vpop.xlane.xlu1 %1579 }
 0x98e   :  { %9372 = vrcp.f32 %v1580_v42 }
 0x98f   :  { %v10120_v45 = vpop.f32.mrb[28].mxu1 }
 0x990   :  { %v8727_v20 = vpop.f32.mrb[29].mxu1 }
 0x991   :  { %v1753_v25 = vpop.permute.xlu1 %1752 }
 0x992   :  { %8699 = vmatpush3.msra.mxu0 %v1753_v25 }
 0x993   :  { %v10122_v50 = vpop.f32.mrb[30].mxu1  ;;  %8708 = vmatprep.subr.mxu0 %v9537_v4 }
 0x994   :  { %v9369_v28 = vpop.eup %9368  ;;  %v8737_v46 = vpop.f32.mrb[31].mxu1  ;;  %v2837_v52 = vsel %vm898_vm2, %v10122_v50, -inf }
 0x995   :  { %2838 = vmax.xlane.f32.xlu0 %v2837_v52  ;;  %v1905_v1 = vpop.permute.xlu1 %1904  ;;  %v1594_v36 = vmul.f32 %v9369_v28, %v9363_v16  ;;  %v9371_v54 = vpop.eup %9370 }
 0x996   :  { %v1596_v58 = vmul.f32 %v9371_v54, %v10068_v63  ;;  %v2525_v16 = vpop.permute.xlu0 %2524 }
 0x997   :  { %8701 = vmatmul.mubr.msk.f32.vlgmr.msra.gmra.mrb[22].mxu0 %vm898_vm2, %v1594_v36  ;;  %v2518_v44 = vpop.f32.mrb[32].mxu1 }
 0x998   :  { %8709 = vmatpush3.msra.mxu0 %v1905_v1  ;;  %v8747_v47 = vpop.f32.mrb[33].mxu1  ;;  %v2843_v43 = vsel %vm898_vm2, %v2518_v44, -inf  ;;  %8710 = vmatprep.mubr.msk.f32.mxu0 %vm9536_vm0, %v9537_v4  ;;  %v9373_v19 = vpop.eup %9372 }
 0x999   :  { %2844 = vmax.xlane.f32.xlu1 %v2843_v43  ;;  %v2057_v34 = vpop.permute.xlu1 %2056  ;;  %8718 = vmatprep.subr.mxu0 %v9537_v4  ;;  %v1598_v8 = vmul.f32 %v9373_v19, %v10092_v22 }
 0x99a   :  { %v2681_v22 = vpop.permute.xlu0 %2680 }
 0x99b   :  { %8711 = vmatmul.mubr.msk.f32.vlgmr.msra.gmra.mrb[24].mxu0 %vm898_vm2, %v1596_v58  ;;  %v10134_v31 = vpop.f32.mrb[34].mxu1 }
 0x99c   :  { %8719 = vmatpush3.msra.mxu0 %v2057_v34  ;;  %v8757_v2 = vpop.f32.mrb[35].mxu1  ;;  %v2849_v5 = vsel %vm898_vm2, %v10134_v31, -inf  ;;  %8720 = vmatprep.mubr.msk.f32.mxu0 %vm9536_vm0, %v9537_v4 }
 0x99d   :  { %2850 = vmax.xlane.f32.xlu0 %v2849_v5  ;;  %8728 = vmatprep.subr.mxu0 %v9537_v4  ;;  %v2211_v63 = vpop.permute.xlu1 %2210 }
 0x99f   :  { %8721 = vmatmul.mubr.msk.f32.vlgmr.msra.gmra.mrb[26].mxu0 %vm898_vm2, %v1598_v8  ;;  %v2830_v32 = vpop.f32.mrb[36].mxu1 }
 0x9a0   :  { %v8767_v9 = vpop.f32.mrb[37].mxu1  ;;  %v2855_v23 = vsel %vm898_vm2, %v2830_v32, -inf  ;;  %8730 = vmatprep.mubr.msk.f32.mxu0 %vm9536_vm0, %v9537_v4 }
 0x9a1   :  { %2856 = vmax.xlane.f32.xlu0 %v2855_v23  ;;  %v2367_v14 = vpop.permute.xlu1 %2366 }
 0x9a3   :  { %8729 = vmatpush3.xpose.msk.msra.mxu0 %vm898_vm2, %v2213_v60 }
 0x9a4   :  { %8738 = vmatprep.subr.mxu0 %v9537_v4 }
 0x9a5   :  { %v2523_v18 = vpop.permute.xlu1 %2522 }
 0x9a6   :  { %8731 = vmatmul.mubr.msk.f32.vlgmr.msra.gmra.mrb[28].mxu0 %vm898_vm2, %v2211_v63 }
 0x9a7   :  { %8739 = vmatpush3.xpose.msk.msra.mxu0 %vm898_vm2, %v2369_v13  ;;  %8740 = vmatprep.mubr.msk.f32.mxu0 %vm9536_vm0, %v9537_v4 }
 0x9a8   :  { %8748 = vmatprep.subr.mxu0 %v9537_v4 }
 0x9a9   :  { %v2679_v41 = vpop.permute.xlu1 %2678 }
 0x9aa   :  { %8741 = vmatmul.mubr.msk.f32.vlgmr.msra.gmra.mrb[30].mxu0 %vm898_vm2, %v2367_v14  ;;  %3150 = vrot.lane.b32.xlu1 %v9927_v51, %s9543_s26 }
 0x9ab   :  { %8749 = vmatpush3.xpose.msk.msra.mxu0 %vm898_vm2, %v2525_v16  ;;  %8750 = vmatprep.mubr.msk.f32.mxu0 %vm9536_vm0, %v9537_v4 }
 0x9ac   :  { %8758 = vmatprep.subr.mxu0 %v9537_v4 }
 0x9ae   :  { %8751 = vmatmul.mubr.msk.f32.vlgmr.msra.gmra.mrb[32].mxu0 %vm898_vm2, %v2523_v18  ;;  %3302 = vrot.lane.b32.xlu1 %v9925_v62, %s9543_s26 }
 0x9af   :  { %8759 = vmatpush3.xpose.msk.msra.mxu0 %vm898_vm2, %v2681_v22  ;;  %8760 = vmatprep.mubr.msk.f32.mxu0 %vm9536_vm0, %v9537_v4 }
 0x9b0   :  { %8768 = vmatprep.subr.mxu0 %v9537_v4 }
 0x9b2   :  { %8761 = vmatmul.mubr.msk.f32.vlgmr.msra.gmra.mrb[34].mxu0 %vm898_vm2, %v2679_v41  ;;  %3454 = vrot.lane.b32.xlu1 %v9933_v3, %s9543_s26 }
 0x9b3   :  { %8770 = vmatprep.mubr.msk.f32.mxu0 %vm9536_vm0, %v9537_v4 }
 0xa22   :  { %v2839_v26 = vpop.xlane.xlu0 %2838 }
 0xa23   :  { %v2859_v27 = vsub.f32 %v10122_v50, %v2839_v26 }
 0xa25   :  { %v2868_v33 = vmul.f32 1.442695, %v2859_v27 }
 0xa26   :  { %v2845_v35 = vpop.xlane.xlu1 %2844 }
 0xa27   :  { %9374 = vpow2.f32 %v2868_v33  ;;  %v2861_v37 = vsub.f32 %v2518_v44, %v2845_v35 }
 0xa29   :  { %v2872_v38 = vmul.f32 1.442695, %v2861_v37 }
 0xa2a   :  { %v2851_v50 = vpop.xlane.xlu0 %2850  ;;  %v3151_v16 = vpop.permute.xlu1 %3150 }
 0xa2b   :  { %9376 = vpow2.f32 %v2872_v38  ;;  %v2863_v28 = vsub.f32 %v10134_v31, %v2851_v50 }
 0xa2d   :  { %v2876_v52 = vmul.f32 1.442695, %v2863_v28 }
 0xa2e   :  { %v2857_v46 = vpop.xlane.xlu0 %2856  ;;  %v3303_v41 = vpop.permute.xlu1 %3302 }
 0xa2f   :  { %v2865_v1 = vsub.f32 %v2830_v32, %v2857_v46  ;;  %9378 = vpow2.f32 %v2876_v52 }
 0xa31   :  { %v10173_v40 = vpop.eup %9374  ;;  %v2880_v36 = vmul.f32 1.442695, %v2865_v1 }
 0xa32   :  { %v2885_v17 = vsel %vm898_vm2, %v10173_v40, 0.0  ;;  %v3455_v27 = vpop.permute.xlu1 %3454 }
 0xa33   :  { %2886 = vadd.xlane.f32.xlu0 %v2885_v17  ;;  %9380 = vpow2.f32 %v2880_v36 }
 0xa35   :  { %v10177_v12 = vpop.eup %9376  ;;  %v10179_v42 = vpop.f32.mrb[20].mxu0 }
 0xa36   :  { %v8692_v20 = vpop.f32.mrb[21].mxu0  ;;  %v2891_v25 = vsel %vm898_vm2, %v10177_v12, 0.0 }
 0xa37   :  { %2892 = vadd.xlane.f32.xlu1 %v2891_v25 }
 0xa39   :  { %v10188_v54 = vpop.eup %9378 }
 0xa3a   :  { %v2897_v44 = vsel %vm898_vm2, %v10188_v54, 0.0 }
 0xa3d   :  { %v10192_v47 = vpop.eup %9380 }
 0xa3e   :  { %v2903_v58 = vsel %vm898_vm2, %v10192_v47, 0.0 }
 0xa48   :  { %3789 = vrot.lane.b32.xlu1 %v9918_v57, %s9544_s27 }
 0xa49   :  { %2998 = vrot.lane.b32.xlu0 %v9916_v56, %s9543_s26 }
 0xa68   :  { %2898 = vadd.xlane.f32.xlu0 %v2897_v44 }
 0xa6a   :  { %v10194_v43 = vpop.f32.mrb[22].mxu0 }
 0xa6b   :  { %v8702_v34 = vpop.f32.mrb[23].mxu0 }
 0xa6c   :  { %2904 = vadd.xlane.f32.xlu1 %v2903_v58 }
 0xa6e   :  { %v10198_v19 = vpop.f32.mrb[24].mxu0 }
 0xa6f   :  { %v8712_v31 = vpop.f32.mrb[25].mxu0 }
 0xa72   :  { %v10200_v60 = vpop.f32.mrb[26].mxu0 }
 0xa73   :  { %v8722_v2 = vpop.f32.mrb[27].mxu0 }
 0xa79   :  { %v10202_v5 = vpop.f32.mrb[28].mxu0 }
 0xa7a   :  { %v8732_v8 = vpop.f32.mrb[29].mxu0  ;;  %v2834_v18 = vsel %vm898_vm2, %v10202_v5, -inf }
 0xa7d   :  { %v10204_v63 = vpop.f32.mrb[30].mxu0  ;;  %3867 = vrot.lane.b32.xlu1 %v9916_v56, %s9544_s27 }
 0xa7e   :  { %v8742_v32 = vpop.f32.mrb[31].mxu0  ;;  %3791 = vrot.lane.b32.xlu0 %v9918_v57, %s9545_s28  ;;  %v2840_v22 = vsel %vm898_vm2, %v10204_v63, -inf }
 0xa81   :  { %v10209_v9 = vpop.f32.mrb[32].mxu0  ;;  %3945 = vrot.lane.b32.xlu1 %v9922_v59, %s9544_s27 }
 0xa82   :  { %v8752_v23 = vpop.f32.mrb[33].mxu0  ;;  %3869 = vrot.lane.b32.xlu0 %v9916_v56, %s9545_s28  ;;  %v2846_v26 = vsel %vm898_vm2, %v10209_v9, -inf }
 0xa85   :  { %v10214_v13 = vpop.f32.mrb[34].mxu0  ;;  %4023 = vrot.lane.b32.xlu1 %v9927_v51, %s9544_s27 }
 0xa86   :  { %v8762_v14 = vpop.f32.mrb[35].mxu0  ;;  %3947 = vrot.lane.b32.xlu0 %v9922_v59, %s9545_s28  ;;  %v2852_v35 = vsel %vm898_vm2, %v10214_v13, -inf }
 0xa89   :  { %4101 = vrot.lane.b32.xlu1 %v9931_v11, %s9544_s27 }
 0xa8a   :  { %4025 = vrot.lane.b32.xlu0 %v9927_v51, %s9545_s28 }
 0xa8d   :  { %4179 = vrot.lane.b32.xlu1 %v9925_v62, %s9544_s27 }
 0xa8e   :  { %4103 = vrot.lane.b32.xlu0 %v9931_v11, %s9545_s28 }
 0xa91   :  { %4257 = vrot.lane.b32.xlu1 %v9937_v7, %s9544_s27 }
 0xa92   :  { %4181 = vrot.lane.b32.xlu0 %v9925_v62, %s9545_s28 }
 0xa95   :  { %4335 = vrot.lane.b32.xlu1 %v9933_v3, %s9544_s27 }
 0xa96   :  { %4259 = vrot.lane.b32.xlu0 %v9937_v7, %s9545_s28 }
 0xa9a   :  { %4337 = vrot.lane.b32.xlu0 %v9933_v3, %s9545_s28 }
 0xab9   :  { %2835 = vmax.xlane.f32.xlu0 %v2834_v18  ;;  %2841 = vmax.xlane.f32.xlu1 %v2840_v22 }
 0xabd   :  { %2847 = vmax.xlane.f32.xlu0 %v2846_v26 }
 0xac0   :  { %v2887_v33 = vpop.xlane.xlu0 %2886 }
 0xac1   :  { %9382 = vrcp.f32 %v2887_v33  ;;  %2853 = vmax.xlane.f32.xlu0 %v2852_v35 }
 0xac4   :  { %v2893_v37 = vpop.xlane.xlu1 %2892  ;;  %v2999_v38 = vpop.permute.xlu0 %2998 }
 0xac5   :  { %9384 = vrcp.f32 %v2893_v37  ;;  %8774 = vmatpush3.msra.mxu1 %v2999_v38 }
 0xac6   :  { %8783 = vmatprep.subr.mxu1 %v9537_v4 }
 0xacb   :  { %v9383_v17 = vpop.eup %9382 }
 0xacc   :  { %v2915_v20 = vmul.f32 %v9383_v17, %v10173_v40  ;;  %v3790_v40 = vpop.permute.xlu1 %3789 }
 0xace   :  { %8776 = vmatmul.mubr.msk.f32.vlgmr.msra.gmra.mrb[38].mxu1 %vm898_vm2, %v2915_v20 }
 0xacf   :  { %v9385_v25 = vpop.eup %9384  ;;  %8784 = vmatpush3.msra.mxu1 %v3151_v16  ;;  %8785 = vmatprep.mubr.msk.f32.mxu1 %vm9536_vm0, %v9537_v4 }
 0xad0   :  { %8793 = vmatprep.subr.mxu1 %v9537_v4  ;;  %v2917_v50 = vmul.f32 %v9385_v25, %v10177_v12 }
 0xad2   :  { %8786 = vmatmul.mubr.msk.f32.vlgmr.msra.gmra.mrb[40].mxu1 %vm898_vm2, %v2917_v50 }
 0xad3   :  { %8794 = vmatpush3.msra.mxu1 %v3303_v41  ;;  %8795 = vmatprep.mubr.msk.f32.mxu1 %vm9536_vm0, %v9537_v4 }
 0xad4   :  { %8803 = vmatprep.subr.mxu1 %v9537_v4 }
 0xaf5   :  { %v2899_v28 = vpop.xlane.xlu0 %2898 }
 0xaf6   :  { %9386 = vrcp.f32 %v2899_v28 }
 0xaf9   :  { %v2905_v46 = vpop.xlane.xlu1 %2904  ;;  %v3792_v52 = vpop.permute.xlu0 %3791 }
 0xafa   :  { %9388 = vrcp.f32 %v2905_v46 }
 0xafd   :  { %v3870_v44 = vpop.permute.xlu0 %3869  ;;  %v3868_v34 = vpop.permute.xlu1 %3867 }
 0xb00   :  { %v9387_v1 = vpop.eup %9386 }
 0xb01   :  { %v2919_v36 = vmul.f32 %v9387_v1, %v10188_v54  ;;  %v3948_v31 = vpop.permute.xlu0 %3947  ;;  %v3946_v54 = vpop.permute.xlu1 %3945 }
 0xb03   :  { %8796 = vmatmul.mubr.msk.f32.vlgmr.msra.gmra.mrb[42].mxu1 %vm898_vm2, %v2919_v36 }
 0xb04   :  { %v9389_v12 = vpop.eup %9388  ;;  %8804 = vmatpush3.msra.mxu1 %v3455_v27  ;;  %8805 = vmatprep.mubr.msk.f32.mxu1 %vm9536_vm0, %v9537_v4 }
 0xb05   :  { %v2921_v58 = vmul.f32 %v9389_v12, %v10192_v47  ;;  %8836 = vmatprep.subr.mxu1 %v9537_v4  ;;  %v4026_v2 = vpop.permute.xlu0 %4025  ;;  %v4024_v47 = vpop.permute.xlu1 %4023 }
 0xb07   :  { %8806 = vmatmul.mubr.msk.f32.vlgmr.msra.gmra.mrb[44].mxu1 %vm898_vm2, %v2921_v58 }
 0xb08   :  { %8838 = vmatprep.mubr.msk.f32.mxu1 %vm9536_vm0, %v9537_v4 }
 0xb09   :  { %v4104_v8 = vpop.permute.xlu0 %4103  ;;  %v4102_v32 = vpop.permute.xlu1 %4101 }
 0xb0b   :  { %8837 = vmatpush3.xpose.msk.msra.mxu1 %vm898_vm2, %v3792_v52 }
 0xb0c   :  { %8841 = vmatprep.subr.mxu1 %v9537_v4 }
 0xb0d   :  { %v4182_v23 = vpop.permute.xlu0 %4181  ;;  %v4180_v14 = vpop.permute.xlu1 %4179 }
 0xb0e   :  { %8839 = vmatmul.mubr.msk.f32.vlgmr.msra.gmra.mrb[46].mxu1 %vm898_vm2, %v3790_v40 }
 0xb0f   :  { %8842 = vmatpush3.xpose.msk.msra.mxu1 %vm898_vm2, %v3870_v44  ;;  %8843 = vmatprep.mubr.msk.f32.mxu1 %vm9536_vm0, %v9537_v4 }
 0xb10   :  { %8846 = vmatprep.subr.mxu1 %v9537_v4 }
 0xb11   :  { %v4260_v16 = vpop.permute.xlu0 %4259  ;;  %v4258_v18 = vpop.permute.xlu1 %4257 }
 0xb12   :  { %8844 = vmatmul.mubr.msk.f32.vlgmr.msra.gmra.mrb[48].mxu1 %vm898_vm2, %v3868_v34 }
 0xb13   :  { %8847 = vmatpush3.xpose.msk.msra.mxu1 %vm898_vm2, %v3948_v31  ;;  %8848 = vmatprep.mubr.msk.f32.mxu1 %vm9536_vm0, %v9537_v4 }
 0xb14   :  { %8851 = vmatprep.subr.mxu1 %v9537_v4 }
 0xb15   :  { %v4338_v22 = vpop.permute.xlu0 %4337  ;;  %v4336_v41 = vpop.permute.xlu1 %4335 }
 0xb16   :  { %8849 = vmatmul.mubr.msk.f32.vlgmr.msra.gmra.mrb[50].mxu1 %vm898_vm2, %v3946_v54 }
 0xb17   :  { %8852 = vmatpush3.xpose.msk.msra.mxu1 %vm898_vm2, %v4026_v2  ;;  %8853 = vmatprep.mubr.msk.f32.mxu1 %vm9536_vm0, %v9537_v4 }
 0xb18   :  { %8856 = vmatprep.subr.mxu1 %v9537_v4 }
 0xb1a   :  { %8854 = vmatmul.mubr.msk.f32.vlgmr.msra.gmra.mrb[52].mxu1 %vm898_vm2, %v4024_v47 }
 0xb1b   :  { %8857 = vmatpush3.xpose.msk.msra.mxu1 %vm898_vm2, %v4104_v8  ;;  %8858 = vmatprep.mubr.msk.f32.mxu1 %vm9536_vm0, %v9537_v4 }
 0xb1c   :  { %8861 = vmatprep.subr.mxu1 %v9537_v4 }
 0xb1e   :  { %8859 = vmatmul.mubr.msk.f32.vlgmr.msra.gmra.mrb[54].mxu1 %vm898_vm2, %v4102_v32 }
 0xb1f   :  { %8862 = vmatpush3.xpose.msk.msra.mxu1 %vm898_vm2, %v4182_v23  ;;  %8863 = vmatprep.mubr.msk.f32.mxu1 %vm9536_vm0, %v9537_v4 }
 0xb20   :  { %8866 = vmatprep.subr.mxu1 %v9537_v4 }
 0xb22   :  { %8864 = vmatmul.mubr.msk.f32.vlgmr.msra.gmra.mrb[56].mxu1 %vm898_vm2, %v4180_v14 }
 0xb23   :  { %8867 = vmatpush3.xpose.msk.msra.mxu1 %vm898_vm2, %v4260_v16  ;;  %8868 = vmatprep.mubr.msk.f32.mxu1 %vm9536_vm0, %v9537_v4 }
 0xb24   :  { %8871 = vmatprep.subr.mxu1 %v9537_v4 }
 0xb26   :  { %8869 = vmatmul.mubr.msk.f32.vlgmr.msra.gmra.mrb[58].mxu1 %vm898_vm2, %v4258_v18 }
 0xb27   :  { %8872 = vmatpush3.xpose.msk.msra.mxu1 %vm898_vm2, %v4338_v22  ;;  %8873 = vmatprep.mubr.msk.f32.mxu1 %vm9536_vm0, %v9537_v4 }
 0xb28   :  { %8881 = vmatprep.subr.mxu1 %v9537_v4 }
 0xb2a   :  { %8874 = vmatmul.mubr.msk.f32.vlgmr.msra.gmra.mrb[60].mxu1 %vm898_vm2, %v4336_v41 }
 0xb2b   :  { %8883 = vmatprep.mubr.msk.f32.mxu1 %vm9536_vm0, %v9537_v4 }
 0xb46   :  { %v2842_v26 = vpop.xlane.xlu1 %2841  ;;  %v2836_v27 = vpop.xlane.xlu0 %2835 }
 0xb47   :  { %v2860_v33 = vsub.f32 %v10204_v63, %v2842_v26  ;;  %v2858_v35 = vsub.f32 %v10202_v5, %v2836_v27 }
 0xb49   :  { %v2870_v37 = vmul.f32 1.442695, %v2860_v33  ;;  %v2866_v38 = vmul.f32 1.442695, %v2858_v35 }
 0xb4a   :  { %v2848_v17 = vpop.xlane.xlu0 %2847 }
 0xb4b   :  { %9390 = vpow2.f32 %v2870_v37  ;;  %v2862_v20 = vsub.f32 %v10209_v9, %v2848_v17 }
 0xb4c   :  { %9392 = vpow2.f32 %v2866_v38 }
 0xb4d   :  { %v2874_v25 = vmul.f32 1.442695, %v2862_v20 }
 0xb4e   :  { %v2854_v50 = vpop.xlane.xlu0 %2853 }
 0xb4f   :  { %9394 = vpow2.f32 %v2874_v25  ;;  %v2864_v40 = vsub.f32 %v10214_v13, %v2854_v50 }
 0xb51   :  { %v2878_v28 = vmul.f32 1.442695, %v2864_v40 }
 0xb53   :  { %9396 = vpow2.f32 %v2878_v28 }
 0xb55   :  { %v10304_v46 = vpop.eup %9390 }
 0xb56   :  { %v9393_v52 = vpop.eup %9392  ;;  %v2888_v5 = vsel %vm898_vm2, %v10304_v46, 0.0 }
 0xb57   :  { %2889 = vadd.xlane.f32.xlu1 %v2888_v5  ;;  %v2882_v63 = vsel %vm898_vm2, %v9393_v52, 0.0 }
 0xb58   :  { %2883 = vadd.xlane.f32.xlu0 %v2882_v63 }
 0xb59   :  { %v10309_v1 = vpop.eup %9394 }
 0xb5a   :  { %v2894_v9 = vsel %vm898_vm2, %v10309_v1, 0.0 }
 0xb5c   :  { %2895 = vadd.xlane.f32.xlu0 %v2894_v9 }
 0xb5d   :  { %v10313_v36 = vpop.eup %9396 }
 0xb5e   :  { %v2900_v13 = vsel %vm898_vm2, %v10313_v36, 0.0 }
 0xb5f   :  { %2901 = vadd.xlane.f32.xlu1 %v2900_v13 }
 0xb70   :  { %3074 = vrot.lane.b32.xlu1 %v9922_v59, %s9543_s26 }
 0xb72   :  { %2922 = vrot.lane.b32.xlu0 %v9918_v57, %s9543_s26 }
 0xb74   :  { %3226 = vrot.lane.b32.xlu1 %v9931_v11, %s9543_s26 }
 0xb78   :  { %3378 = vrot.lane.b32.xlu1 %v9937_v7, %s9543_s26 }
 0xba1   :  { %v10325_v44 = vpop.f32.mrb[38].mxu1 }
 0xba2   :  { %v8777_v12 = vpop.f32.mrb[39].mxu1 }
 0xba5   :  { %v10327_v34 = vpop.f32.mrb[40].mxu1 }
 0xba6   :  { %v8787_v58 = vpop.f32.mrb[41].mxu1 }
 0xbd6   :  { %v10329_v31 = vpop.f32.mrb[42].mxu1 }
 0xbd7   :  { %v8797_v54 = vpop.f32.mrb[43].mxu1 }
 0xbda   :  { %v10331_v2 = vpop.f32.mrb[44].mxu1 }
 0xbdb   :  { %v8807_v47 = vpop.f32.mrb[45].mxu1 }
 0xbe1   :  { %v10333_v8 = vpop.f32.mrb[46].mxu1 }
 0xbe2   :  { %v8840_v32 = vpop.f32.mrb[47].mxu1  ;;  %v4413_v23 = vsel %vm898_vm2, %v10333_v8, -inf }
 0xbe3   :  { %4414 = vmax.xlane.f32.xlu0 %v4413_v23 }
 0xbe4   :  { %v2890_v14 = vpop.xlane.xlu1 %2889 }
 0xbe5   :  { %v10337_v16 = vpop.f32.mrb[48].mxu1  ;;  %v2884_v18 = vpop.xlane.xlu0 %2883 }
 0xbe6   :  { %9398 = vrcp.f32 %v2884_v18  ;;  %v8845_v22 = vpop.f32.mrb[49].mxu1  ;;  %v4416_v41 = vsel %vm898_vm2, %v10337_v16, -inf }
 0xbe7   :  { %4417 = vmax.xlane.f32.xlu1 %v4416_v41  ;;  %9400 = vrcp.f32 %v2890_v14 }
 0xbe9   :  { %v10341_v26 = vpop.f32.mrb[50].mxu1  ;;  %v2896_v27 = vpop.xlane.xlu0 %2895 }
 0xbea   :  { %v8850_v33 = vpop.f32.mrb[51].mxu1  ;;  %v4419_v35 = vsel %vm898_vm2, %v10341_v26, -inf  ;;  %9402 = vrcp.f32 %v2896_v27 }
 0xbeb   :  { %4420 = vmax.xlane.f32.xlu0 %v4419_v35 }
 0xbec   :  { %v2902_v37 = vpop.xlane.xlu1 %2901 }
 0xbed   :  { %v10345_v38 = vpop.f32.mrb[52].mxu1  ;;  %v2923_v17 = vpop.permute.xlu0 %2922  ;;  %9404 = vrcp.f32 %v2902_v37 }
 0xbee   :  { %8769 = vmatpush3.msra.mxu0 %v2923_v17  ;;  %v8855_v20 = vpop.f32.mrb[53].mxu1  ;;  %v4422_v25 = vsel %vm898_vm2, %v10345_v38, -inf }
 0xbef   :  { %4423 = vmax.xlane.f32.xlu0 %v4422_v25  ;;  %8778 = vmatprep.subr.mxu0 %v9537_v4 }
 0xbf0   :  { %v9399_v50 = vpop.eup %9398  ;;  %v3075_v40 = vpop.permute.xlu1 %3074 }
 0xbf1   :  { %v10350_v28 = vpop.f32.mrb[54].mxu1  ;;  %v2914_v5 = vmul.f32 %v9399_v50, %v9393_v52  ;;  %v9401_v63 = vpop.eup %9400 }
 0xbf2   :  { %v8860_v9 = vpop.f32.mrb[55].mxu1  ;;  %v4425_v13 = vsel %vm898_vm2, %v10350_v28, -inf  ;;  %v2916_v54 = vmul.f32 %v9401_v63, %v10304_v46 }
 0xbf3   :  { %4426 = vmax.xlane.f32.xlu0 %v4425_v13  ;;  %8771 = vmatmul.mubr.msk.f32.vlgmr.msra.gmra.mrb[36].mxu0 %vm898_vm2, %v2914_v5 }
 0xbf4   :  { %8779 = vmatpush3.msra.mxu0 %v3075_v40  ;;  %v3227_v12 = vpop.permute.xlu1 %3226  ;;  %8780 = vmatprep.mubr.msk.f32.mxu0 %vm9536_vm0, %v9537_v4  ;;  %v9403_v52 = vpop.eup %9402 }
 0xbf5   :  { %v10357_v58 = vpop.f32.mrb[56].mxu1  ;;  %8788 = vmatprep.subr.mxu0 %v9537_v4  ;;  %v2918_v18 = vmul.f32 %v9403_v52, %v10309_v1  ;;  %v8113_v1 = vld [vmem:[%s11268_s3 + $0xc8] sm:$0xff] }
 0xbf6   :  { %v8865_v47 = vpop.f32.mrb[57].mxu1  ;;  %v4428_v32 = vsel %vm898_vm2, %v10357_v58, -inf }
 0xbf7   :  { %4429 = vmax.xlane.f32.xlu1 %v4428_v32  ;;  %8781 = vmatmul.mubr.msk.f32.vlgmr.msra.gmra.mrb[38].mxu0 %vm898_vm2, %v2916_v54  ;;  %v9405_v46 = vpop.eup %9404 }
 0xbf8   :  { %8789 = vmatpush3.msra.mxu0 %v3227_v12  ;;  %8790 = vmatprep.mubr.msk.f32.mxu0 %vm9536_vm0, %v9537_v4  ;;  %v3379_v14 = vpop.permute.xlu1 %3378  ;;  %v2920_v33 = vmul.f32 %v9405_v46, %v10313_v36  ;;  %v10396_v36 = vld [vmem:[%s11268_s3 + $0xc0] sm:$0xff] }
 0xbf9   :  { %v10366_v23 = vpop.f32.mrb[58].mxu1  ;;  %8798 = vmatprep.subr.mxu0 %v9537_v4 }
 0xbfa   :  { %v8870_v22 = vpop.f32.mrb[59].mxu1  ;;  %v4431_v41 = vsel %vm898_vm2, %v10366_v23, -inf }
 0xbfb   :  { %4432 = vmax.xlane.f32.xlu0 %v4431_v41  ;;  %8791 = vmatmul.mubr.msk.f32.vlgmr.msra.gmra.mrb[40].mxu0 %vm898_vm2, %v2918_v18 }
 0xbfc   :  { %8799 = vmatpush3.msra.mxu0 %v3379_v14  ;;  %8800 = vmatprep.mubr.msk.f32.mxu0 %vm9536_vm0, %v9537_v4 }
 0xbfd   :  { %v4409_v27 = vpop.f32.mrb[60].mxu1  ;;  %8808 = vmatprep.subr.mxu0 %v8113_v1 }
 0xbfe   :  { %v8875_v35 = vpop.f32.mrb[61].mxu1  ;;  %v4434_v37 = vsel %vm898_vm2, %v4409_v27, -inf }
 0xbff   :  { %4435 = vmax.xlane.f32.xlu1 %v4434_v37  ;;  %8801 = vmatmul.mubr.msk.f32.vlgmr.msra.gmra.mrb[42].mxu0 %vm898_vm2, %v2920_v33 }
 0xc00   :  { %8809 = vmatpush3.msra.mxu0 %v8113_v1 }
 0xc01   :  { %8822 = vmatprep.subr.mxu0 %v10396_v36 }
 0xc10   :  { %4577 = vrot.lane.b32.xlu1 %v9916_v56, %s9546_s29 }
 0xc11   :  { %4501 = vrot.lane.b32.xlu0 %v9918_v57, %s9546_s29 }
 0xc14   :  { %4653 = vrot.lane.b32.xlu1 %v9922_v59, %s9546_s29 }
 0xc15   :  { %4805 = vrot.lane.b32.xlu0 %v9931_v11, %s9546_s29 }
 0xc18   :  { %4729 = vrot.lane.b32.xlu1 %v9927_v51, %s9546_s29 }
 0xc1c   :  { %4881 = vrot.lane.b32.xlu1 %v9925_v62, %s9546_s29 }
 0xc70   :  { %v4415_v17 = vpop.xlane.xlu0 %4414 }
 0xc71   :  { %v4437_v20 = vsub.f32 %v10333_v8, %v4415_v17 }
 0xc73   :  { %v4445_v25 = vmul.f32 1.442695, %v4437_v20 }
 0xc74   :  { %v4418_v50 = vpop.xlane.xlu1 %4417 }
 0xc75   :  { %9406 = vpow2.f32 %v4445_v25  ;;  %v4438_v40 = vsub.f32 %v10337_v16, %v4418_v50 }
 0xc77   :  { %v4447_v5 = vmul.f32 1.442695, %v4438_v40 }
 0xc78   :  { %v4421_v63 = vpop.xlane.xlu0 %4420 }
 0xc79   :  { %9408 = vpow2.f32 %v4447_v5  ;;  %v4439_v9 = vsub.f32 %v10341_v26, %v4421_v63 }
 0xc7b   :  { %v4449_v13 = vmul.f32 1.442695, %v4439_v9 }
 0xc7c   :  { %v4424_v12 = vpop.xlane.xlu0 %4423 }
 0xc7d   :  { %9410 = vpow2.f32 %v4449_v13  ;;  %v4440_v54 = vsub.f32 %v10345_v38, %v4424_v12 }
 0xc7f   :  { %v10403_v52 = vpop.eup %9406  ;;  %v4451_v47 = vmul.f32 1.442695, %v4440_v54 }
 0xc80   :  { %v4427_v32 = vpop.xlane.xlu0 %4426  ;;  %v4461_v8 = vsel %vm898_vm2, %v10403_v52, 0.0 }
 0xc81   :  { %9412 = vpow2.f32 %v4451_v47  ;;  %v4441_v16 = vsub.f32 %v10350_v28, %v4427_v32  ;;  %4462 = vadd.xlane.f32.xlu0 %v4461_v8 }
 0xc83   :  { %v10408_v14 = vpop.eup %9408  ;;  %v4453_v18 = vmul.f32 1.442695, %v4441_v16 }
 0xc84   :  { %v4430_v26 = vpop.xlane.xlu1 %4429  ;;  %v4464_v46 = vsel %vm898_vm2, %v10408_v14, 0.0 }
 0xc85   :  { %9414 = vpow2.f32 %v4453_v18  ;;  %v4442_v38 = vsub.f32 %v10357_v58, %v4430_v26  ;;  %4465 = vadd.xlane.f32.xlu1 %v4464_v46 }
 0xc87   :  { %v10413_v22 = vpop.eup %9410  ;;  %v4455_v41 = vmul.f32 1.442695, %v4442_v38 }
 0xc88   :  { %v4433_v33 = vpop.xlane.xlu0 %4432  ;;  %v4467_v35 = vsel %vm898_vm2, %v10413_v22, 0.0 }
 0xc89   :  { %9416 = vpow2.f32 %v4455_v41  ;;  %v4443_v28 = vsub.f32 %v10366_v23, %v4433_v33  ;;  %4468 = vadd.xlane.f32.xlu0 %v4467_v35 }
 0xc8b   :  { %v10418_v37 = vpop.eup %9412  ;;  %v4457_v1 = vmul.f32 1.442695, %v4443_v28 }
 0xc8c   :  { %v4436_v17 = vpop.xlane.xlu1 %4435  ;;  %v4470_v20 = vsel %vm898_vm2, %v10418_v37, 0.0 }
 0xc8d   :  { %9418 = vpow2.f32 %v4457_v1  ;;  %v4444_v58 = vsub.f32 %v4409_v27, %v4436_v17  ;;  %4471 = vadd.xlane.f32.xlu1 %v4470_v20 }
 0xc8f   :  { %v10422_v25 = vpop.eup %9414  ;;  %v4459_v50 = vmul.f32 1.442695, %v4444_v58 }
 0xc90   :  { %v4578_v40 = vpop.permute.xlu1 %4577  ;;  %v4473_v5 = vsel %vm898_vm2, %v10422_v25, 0.0 }
 0xc91   :  { %9420 = vpow2.f32 %v4459_v50  ;;  %8882 = vmatpush3.msra.mxu1 %v4578_v40  ;;  %4474 = vadd.xlane.f32.xlu0 %v4473_v5 }
 0xc92   :  { %8891 = vmatprep.subr.mxu1 %v9537_v4 }
 0xc93   :  { %v10427_v23 = vpop.eup %9416 }
 0xc94   :  { %v4476_v63 = vsel %vm898_vm2, %v10427_v23, 0.0 }
 0xc95   :  { %4477 = vadd.xlane.f32.xlu1 %v4476_v63 }
 0xc97   :  { %v10431_v27 = vpop.eup %9418 }
 0xc98   :  { %v4479_v9 = vsel %vm898_vm2, %v10431_v27, 0.0 }
 0xc99   :  { %4480 = vadd.xlane.f32.xlu0 %v4479_v9 }
 0xc9b   :  { %v10435_v13 = vpop.eup %9420 }
 0xc9c   :  { %v4482_v12 = vsel %vm898_vm2, %v10435_v13, 0.0 }
 0xc9d   :  { %4483 = vadd.xlane.f32.xlu1 %v4482_v12 }
 0xcae   :  { %5033 = vrot.lane.b32.xlu1 %v9933_v3, %s9546_s29 }
 0xcaf   :  { %4957 = vrot.lane.b32.xlu0 %v9937_v7, %s9546_s29 }
 0xcb2   :  { %5247 = vrot.lane.b32.xlu1 %v9918_v57, %s9547_s10 }
 0xcb3   :  { %5249 = vrot.lane.b32.xlu0 %v9918_v57, %s9548_s1 }
 0xcb6   :  { %5325 = vrot.lane.b32.xlu1 %v9916_v56, %s9547_s10 }
 0xcb7   :  { %5327 = vrot.lane.b32.xlu0 %v9916_v56, %s9548_s1 }
 0xcba   :  { %5403 = vrot.lane.b32.xlu1 %v9922_v59, %s9547_s10 }
 0xcbb   :  { %5405 = vrot.lane.b32.xlu0 %v9922_v59, %s9548_s1 }
 0xcbe   :  { %5481 = vrot.lane.b32.xlu1 %v9927_v51, %s9547_s10 }
 0xcbf   :  { %5483 = vrot.lane.b32.xlu0 %v9927_v51, %s9548_s1 }
 0xcc2   :  { %5639 = vrot.lane.b32.xlu1 %v9925_v62, %s9548_s1 }
 0xcc3   :  { %5561 = vrot.lane.b32.xlu0 %v9931_v11, %s9548_s1 }
 0xcc6   :  { %v2994_v54 = vpop.f32.mrb[36].mxu0  ;;  %5637 = vrot.lane.b32.xlu1 %v9925_v62, %s9547_s10 }
 0xcc7   :  { %v8772_v47 = vpop.f32.mrb[37].mxu0  ;;  %8810 = vmatprep.mubr.msk.f32.mxu0 %vm898_vm2, %v2994_v54  ;;  %5559 = vrot.lane.b32.xlu0 %v9931_v11, %s9547_s10 }
 0xcc8   :  { %8811 = vmatmul.mubr.msk.f32.vlgmr.msra.gmra.mrb[44].mxu0 %vm898_vm2, %v10325_v44 }
 0xcc9   :  { %8823 = vmatpush3.msra.mxu0 %v10396_v36 }
 0xcca   :  { %v3146_v32 = vpop.f32.mrb[38].mxu0  ;;  %5795 = vrot.lane.b32.xlu1 %v9933_v3, %s9548_s1  ;;  %8876 = vmatprep.subr.mxu0 %v9537_v4 }
 0xccb   :  { %v8782_v8 = vpop.f32.mrb[39].mxu0  ;;  %8813 = vmatprep.mubr.msk.f32.mxu0 %vm898_vm2, %v3146_v32  ;;  %5717 = vrot.lane.b32.xlu0 %v9937_v7, %s9548_s1 }
 0xccc   :  { %8814 = vmatmul.mubr.msk.f32.gmra.mrb[46].mxu0 %vm898_vm2, %v10327_v34  ;;  %v4502_v34 = vpop.permute.xlu0 %4501 }
 0xcce   :  { %v3298_v16 = vpop.f32.mrb[40].mxu0  ;;  %5793 = vrot.lane.b32.xlu1 %v9933_v3, %s9547_s10 }
 0xccf   :  { %v8792_v18 = vpop.f32.mrb[41].mxu0  ;;  %8816 = vmatprep.mubr.msk.f32.mxu0 %vm898_vm2, %v3298_v16  ;;  %5715 = vrot.lane.b32.xlu0 %v9937_v7, %s9547_s10 }
 0xcd0   :  { %8817 = vmatmul.mubr.msk.f32.gmra.mrb[48].mxu0 %vm898_vm2, %v10329_v31 }
 0xcd2   :  { %v3450_v44 = vpop.f32.mrb[42].mxu0 }
 0xcd3   :  { %v8802_v36 = vpop.f32.mrb[43].mxu0  ;;  %8819 = vmatprep.mubr.msk.f32.mxu0 %vm898_vm2, %v3450_v44 }
 0xcd4   :  { %8820 = vmatmul.mubr.msk.f32.gmra.mrb[50].mxu0 %vm898_vm2, %v10331_v2 }
 0xcd5   :  { %8824 = vmatprep.mubr.msk.f32.mxu0 %vm898_vm2, %v10179_v42 }
 0xcd8   :  { %8825 = vmatmul.mubr.msk.f32.vlgmr.msra.gmra.mrb[44].mxu0 %vm898_vm2, %v10110_v29  ;;  %v4654_v29 = vpop.permute.xlu1 %4653 }
 0xcd9   :  { %8877 = vmatpush3.msra.mxu0 %v4502_v34  ;;  %8827 = vmatprep.mubr.msk.f32.mxu0 %vm898_vm2, %v10194_v43  ;;  %v4806_v43 = vpop.permute.xlu0 %4805 }
 0xcda   :  { %8886 = vmatprep.subr.mxu0 %v9537_v4 }
 0xcdc   :  { %8828 = vmatmul.mubr.msk.f32.gmra.mrb[46].mxu0 %vm898_vm2, %v10112_v61  ;;  %v4730_v42 = vpop.permute.xlu1 %4729 }
 0xcdd   :  { %8830 = vmatprep.mubr.msk.f32.mxu0 %vm898_vm2, %v10198_v19 }
 0xce0   :  { %8831 = vmatmul.mubr.msk.f32.gmra.mrb[48].mxu0 %vm898_vm2, %v10114_v30  ;;  %v4882_v31 = vpop.permute.xlu1 %4881 }
 0xce1   :  { %8833 = vmatprep.mubr.msk.f32.mxu0 %vm898_vm2, %v10200_v60 }
 0xce4   :  { %8834 = vmatmul.mubr.msk.f32.gmra.mrb[50].mxu0 %vm898_vm2, %v10120_v45 }
 0xce5   :  { %8878 = vmatprep.mubr.msk.f32.mxu0 %vm9536_vm0, %v9537_v4 }
 0xd0e   :  { %v4463_v61 = vpop.xlane.xlu0 %4462 }
 0xd0f   :  { %9422 = vrcp.f32 %v4463_v61 }
 0xd12   :  { %v4466_v2 = vpop.xlane.xlu1 %4465 }
 0xd13   :  { %9424 = vrcp.f32 %v4466_v2 }
 0xd16   :  { %v4469_v19 = vpop.xlane.xlu0 %4468 }
 0xd17   :  { %9426 = vrcp.f32 %v4469_v19 }
 0xd19   :  { %v9423_v30 = vpop.eup %9422 }
 0xd1a   :  { %v4493_v26 = vmul.f32 %v9423_v30, %v10403_v52  ;;  %v4472_v60 = vpop.xlane.xlu1 %4471 }
 0xd1b   :  { %9428 = vrcp.f32 %v4472_v60 }
 0xd1c   :  { %8879 = vmatmul.mubr.msk.f32.vlgmr.msra.gmra.mrb[52].mxu0 %vm898_vm2, %v4493_v26 }
 0xd1d   :  { %v9425_v45 = vpop.eup %9424  ;;  %8887 = vmatpush3.msra.mxu0 %v4654_v29  ;;  %8888 = vmatprep.mubr.msk.f32.mxu0 %vm9536_vm0, %v9537_v4 }
 0xd1e   :  { %v4475_v46 = vpop.xlane.xlu0 %4474  ;;  %v4494_v38 = vmul.f32 %v9425_v45, %v10408_v14  ;;  %8896 = vmatprep.subr.mxu0 %v9537_v4 }
 0xd1f   :  { %9430 = vrcp.f32 %v4475_v46 }
 0xd20   :  { %8884 = vmatmul.mubr.msk.f32.vlgmr.msra.gmra.mrb[62].mxu1 %vm898_vm2, %v4494_v38 }
 0xd21   :  { %v9427_v41 = vpop.eup %9426  ;;  %8892 = vmatpush3.msra.mxu1 %v4730_v42  ;;  %8893 = vmatprep.mubr.msk.f32.mxu1 %vm9536_vm0, %v9537_v4 }
 0xd22   :  { %v4478_v52 = vpop.xlane.xlu1 %4477  ;;  %v4495_v33 = vmul.f32 %v9427_v41, %v10413_v22  ;;  %8901 = vmatprep.subr.mxu1 %v9537_v4 }
 0xd23   :  { %9432 = vrcp.f32 %v4478_v52 }
 0xd24   :  { %8889 = vmatmul.mubr.msk.f32.vlgmr.msra.gmra.mrb[54].mxu0 %vm898_vm2, %v4495_v33 }
 0xd25   :  { %v9429_v35 = vpop.eup %9428  ;;  %8897 = vmatpush3.msra.mxu0 %v4806_v43  ;;  %8898 = vmatprep.mubr.msk.f32.mxu0 %vm9536_vm0, %v9537_v4 }
 0xd26   :  { %v4481_v14 = vpop.xlane.xlu0 %4480  ;;  %v4496_v28 = vmul.f32 %v9429_v35, %v10418_v37  ;;  %8906 = vmatprep.subr.mxu0 %v9537_v4  ;;  %v8154_v37 = vld [vmem:[%s11268_s3 + $0xd0] sm:$0xff] }
 0xd27   :  { %9434 = vrcp.f32 %v4481_v14 }
 0xd28   :  { %8894 = vmatmul.mubr.msk.f32.vlgmr.msra.gmra.mrb[64].mxu1 %vm898_vm2, %v4496_v28 }
 0xd29   :  { %v9431_v1 = vpop.eup %9430  ;;  %8902 = vmatpush3.msra.mxu1 %v4882_v31  ;;  %8903 = vmatprep.mubr.msk.f32.mxu1 %vm9536_vm0, %v9537_v4 }
 0xd2a   :  { %v4497_v22 = vmul.f32 %v9431_v1, %v10422_v25  ;;  %v4484_v17 = vpop.xlane.xlu1 %4483  ;;  %v4958_v20 = vpop.permute.xlu0 %4957  ;;  %8911 = vmatprep.subr.mxu1 %v9537_v4 }
 0xd2b   :  { %9436 = vrcp.f32 %v4484_v17 }
 0xd2c   :  { %8899 = vmatmul.mubr.msk.f32.vlgmr.msra.gmra.mrb[56].mxu0 %vm898_vm2, %v4497_v22 }
 0xd2d   :  { %v9433_v58 = vpop.eup %9432  ;;  %8907 = vmatpush3.msra.mxu0 %v4958_v20  ;;  %8908 = vmatprep.mubr.msk.f32.mxu0 %vm9536_vm0, %v9537_v4 }
 0xd2e   :  { %v4498_v50 = vmul.f32 %v9433_v58, %v10427_v23  ;;  %v5034_v40 = vpop.permute.xlu1 %5033  ;;  %8916 = vmatprep.subr.mxu0 %v8154_v37  ;;  %v5250_v63 = vpop.permute.xlu0 %5249 }
 0xd30   :  { %8904 = vmatmul.mubr.msk.f32.vlgmr.msra.gmra.mrb[66].mxu1 %vm898_vm2, %v4498_v50 }
 0xd31   :  { %v9435_v25 = vpop.eup %9434  ;;  %8912 = vmatpush3.msra.mxu1 %v5034_v40  ;;  %8913 = vmatprep.mubr.msk.f32.mxu1 %vm9536_vm0, %v9537_v4 }
 0xd32   :  { %v4499_v5 = vmul.f32 %v9435_v25, %v10431_v27  ;;  %v5248_v9 = vpop.permute.xlu1 %5247  ;;  %8930 = vmatprep.subr.mxu1 %v9537_v4  ;;  %v5328_v47 = vpop.permute.xlu0 %5327 }
 0xd34   :  { %8909 = vmatmul.mubr.msk.f32.vlgmr.msra.gmra.mrb[58].mxu0 %vm898_vm2, %v4499_v5 }
 0xd35   :  { %v9437_v12 = vpop.eup %9436  ;;  %8917 = vmatpush3.msra.mxu0 %v8154_v37 }
 0xd36   :  { %v4500_v23 = vmul.f32 %v9437_v12, %v10435_v13  ;;  %v5326_v54 = vpop.permute.xlu1 %5325  ;;  %8950 = vmatprep.subr.mxu0 %v9537_v4  ;;  %v5406_v13 = vpop.permute.xlu0 %5405 }
 0xd38   :  { %8914 = vmatmul.mubr.msk.f32.vlgmr.msra.gmra.mrb[68].mxu1 %vm898_vm2, %v4500_v23 }
 0xd39   :  { %8931 = vmatpush3.xpose.msk.msra.mxu1 %vm898_vm2, %v5250_v63  ;;  %8932 = vmatprep.mubr.msk.f32.mxu1 %vm9536_vm0, %v9537_v4 }
 0xd3a   :  { %v5404_v27 = vpop.permute.xlu1 %5403  ;;  %8935 = vmatprep.subr.mxu1 %v9537_v4  ;;  %v5484_v16 = vpop.permute.xlu0 %5483 }
 0xd3c   :  { %8933 = vmatmul.mubr.msk.f32.vlgmr.msra.gmra.mrb[70].mxu1 %vm898_vm2, %v5248_v9 }
 0xd3d   :  { %8936 = vmatpush3.xpose.msk.msra.mxu1 %vm898_vm2, %v5328_v47  ;;  %8937 = vmatprep.mubr.msk.f32.mxu1 %vm9536_vm0, %v9537_v4 }
 0xd3e   :  { %v5482_v32 = vpop.permute.xlu1 %5481  ;;  %8940 = vmatprep.subr.mxu1 %v9537_v4  ;;  %v5562_v43 = vpop.permute.xlu0 %5561 }
 0xd40   :  { %8938 = vmatmul.mubr.msk.f32.vlgmr.msra.gmra.mrb[72].mxu1 %vm898_vm2, %v5326_v54 }
 0xd41   :  { %8941 = vmatpush3.xpose.msk.msra.mxu1 %vm898_vm2, %v5406_v13  ;;  %8942 = vmatprep.mubr.msk.f32.mxu1 %vm9536_vm0, %v9537_v4 }
 0xd42   :  { %v5640_v8 = vpop.permute.xlu1 %5639  ;;  %8945 = vmatprep.subr.mxu1 %v9537_v4  ;;  %v5560_v38 = vpop.permute.xlu0 %5559 }
 0xd44   :  { %8943 = vmatmul.mubr.msk.f32.vlgmr.msra.gmra.mrb[74].mxu1 %vm898_vm2, %v5404_v27 }
 0xd45   :  { %8946 = vmatpush3.xpose.msk.msra.mxu1 %vm898_vm2, %v5484_v16  ;;  %8947 = vmatprep.mubr.msk.f32.mxu1 %vm9536_vm0, %v9537_v4 }
 0xd46   :  { %v5638_v18 = vpop.permute.xlu1 %5637  ;;  %8955 = vmatprep.subr.mxu1 %v9537_v4  ;;  %v5718_v14 = vpop.permute.xlu0 %5717 }
 0xd48   :  { %8948 = vmatmul.mubr.msk.f32.vlgmr.msra.gmra.mrb[76].mxu1 %vm898_vm2, %v5482_v32 }
 0xd49   :  { %8956 = vmatpush3.xpose.msk.msra.mxu1 %vm898_vm2, %v5640_v8  ;;  %8957 = vmatprep.mubr.msk.f32.mxu1 %vm9536_vm0, %v9537_v4 }
 0xd4a   :  { %v5796_v44 = vpop.permute.xlu1 %5795  ;;  %8965 = vmatprep.subr.mxu1 %v9537_v4  ;;  %v5716_v17 = vpop.permute.xlu0 %5715 }
 0xd4c   :  { %8958 = vmatmul.mubr.msk.f32.vlgmr.msra.gmra.mrb[78].mxu1 %vm898_vm2, %v5638_v18 }
 0xd4d   :  { %8966 = vmatpush3.xpose.msk.msra.mxu1 %vm898_vm2, %v5796_v44  ;;  %8967 = vmatprep.mubr.msk.f32.mxu1 %vm9536_vm0, %v9537_v4 }
 0xd4e   :  { %v5794_v36 = vpop.permute.xlu1 %5793  ;;  %8975 = vmatprep.subr.mxu1 %v9537_v4 }
 0xd50   :  { %8968 = vmatmul.mubr.msk.f32.vlgmr.msra.gmra.mrb[80].mxu1 %vm898_vm2, %v5794_v36 }
 0xd51   :  { %8977 = vmatprep.mubr.msk.f32.mxu1 %vm9536_vm0, %v9537_v4 }
 0xdef   :  { %v4573_v34 = vpop.f32.mrb[52].mxu0 }
 0xdf0   :  { %v8880_v29 = vpop.f32.mrb[53].mxu0  ;;  %8918 = vmatprep.mubr.msk.f32.mxu0 %vm898_vm2, %v4573_v34 }
 0xdf3   :  { %v4649_v42 = vpop.f32.mrb[62].mxu1 }
 0xdf4   :  { %v8885_v31 = vpop.f32.mrb[63].mxu1  ;;  %8919 = vmatmul.mubr.msk.f32.vlgmr.msra.gmra.mrb[44].mxu0 %vm898_vm2, %v4649_v42 }
 0xdf5   :  { %8951 = vmatpush3.xpose.msk.msra.mxu0 %vm898_vm2, %v5562_v43 }
 0xdf6   :  { %8960 = vmatprep.subr.mxu0 %v9537_v4 }
 0xdf7   :  { %v4725_v61 = vpop.f32.mrb[54].mxu0 }
 0xdf8   :  { %v8890_v2 = vpop.f32.mrb[55].mxu0  ;;  %8921 = vmatprep.mubr.msk.f32.mxu0 %vm898_vm2, %v4725_v61 }
 0xdfb   :  { %v4801_v19 = vpop.f32.mrb[64].mxu1 }
 0xdfc   :  { %v8895_v30 = vpop.f32.mrb[65].mxu1  ;;  %8922 = vmatmul.mubr.msk.f32.gmra.mrb[46].mxu0 %vm898_vm2, %v4801_v19 }
 0xdff   :  { %v4877_v26 = vpop.f32.mrb[56].mxu0 }
 0xe00   :  { %v8900_v60 = vpop.f32.mrb[57].mxu0  ;;  %8924 = vmatprep.mubr.msk.f32.mxu0 %vm898_vm2, %v4877_v26 }
 0xe03   :  { %v4953_v45 = vpop.f32.mrb[66].mxu1 }
 0xe04   :  { %v8905_v46 = vpop.f32.mrb[67].mxu1  ;;  %8925 = vmatmul.mubr.msk.f32.gmra.mrb[48].mxu0 %vm898_vm2, %v4953_v45 }
 0xe07   :  { %v5029_v41 = vpop.f32.mrb[58].mxu0 }
 0xe08   :  { %v8910_v52 = vpop.f32.mrb[59].mxu0  ;;  %8927 = vmatprep.mubr.msk.f32.mxu0 %vm898_vm2, %v5029_v41 }
 0xe0b   :  { %v5105_v33 = vpop.f32.mrb[68].mxu1 }
 0xe0c   :  { %v8915_v35 = vpop.f32.mrb[69].mxu1  ;;  %8928 = vmatmul.mubr.msk.f32.gmra.mrb[50].mxu0 %vm898_vm2, %v5105_v33 }
 0xe0d   :  { %8952 = vmatprep.mubr.msk.f32.mxu0 %vm9536_vm0, %v9537_v4 }
 0xe0f   :  { %v10573_v28 = vpop.f32.mrb[70].mxu1 }
 0xe10   :  { %v8934_v1 = vpop.f32.mrb[71].mxu1  ;;  %8953 = vmatmul.mubr.msk.f32.vlgmr.msra.gmra.mrb[60].mxu0 %vm898_vm2, %v5560_v38  ;;  %v5871_v22 = vsel %vm898_vm2, %v10573_v28, -inf }
 0xe11   :  { %8961 = vmatpush3.xpose.msk.msra.mxu0 %vm898_vm2, %v5718_v14  ;;  %5872 = vmax.xlane.f32.xlu0 %v5871_v22 }
 0xe12   :  { %8962 = vmatprep.mubr.msk.f32.mxu0 %vm9536_vm0, %v9537_v4  ;;  %8970 = vmatprep.subr.mxu0 %v9537_v4 }
 0xe13   :  { %v5399_v20 = vpop.f32.mrb[72].mxu1 }
 0xe14   :  { %v8939_v37 = vpop.f32.mrb[73].mxu1  ;;  %8963 = vmatmul.mubr.msk.f32.vlgmr.msra.gmra.mrb[62].mxu0 %vm898_vm2, %v5716_v17  ;;  %v5874_v58 = vsel %vm898_vm2, %v5399_v20, -inf }
 0xe15   :  { %5875 = vmax.xlane.f32.xlu1 %v5874_v58  ;;  %8972 = vmatprep.mubr.msk.f32.mxu0 %vm9536_vm0, %v9537_v4 }
 0xe17   :  { %v5477_v50 = vpop.f32.mrb[74].mxu1 }
 0xe18   :  { %v8944_v40 = vpop.f32.mrb[75].mxu1  ;;  %v5877_v25 = vsel %vm898_vm2, %v5477_v50, -inf }
 0xe19   :  { %5878 = vmax.xlane.f32.xlu0 %v5877_v25 }
 0xe1b   :  { %v5555_v5 = vpop.f32.mrb[76].mxu1 }
 0xe1c   :  { %v8949_v63 = vpop.f32.mrb[77].mxu1  ;;  %v5880_v9 = vsel %vm898_vm2, %v5555_v5, -inf }
 0xe1d   :  { %5881 = vmax.xlane.f32.xlu0 %v5880_v9 }
 0xe1f   :  { %v5711_v12 = vpop.f32.mrb[78].mxu1 }
 0xe20   :  { %v8959_v23 = vpop.f32.mrb[79].mxu1  ;;  %v5886_v54 = vsel %vm898_vm2, %v5711_v12, -inf }
 0xe21   :  { %5887 = vmax.xlane.f32.xlu1 %v5886_v54 }
 0xe23   :  { %v5867_v47 = vpop.f32.mrb[80].mxu1 }
 0xe24   :  { %v8969_v27 = vpop.f32.mrb[81].mxu1  ;;  %v5892_v13 = vsel %vm898_vm2, %v5867_v47, -inf }
 0xe25   :  { %5893 = vmax.xlane.f32.xlu1 %v5892_v13 }
 0xe9e   :  { %v5873_v32 = vpop.xlane.xlu0 %5872 }
 0xe9f   :  { %v5895_v33 = vsub.f32 %v10573_v28, %v5873_v32 }
 0xea1   :  { %v5903_v35 = vmul.f32 1.442695, %v5895_v33 }
 0xea2   :  { %v5876_v8 = vpop.xlane.xlu1 %5875 }
 0xea3   :  { %v5896_v16 = vsub.f32 %v5399_v20, %v5876_v8 }
 0xea5   :  { %v5905_v18 = vmul.f32 1.442695, %v5896_v16 }
 0xea6   :  { %v5879_v44 = vpop.xlane.xlu0 %5878 }
 0xea7   :  { %9438 = vpow2.f32 %v5905_v18  ;;  %v5897_v14 = vsub.f32 %v5477_v50, %v5879_v44 }
 0xea9   :  { %v5907_v1 = vmul.f32 1.442695, %v5897_v14  ;;  %v8187_v14 = vld [vmem:[%s11268_s3 + $0xd8] sm:$0xff] }
 0xeaa   :  { %v5882_v36 = vpop.xlane.xlu0 %5881 }
 0xeab   :  { %v5898_v34 = vsub.f32 %v5555_v5, %v5882_v36 }
 0xead   :  { %v5909_v29 = vmul.f32 1.442695, %v5898_v34 }
 0xeae   :  { %v5888_v42 = vpop.xlane.xlu1 %5887 }
 0xeaf   :  { %9440 = vpow2.f32 %v5909_v29  ;;  %v5900_v43 = vsub.f32 %v5711_v12, %v5888_v42 }
 0xeb1   :  { %v9439_v31 = vpop.eup %9438  ;;  %v5913_v61 = vmul.f32 1.442695, %v5900_v43 }
 0xeb2   :  { %v5894_v2 = vpop.xlane.xlu1 %5893  ;;  %v5922_v19 = vsel %vm898_vm2, %v9439_v31, 0.0 }
 0xeb3   :  { %9442 = vpow2.f32 %v5913_v61  ;;  %v5902_v30 = vsub.f32 %v5867_v47, %v5894_v2  ;;  %5923 = vadd.xlane.f32.xlu1 %v5922_v19 }
 0xeb5   :  { %v5917_v26 = vmul.f32 1.442695, %v5902_v30 }
 0xeb7   :  { %9444 = vpow2.f32 %v5917_v26 }
 0xeb8   :  { %9446 = vpow2.f32 %v5903_v35 }
 0xeb9   :  { %v9441_v60 = vpop.eup %9440  ;;  %9448 = vpow2.f32 %v5907_v1 }
 0xeba   :  { %v5928_v45 = vsel %vm898_vm2, %v9441_v60, 0.0 }
 0xebb   :  { %5929 = vadd.xlane.f32.xlu1 %v5928_v45 }
 0xebd   :  { %v9443_v46 = vpop.eup %9442 }
 0xebe   :  { %v5934_v38 = vsel %vm898_vm2, %v9443_v46, 0.0 }
 0xebf   :  { %5935 = vadd.xlane.f32.xlu1 %v5934_v38 }
 0xec1   :  { %v9445_v41 = vpop.eup %9444 }
 0xec2   :  { %v5940_v52 = vsel %vm898_vm2, %v9445_v41, 0.0  ;;  %v10607_v37 = vpop.eup %9446 }
 0xec3   :  { %5941 = vadd.xlane.f32.xlu1 %v5940_v52 }
 0xed4   :  { %6035 = vrot.lane.b32.xlu1 %v9916_v56, %s9549_s13 }
 0xed8   :  { %6111 = vrot.lane.b32.xlu1 %v9922_v59, %s9549_s13 }
 0xedc   :  { %6187 = vrot.lane.b32.xlu1 %v9927_v51, %s9549_s13  ;;  %v5919_v51 = vsel %vm898_vm2, %v10607_v37, 0.0 }
 0xee0   :  { %6339 = vrot.lane.b32.xlu1 %v9925_v62, %s9549_s13  ;;  %v10611_v62 = vpop.eup %9448 }
 0xee1   :  { %v5925_v58 = vsel %vm898_vm2, %v10611_v62, 0.0 }
 0xee3   :  { %v5633_v22 = vpop.f32.mrb[60].mxu0 }
 0xee4   :  { %v8954_v17 = vpop.f32.mrb[61].mxu0  ;;  %6491 = vrot.lane.b32.xlu1 %v9933_v3, %s9549_s13  ;;  %v5883_v56 = vsel %vm898_vm2, %v5633_v22, -inf }
 0xee5   :  { %5884 = vmax.xlane.f32.xlu0 %v5883_v56 }
 0xee7   :  { %v5789_v59 = vpop.f32.mrb[62].mxu0 }
 0xee8   :  { %v8964_v28 = vpop.f32.mrb[63].mxu0  ;;  %v5889_v20 = vsel %vm898_vm2, %v5789_v59, -inf }
 0xee9   :  { %5890 = vmax.xlane.f32.xlu0 %v5889_v20 }
 0xeed   :  { %5920 = vadd.xlane.f32.xlu0 %v5919_v51 }
 0xef1   :  { %5926 = vadd.xlane.f32.xlu0 %v5925_v58 }
 0xf07   :  { %5959 = vrot.lane.b32.xlu0 %v9918_v57, %s9549_s13 }
 0xf0b   :  { %6263 = vrot.lane.b32.xlu0 %v9931_v11, %s9549_s13 }
 0xf40   :  { %v5924_v3 = vpop.xlane.xlu1 %5923 }
 0xf41   :  { %9450 = vrcp.f32 %v5924_v3 }
 0xf48   :  { %v5930_v50 = vpop.xlane.xlu1 %5929 }
 0xf49   :  { %9452 = vrcp.f32 %v5930_v50 }
 0xf4b   :  { %v9451_v5 = vpop.eup %9450 }
 0xf4c   :  { %v5936_v40 = vpop.xlane.xlu1 %5935  ;;  %v5952_v63 = vmul.f32 %v9451_v5, %v9439_v31  ;;  %v8204_v5 = vld [vmem:[%s11268_s3 + $0xf0] sm:$0xff] }
 0xf4d   :  { %9454 = vrcp.f32 %v5936_v40  ;;  %v8202_v40 = vld [vmem:[%s11268_s3 + $0xe0] sm:$0xff] }
 0xf50   :  { %v5942_v25 = vpop.xlane.xlu1 %5941 }
 0xf51   :  { %9456 = vrcp.f32 %v5942_v25  ;;  %v8203_v25 = vld [vmem:[%s11268_s3 + $0xe8] sm:$0xff] }
 0xf53   :  { %v9453_v11 = vpop.eup %9452 }
 0xf54   :  { %v6036_v9 = vpop.permute.xlu1 %6035  ;;  %v5954_v12 = vmul.f32 %v9453_v11, %v9441_v60  ;;  %v9534_v11 = vld [vmem:[%s11269_s0] sm:$0xff] }
 0xf55   :  { %8976 = vmatpush3.msra.mxu1 %v6036_v9  ;;  %v8205_v9 = vld [vmem:[%s11268_s3 + $0xf8] sm:$0xff] }
 0xf56   :  { %8978 = vmatmul.mubr.msk.f32.vlgmr.msra.gmra.mrb[82].mxu1 %vm898_vm2, %v5952_v63  ;;  %8985 = vmatprep.subr.mxu1 %v9537_v4  ;;  %v9202_v63 = vpack.c.bf16 %v8203_v25, %v8202_v40 }
 0xf57   :  { %8987 = vmatprep.mubr.msk.f32.mxu1 %vm9536_vm0, %v9537_v4  ;;  %v9455_v54 = vpop.eup %9454 }
 0xf58   :  { %v6112_v57 = vpop.permute.xlu1 %6111  ;;  %v5956_v47 = vmul.f32 %v9455_v54, %v9443_v46 }
 0xf5b   :  { %v9457_v13 = vpop.eup %9456 }
 0xf5c   :  { %v6188_v23 = vpop.permute.xlu1 %6187  ;;  %v5958_v32 = vmul.f32 %v9457_v13, %v9445_v41 }
 0xf5d   :  { %8986 = vmatpush3.msra.mxu1 %v6188_v23 }
 0xf5e   :  { %8988 = vmatmul.mubr.msk.f32.vlgmr.msra.gmra.mrb[84].mxu1 %vm898_vm2, %v5954_v12  ;;  %8995 = vmatprep.subr.mxu1 %v9537_v4 }
 0xf5f   :  { %8997 = vmatprep.mubr.msk.f32.mxu1 %vm9536_vm0, %v9537_v4 }
 0xf60   :  { %v6340_v27 = vpop.permute.xlu1 %6339 }
 0xf61   :  { %8996 = vmatpush3.msra.mxu1 %v6340_v27  ;;  %v8197_v27 = vld [vmem:[%s11270_s4 + $0x16] ss:$0 sm:$0xff] }
 0xf62   :  { %8998 = vmatmul.mubr.msk.f32.vlgmr.msra.gmra.mrb[86].mxu1 %vm898_vm2, %v5956_v47  ;;  %9005 = vmatprep.subr.mxu1 %v9537_v4 }
 0xf63   :  { %9007 = vmatprep.mubr.msk.f32.mxu1 %vm9536_vm0, %v9537_v4 }
 0xf64   :  { %v6492_v8 = vpop.permute.xlu1 %6491 }
 0xf65   :  { %9006 = vmatpush3.msra.mxu1 %v6492_v8 }
 0xf66   :  { %9008 = vmatmul.mubr.msk.f32.vlgmr.msra.gmra.mrb[88].mxu1 %vm898_vm2, %v5958_v32  ;;  %9201 = vmatprep.subr.bf16.mxu1 %v9535_v0 }
 0xf67   :  { %9032 = vmatprep.mubr.msk.f32.mxu1 %vm9536_vm0, %v9537_v4  ;;  %9203 = vmatpush3.bf16.msra.mxu1 %v9202_v63 }
 0xf68   :  { %9204 = vmatprep.subr.bf16.mxu1 %v9535_v0 }
 0xf72   :  { %v5885_v16 = vpop.xlane.xlu0 %5884 }
 0xf73   :  { %v5899_v18 = vsub.f32 %v5633_v22, %v5885_v16 }
 0xf75   :  { %v5911_v44 = vmul.f32 1.442695, %v5899_v18 }
 0xf76   :  { %v5891_v36 = vpop.xlane.xlu0 %5890 }
 0xf77   :  { %9458 = vpow2.f32 %v5911_v44  ;;  %v5901_v34 = vsub.f32 %v5789_v59, %v5891_v36 }
 0xf79   :  { %v5915_v29 = vmul.f32 1.442695, %v5901_v34 }
 0xf7a   :  { %v5921_v42 = vpop.xlane.xlu0 %5920 }
 0xf7b   :  { %9460 = vpow2.f32 %v5915_v29 }
 0xf7c   :  { %9462 = vrcp.f32 %v5921_v42 }
 0xf7e   :  { %v5927_v43 = vpop.xlane.xlu0 %5926 }
 0xf7f   :  { %9464 = vrcp.f32 %v5927_v43 }
 0xf81   :  { %v9459_v31 = vpop.eup %9458 }
 0xf82   :  { %v5960_v61 = vpop.permute.xlu0 %5959  ;;  %v5931_v2 = vsel %vm898_vm2, %v9459_v31, 0.0 }
 0xf83   :  { %5932 = vadd.xlane.f32.xlu0 %v5931_v2  ;;  %8971 = vmatpush3.msra.mxu0 %v5960_v61 }
 0xf84   :  { %8980 = vmatprep.subr.mxu0 %v9537_v4 }
 0xf85   :  { %v9461_v19 = vpop.eup %9460 }
 0xf86   :  { %v9463_v30 = vpop.eup %9462  ;;  %v5937_v26 = vsel %vm898_vm2, %v9461_v19, 0.0  ;;  %v6264_v38 = vpop.permute.xlu0 %6263 }
 0xf87   :  { %v5951_v60 = vmul.f32 %v9463_v30, %v10607_v37  ;;  %5938 = vadd.xlane.f32.xlu0 %v5937_v26 }
 0xf89   :  { %v9465_v45 = vpop.eup %9464  ;;  %8973 = vmatmul.mubr.msk.f32.vlgmr.msra.gmra.mrb[64].mxu0 %vm898_vm2, %v5951_v60 }
 0xf8a   :  { %v5953_v46 = vmul.f32 %v9465_v45, %v10611_v62  ;;  %8981 = vmatpush3.msra.mxu0 %v6112_v57  ;;  %8982 = vmatprep.mubr.msk.f32.mxu0 %vm9536_vm0, %v9537_v4  ;;  %v9205_v57 = vpack.c.bf16 %v8205_v9, %v8204_v5 }
 0xf8b   :  { %8990 = vmatprep.subr.mxu0 %v9537_v4 }
 0xf8c   :  { %9206 = vmatpush3.bf16.msra.mxu1 %v9205_v57 }
 0xf8d   :  { %8983 = vmatmul.mubr.msk.f32.vlgmr.msra.gmra.mrb[66].mxu0 %vm898_vm2, %v5953_v46 }
 0xf8e   :  { %8991 = vmatpush3.msra.mxu0 %v6264_v38  ;;  %8992 = vmatprep.mubr.msk.f32.mxu0 %vm9536_vm0, %v9537_v4 }
 0xf8f   :  { %9000 = vmatprep.subr.mxu0 %v9537_v4  ;;  %9033 = vmatmul.mubr.msk.f32.vlgmr.msra.gmra.mrb[90].mxu1 %vm34_vm1, %v9534_v11 }
 0xf9d   :  { %6415 = vrot.lane.b32.xlu0 %v9937_v7, %s9549_s13 }
0x1010   :  { %v5933_v41 = vpop.xlane.xlu0 %5932 }
0x1011   :  { %9466 = vrcp.f32 %v5933_v41 }
0x1014   :  { %v5939_v52 = vpop.xlane.xlu0 %5938 }
0x1015   :  { %9468 = vrcp.f32 %v5939_v52 }
0x1018   :  { %v6416_v1 = vpop.permute.xlu0 %6415 }
0x101b   :  { %v9467_v33 = vpop.eup %9466 }
0x101c   :  { %v5955_v35 = vmul.f32 %v9467_v33, %v9459_v31 }
0x101e   :  { %8993 = vmatmul.mubr.msk.f32.vlgmr.msra.gmra.mrb[68].mxu0 %vm898_vm2, %v5955_v35 }
0x101f   :  { %v9469_v22 = vpop.eup %9468  ;;  %9001 = vmatpush3.msra.mxu0 %v6416_v1  ;;  %9002 = vmatprep.mubr.msk.f32.mxu0 %vm9536_vm0, %v9537_v4 }
0x1020   :  { %v5957_v17 = vmul.f32 %v9469_v22, %v9461_v19  ;;  %9010 = vmatprep.subr.mxu0 %v8187_v14 }
0x1022   :  { %9003 = vmatmul.mubr.msk.f32.vlgmr.msra.gmra.mrb[70].mxu0 %vm898_vm2, %v5957_v17 }
0x1023   :  { %9011 = vmatpush3.msra.mxu0 %v8187_v14 }
0x1029   :  { %v6107_v7 = vpop.f32.mrb[82].mxu1 }
0x102a   :  { %v8979_v56 = vpop.f32.mrb[83].mxu1 }
0x1031   :  { %v6259_v59 = vpop.f32.mrb[84].mxu1 }
0x1032   :  { %v8989_v28 = vpop.f32.mrb[85].mxu1 }
0x1035   :  { %v6411_v20 = vpop.f32.mrb[86].mxu1 }
0x1036   :  { %v8999_v37 = vpop.f32.mrb[87].mxu1 }
0x1039   :  { %v6563_v51 = vpop.f32.mrb[88].mxu1 }
0x103a   :  { %v9009_v62 = vpop.f32.mrb[89].mxu1 }
0x105c   :  { %v6031_v58 = vpop.f32.mrb[64].mxu0 }
0x105d   :  { %v8974_v3 = vpop.f32.mrb[65].mxu0  ;;  %9012 = vmatprep.mubr.msk.f32.mxu0 %vm898_vm2, %v6031_v58 }
0x105e   :  { %9013 = vmatmul.mubr.msk.f32.vlgmr.msra.gmra.mrb[44].mxu0 %vm898_vm2, %v6107_v7 }
0x1060   :  { %v6183_v4 = vpop.f32.mrb[66].mxu0 }
0x1061   :  { %v8984_v50 = vpop.f32.mrb[67].mxu0  ;;  %9015 = vmatprep.mubr.msk.f32.mxu0 %vm898_vm2, %v6183_v4 }
0x1062   :  { %9016 = vmatmul.mubr.msk.f32.gmra.mrb[46].mxu0 %vm898_vm2, %v6259_v59  ;;  %v6931_v5 = vpop.f32.mrb[90].mxu1 }
0x1063   :  { %v9034_v63 = vpop.f32.mrb[91].mxu1 }
0x10f1   :  { %v6335_v12 = vpop.f32.mrb[68].mxu0 }
0x10f2   :  { %v8994_v23 = vpop.f32.mrb[69].mxu0  ;;  %9018 = vmatprep.mubr.msk.f32.mxu0 %vm898_vm2, %v6335_v12 }
0x10f3   :  { %9019 = vmatmul.mubr.msk.f32.gmra.mrb[48].mxu0 %vm898_vm2, %v6411_v20 }
0x10f5   :  { %v6487_v54 = vpop.f32.mrb[70].mxu0 }
0x10f6   :  { %v9004_v47 = vpop.f32.mrb[71].mxu0  ;;  %9021 = vmatprep.mubr.msk.f32.mxu0 %vm898_vm2, %v6487_v54 }
0x10f7   :  { %9022 = vmatmul.mubr.msk.f32.gmra.mrb[50].mxu0 %vm898_vm2, %v6563_v51 }
0x1131   :  { %v9014_v0 = vpop.f32.mrb[44].mxu0 }
0x1132   :  { %v6706_v13 = vadd.f32 %v9014_v0, %v9877_v10  ;;  %v6658_v32 = vpop.f32.mrb[45].mxu0 }
0x1133   :  { %v6705_v8 = vadd.f32 %v6658_v32, %v9874_v39 }
0x1134   :  { %v6719_v16 = vadd.f32 %v8197_v27, %v6706_v13 }
0x1135   :  { %v6718_v18 = vadd.f32 %v8197_v27, %v6705_v8  ;;  %v9017_v44 = vpop.f32.mrb[46].mxu0 }
0x1136   :  { %v6708_v36 = vadd.f32 %v9017_v44, %v9887_v49  ;;  %v6668_v34 = vpop.f32.mrb[47].mxu0  ;;  %v6731_v29 = vsel %vm34_vm1, %v6719_v16, 0.0  ;;  %v8207_v44 = vld [vmem:[%s11270_s4 + $0x17] ss:$0 sm:$0xff] }
0x1137   :  { %v6707_v42 = vadd.f32 %v6668_v34, %v9884_v48  ;;  %6732 = vadd.xlane.f32.xlu1 %v6731_v29  ;;  %v6728_v43 = vsel %vm34_vm1, %v6718_v18, 0.0 }
0x1138   :  { %v6721_v31 = vadd.f32 %v8197_v27, %v6708_v36  ;;  %6729 = vadd.xlane.f32.xlu0 %v6728_v43 }
0x1139   :  { %v6720_v61 = vadd.f32 %v8197_v27, %v6707_v42 }
0x113a   :  { %v6737_v10 = vsel %vm34_vm1, %v6721_v31, 0.0 }
0x113b   :  { %v6734_v39 = vsel %vm34_vm1, %v6720_v61, 0.0 }
0x113c   :  { %6738 = vadd.xlane.f32.xlu0 %v6737_v10 }
0x1140   :  { %6735 = vadd.xlane.f32.xlu0 %v6734_v39  ;;  %v10742_v39 = vadd.f32 %v8207_v44, %v6931_v5 }
0x11c4   :  { %v6733_v2 = vpop.xlane.xlu1 %6732 }
0x11c5   :  { %v6730_v19 = vpop.xlane.xlu0 %6729  ;;  %v6753_v30 = vmul.f32 0.03125, %v6733_v2 }
0x11c6   :  { %v9020_v49 = vpop.f32.mrb[48].mxu0  ;;  %v6752_v48 = vmul.f32 0.03125, %v6730_v19 }
0x11c7   :  { %v6710_v26 = vadd.f32 %v9020_v49, %v9897_v6  ;;  %v6678_v60 = vpop.f32.mrb[49].mxu0  ;;  %v10695_v33 = vsub.f32 %v6719_v16, %v6753_v30 }
0x11c8   :  { %v6709_v45 = vadd.f32 %v6678_v60, %v9894_v53  ;;  %v10699_v17 = vsub.f32 %v6718_v18, %v6752_v48 }
0x11c9   :  { %v6723_v46 = vadd.f32 %v8197_v27, %v6710_v26  ;;  %v6739_v38 = vpop.xlane.xlu0 %6738 }
0x11ca   :  { %v6722_v41 = vadd.f32 %v8197_v27, %v6709_v45  ;;  %v9023_v52 = vpop.f32.mrb[50].mxu0  ;;  %v6755_v35 = vmul.f32 0.03125, %v6739_v38  ;;  %v6768_v62 = vmul.f32 %v10699_v17, %v10699_v17 }
0x11cb   :  { %v6712_v14 = vadd.f32 %v9023_v52, %v9905_v55  ;;  %v6688_v1 = vpop.f32.mrb[51].mxu0  ;;  %v6743_v22 = vsel %vm34_vm1, %v6723_v46, 0.0  ;;  %v6769_v55 = vmul.f32 %v10695_v33, %v10695_v33 }
0x11cc   :  { %v6711_v6 = vadd.f32 %v6688_v1, %v9903_v24  ;;  %6744 = vadd.xlane.f32.xlu1 %v6743_v22  ;;  %v6740_v7 = vsel %vm34_vm1, %v6722_v41, 0.0  ;;  %v10703_v20 = vsub.f32 %v6721_v31, %v6755_v35  ;;  %v6776_v4 = vsel %vm34_vm1, %v6768_v62, 0.0  ;;  %v10753_v22 = vld [vmem:[%s11270_s4 + $0x10] ss:$0 sm:$0xff] }
0x11cd   :  { %v6725_v53 = vadd.f32 %v8197_v27, %v6712_v14  ;;  %v6736_v56 = vpop.xlane.xlu0 %6735  ;;  %6741 = vadd.xlane.f32.xlu0 %v6740_v7  ;;  %v6779_v58 = vsel %vm34_vm1, %v6769_v55, 0.0 }
0x11ce   :  { %v6724_v59 = vadd.f32 %v8197_v27, %v6711_v6  ;;  %v6754_v28 = vmul.f32 0.03125, %v6736_v56  ;;  %v6771_v3 = vmul.f32 %v10703_v20, %v10703_v20 }
0x11cf   :  { %v6749_v37 = vsel %vm34_vm1, %v6725_v53, 0.0 }
0x11d0   :  { %v10708_v51 = vsub.f32 %v6720_v61, %v6754_v28  ;;  %6750 = vadd.xlane.f32.xlu1 %v6749_v37  ;;  %v6746_v24 = vsel %vm34_vm1, %v6724_v59, 0.0  ;;  %v6785_v40 = vsel %vm34_vm1, %v6771_v3, 0.0 }
0x11d1   :  { %6747 = vadd.xlane.f32.xlu0 %v6746_v24 }
0x11d2   :  { %v6770_v50 = vmul.f32 %v10708_v51, %v10708_v51 }
0x11d4   :  { %6780 = vadd.xlane.f32.xlu1 %v6779_v58  ;;  %v6782_v25 = vsel %vm34_vm1, %v6770_v50, 0.0 }
0x11d5   :  { %6777 = vadd.xlane.f32.xlu0 %v6776_v4 }
0x11d8   :  { %6786 = vadd.xlane.f32.xlu1 %v6785_v40 }
0x11d9   :  { %6783 = vadd.xlane.f32.xlu0 %v6782_v25 }
0x1259   :  { %v6745_v9 = vpop.xlane.xlu1 %6744 }
0x125a   :  { %v6757_v57 = vmul.f32 0.03125, %v6745_v9  ;;  %v6742_v11 = vpop.xlane.xlu0 %6741 }
0x125b   :  { %v6756_v12 = vmul.f32 0.03125, %v6742_v11 }
0x125c   :  { %v10721_v23 = vsub.f32 %v6723_v46, %v6757_v57  ;;  %v6943_v46 = vrot.slane %v10742_v39, %v9608_v15 }
0x125d   :  { %v10723_v54 = vsub.f32 %v6722_v41, %v6756_v12  ;;  %v6751_v47 = vpop.xlane.xlu1 %6750 }
0x125e   :  { %v6759_v0 = vmul.f32 0.03125, %v6751_v47  ;;  %v6748_v27 = vpop.xlane.xlu0 %6747  ;;  %v6773_v13 = vmul.f32 %v10721_v23, %v10721_v23  ;;  %v6951_v52 = vcombine.high %v6943_v46, %v6943_v46  ;;  %v6959_v1 = vrot.slane %v6943_v46, %v9608_v15 }
0x125f   :  { %v6758_v32 = vmul.f32 0.03125, %v6748_v27  ;;  %v6772_v8 = vmul.f32 %v10723_v54, %v10723_v54 }
0x1260   :  { %v10729_v16 = vsub.f32 %v6725_v53, %v6759_v0  ;;  %v6791_v18 = vsel %vm34_vm1, %v6773_v13, 0.0  ;;  %v6973_v35 = vrot.slane %v6951_v52, %v9608_v15  ;;  %v10759_v53 = vld [vmem:[%s11270_s4 + $0x11] ss:$0 sm:$0xff]  ;;  %v6981_v24 = vcombine.high %v6959_v1, %v6959_v1 }
0x1261   :  { %v10735_v36 = vsub.f32 %v6724_v59, %v6758_v32  ;;  %6792 = vadd.xlane.f32.xlu1 %v6791_v18  ;;  %v6781_v34 = vpop.xlane.xlu1 %6780  ;;  %v6788_v29 = vsel %vm34_vm1, %v6772_v8, 0.0  ;;  %v6988_v58 = vrot.slane %v6959_v1, %v9611_v21 }
0x1262   :  { %v6801_v42 = vmul.f32 0.03125, %v6781_v34  ;;  %6789 = vadd.xlane.f32.xlu0 %v6788_v29  ;;  %v6778_v43 = vpop.xlane.xlu0 %6777  ;;  %v6775_v31 = vmul.f32 %v10729_v16, %v10729_v16  ;;  %v6992_v28 = vrot.slane %v6973_v35, %v9611_v21  ;;  %v6983_v37 = vcombine.high %v6973_v35, %v6973_v35 }
0x1263   :  { %v6800_v10 = vmul.f32 0.03125, %v6778_v43  ;;  %v6774_v61 = vmul.f32 %v10735_v36, %v10735_v36  ;;  %v6996_v57 = vrot.slane %v6981_v24, %v9611_v21  ;;  %v6936_v29 = vcombine.high %v10742_v39, %v10742_v39 }
0x1264   :  { %v6809_v2 = vadd.f32 1e-05, %v6801_v42  ;;  %v6797_v19 = vsel %vm34_vm1, %v6775_v31, 0.0  ;;  %v7000_v5 = vrot.slane %v6983_v37, %v9611_v21 }
0x1265   :  { %v6808_v49 = vadd.f32 1e-05, %v6800_v10  ;;  %6798 = vadd.xlane.f32.xlu1 %v6797_v19  ;;  %v6787_v30 = vpop.xlane.xlu1 %6786  ;;  %v6794_v26 = vsel %vm34_vm1, %v6774_v61, 0.0  ;;  %v6950_v19 = vrot.slane %v6936_v29, %v9608_v15 }
0x1266   :  { %9470 = vrsqrt.f32 %v6809_v2  ;;  %v6803_v60 = vmul.f32 0.03125, %v6787_v30  ;;  %6795 = vadd.xlane.f32.xlu0 %v6794_v26  ;;  %v6784_v48 = vpop.xlane.xlu0 %6783 }
0x1267   :  { %9472 = vrsqrt.f32 %v6808_v49  ;;  %v6802_v45 = vmul.f32 0.03125, %v6784_v48  ;;  %v6952_v30 = vcombine.high %v6950_v19, %v6950_v19 }
0x1268   :  { %v6811_v38 = vadd.f32 1e-05, %v6803_v60 }
0x1269   :  { %v6810_v41 = vadd.f32 1e-05, %v6802_v45  ;;  %v6980_v39 = vrot.slane %v6952_v30, %v9608_v15  ;;  %v6966_v45 = vrot.slane %v6950_v19, %v9608_v15 }
0x126a   :  { %9474 = vrsqrt.f32 %v6811_v38 }
0x126b   :  { %9476 = vrsqrt.f32 %v6810_v41  ;;  %v7008_v1 = vrot.slane %v6980_v39, %v9611_v21 }
0x1270   :  { %v9471_v14 = vpop.eup %9470 }
0x1271   :  { %v9473_v6 = vpop.eup %9472  ;;  %v6825_v7 = vmul.f32 %v9471_v14, %v10695_v33 }
0x1272   :  { %v6824_v56 = vmul.f32 %v9473_v6, %v10699_v17 }
0x1273   :  { %v6837_v59 = vmul.f32 %v10753_v22, %v6825_v7  ;;  %v6984_v7 = vcombine.high %v6980_v39, %v6980_v39 }
0x1274   :  { %v9475_v55 = vpop.eup %9474  ;;  %v6836_v62 = vmul.f32 %v10753_v22, %v6824_v56  ;;  %v7004_v56 = vrot.slane %v6966_v45, %v9611_v21 }
0x1275   :  { %v9477_v3 = vpop.eup %9476  ;;  %v6849_v33 = vadd.f32 %v10759_v53, %v6837_v59  ;;  %v6827_v4 = vmul.f32 %v9475_v55, %v10703_v20 }
0x1276   :  { %v6848_v50 = vadd.f32 %v10759_v53, %v6836_v62  ;;  %v6826_v17 = vmul.f32 %v9477_v3, %v10708_v51 }
0x1277   :  { %v10770_v40 = vadd.f32 %v6992_v28, %v6849_v33  ;;  %v6839_v25 = vmul.f32 %v10753_v22, %v6827_v4 }
0x1278   :  { %v10774_v63 = vadd.f32 %v6988_v58, %v6848_v50  ;;  %v6838_v9 = vmul.f32 %v10753_v22, %v6826_v17 }
0x1279   :  { %v7038_v11 = vsel %vm34_vm1, %v10770_v40, 0.0  ;;  %v6851_v20 = vadd.f32 %v10759_v53, %v6839_v25 }
0x127a   :  { %7039 = vadd.xlane.f32.xlu1 %v7038_v11  ;;  %v7035_v51 = vsel %vm34_vm1, %v10774_v63, 0.0  ;;  %v6850_v12 = vadd.f32 %v10759_v53, %v6838_v9 }
0x127b   :  { %7036 = vadd.xlane.f32.xlu0 %v7035_v51  ;;  %v10784_v47 = vadd.f32 %v7000_v5, %v6851_v20 }
0x127c   :  { %v10786_v0 = vadd.f32 %v6996_v57, %v6850_v12 }
0x127d   :  { %v7044_v27 = vsel %vm34_vm1, %v10784_v47, 0.0 }
0x127e   :  { %7045 = vadd.xlane.f32.xlu1 %v7044_v27  ;;  %v7041_v13 = vsel %vm34_vm1, %v10786_v0, 0.0 }
0x127f   :  { %7042 = vadd.xlane.f32.xlu0 %v7041_v13 }
0x12ee   :  { %v6793_v32 = vpop.xlane.xlu1 %6792 }
0x12ef   :  { %v6805_v8 = vmul.f32 0.03125, %v6793_v32  ;;  %v6790_v18 = vpop.xlane.xlu0 %6789 }
0x12f0   :  { %v6804_v44 = vmul.f32 0.03125, %v6790_v18 }
0x12f1   :  { %v6813_v34 = vadd.f32 1e-05, %v6805_v8 }
0x12f2   :  { %v6812_v42 = vadd.f32 1e-05, %v6804_v44  ;;  %v6799_v43 = vpop.xlane.xlu1 %6798 }
0x12f3   :  { %9478 = vrsqrt.f32 %v6813_v34  ;;  %v6807_v31 = vmul.f32 0.03125, %v6799_v43  ;;  %v6796_v10 = vpop.xlane.xlu0 %6795  ;;  %v8214_v34 = vld [vmem:[%s11272_s2 + $0x68] sm:$0xff]  ;;  %v8216_v43 = vld [vmem:[%s11272_s2 + $0x78] sm:$0xff] }
0x12f4   :  { %9480 = vrsqrt.f32 %v6812_v42  ;;  %v6806_v61 = vmul.f32 0.03125, %v6796_v10  ;;  %v8215_v42 = vld [vmem:[%s11272_s2 + $0x70] sm:$0xff] }
0x12f5   :  { %v6815_v2 = vadd.f32 1e-05, %v6807_v31  ;;  %v9211_v31 = vpack.c.bf16 %v8216_v43, %v8215_v42  ;;  %v8235_v43 = vld [vmem:[%s11268_s3 + $0x140] sm:$0xff] }
0x12f6   :  { %v6814_v49 = vadd.f32 1e-05, %v6806_v61 }
0x12f7   :  { %9482 = vrsqrt.f32 %v6815_v2 }
0x12f8   :  { %9484 = vrsqrt.f32 %v6814_v49 }
0x12fd   :  { %v9479_v26 = vpop.eup %9478 }
0x12fe   :  { %v9481_v60 = vpop.eup %9480  ;;  %v6829_v48 = vmul.f32 %v9479_v26, %v10721_v23 }
0x12ff   :  { %v6828_v46 = vmul.f32 %v9481_v60, %v10723_v54  ;;  %v6982_v54 = vcombine.high %v6966_v45, %v6966_v45 }
0x1300   :  { %v6841_v38 = vmul.f32 %v10753_v22, %v6829_v48 }
0x1301   :  { %v9483_v41 = vpop.eup %9482  ;;  %v6840_v52 = vmul.f32 %v10753_v22, %v6828_v46 }
0x1302   :  { %v9485_v35 = vpop.eup %9484  ;;  %v6853_v14 = vadd.f32 %v10759_v53, %v6841_v38  ;;  %v6831_v6 = vmul.f32 %v9483_v41, %v10729_v16  ;;  %v7016_v16 = vrot.slane %v6984_v7, %v9611_v21 }
0x1303   :  { %v6852_v23 = vadd.f32 %v10759_v53, %v6840_v52  ;;  %v6830_v15 = vmul.f32 %v9485_v35, %v10735_v36  ;;  %v7012_v36 = vrot.slane %v6982_v54, %v9611_v21 }
0x1304   :  { %v7030_v59 = vadd.f32 %v7008_v1, %v6853_v14  ;;  %v6843_v28 = vmul.f32 %v10753_v22, %v6831_v6 }
0x1305   :  { %v7029_v37 = vadd.f32 %v7004_v56, %v6852_v23  ;;  %v6842_v55 = vmul.f32 %v10753_v22, %v6830_v15 }
0x1306   :  { %v7050_v24 = vsel %vm34_vm1, %v7030_v59, 0.0  ;;  %v6855_v62 = vadd.f32 %v10759_v53, %v6843_v28 }
0x1307   :  { %7051 = vadd.xlane.f32.xlu1 %v7050_v24  ;;  %v7040_v58 = vpop.xlane.xlu1 %7039  ;;  %v7047_v3 = vsel %vm34_vm1, %v7029_v37, 0.0  ;;  %v6854_v33 = vadd.f32 %v10759_v53, %v6842_v55 }
0x1308   :  { %v7060_v4 = vmul.f32 0.03125, %v7040_v58  ;;  %7048 = vadd.xlane.f32.xlu0 %v7047_v3  ;;  %v7037_v50 = vpop.xlane.xlu0 %7036  ;;  %v7032_v17 = vadd.f32 %v7016_v16, %v6855_v62 }
0x1309   :  { %v7059_v25 = vmul.f32 0.03125, %v7037_v50  ;;  %v7031_v22 = vadd.f32 %v7012_v36, %v6854_v33  ;;  %v10876_v33 = vld [vmem:[%s11270_s4 + $0x12] ss:$0 sm:$0xff] }
0x130a   :  { %v10816_v5 = vsub.f32 %v10770_v40, %v7060_v4  ;;  %v7056_v9 = vsel %vm34_vm1, %v7032_v17, 0.0 }
0x130b   :  { %v10820_v57 = vsub.f32 %v10774_v63, %v7059_v25  ;;  %7057 = vadd.xlane.f32.xlu1 %v7056_v9  ;;  %v7046_v11 = vpop.xlane.xlu1 %7045  ;;  %v7053_v53 = vsel %vm34_vm1, %v7031_v22, 0.0 }
0x130c   :  { %v7062_v20 = vmul.f32 0.03125, %v7046_v11  ;;  %7054 = vadd.xlane.f32.xlu0 %v7053_v53  ;;  %v7043_v21 = vpop.xlane.xlu0 %7042  ;;  %v7076_v51 = vmul.f32 %v10816_v5, %v10816_v5 }
0x130d   :  { %v7061_v12 = vmul.f32 0.03125, %v7043_v21  ;;  %v7075_v40 = vmul.f32 %v10820_v57, %v10820_v57 }
0x130e   :  { %v10828_v27 = vsub.f32 %v10784_v47, %v7062_v20  ;;  %v7086_v63 = vsel %vm34_vm1, %v7076_v51, 0.0 }
0x130f   :  { %v10832_v13 = vsub.f32 %v10786_v0, %v7061_v12  ;;  %7087 = vadd.xlane.f32.xlu1 %v7086_v63  ;;  %v7083_v32 = vsel %vm34_vm1, %v7075_v40, 0.0  ;;  %v8213_v0 = vld [vmem:[%s11272_s2 + $0x60] sm:$0xff]  ;;  %v8228_v63 = vld [vmem:[%s11268_s3 + $0x108] sm:$0xff] }
0x1310   :  { %7084 = vadd.xlane.f32.xlu0 %v7083_v32  ;;  %v7078_v8 = vmul.f32 %v10828_v27, %v10828_v27  ;;  %v9207_v29 = vpack.c.bf16 %v8214_v34, %v8213_v0  ;;  %v8233_v34 = vld [vmem:[%s11268_s3 + $0x130] sm:$0xff] }
0x1311   :  { %v7077_v18 = vmul.f32 %v10832_v13, %v10832_v13 }
0x1312   :  { %v7092_v44 = vsel %vm34_vm1, %v7078_v8, 0.0  ;;  %9208 = vmatprep.subr.bf16.mxu1 %v9207_v29  ;;  %v8230_v8 = vld [vmem:[%s11268_s3 + $0x118] sm:$0xff] }
0x1313   :  { %7093 = vadd.xlane.f32.xlu1 %v7092_v44  ;;  %v7089_v47 = vsel %vm34_vm1, %v7077_v18, 0.0  ;;  %9210 = vmatpush3.bf16.msra.mxu1 %v9207_v29  ;;  %v8231_v44 = vld [vmem:[%s11268_s3 + $0x120] sm:$0xff]  ;;  %v8234_v29 = vld [vmem:[%s11268_s3 + $0x138] sm:$0xff] }
0x1314   :  { %7090 = vadd.xlane.f32.xlu0 %v7089_v47  ;;  %9212 = vmatprep.subr.bf16.mxu1 %v9211_v31  ;;  %v8232_v47 = vld [vmem:[%s11268_s3 + $0x128] sm:$0xff]  ;;  %v9227_v42 = vpack.c.bf16 %v8234_v29, %v8233_v34 }
0x1315   :  { %v9223_v0 = vpack.c.bf16 %v8232_v47, %v8231_v44 }
0x1317   :  { %9214 = vmatpush3.bf16.msra.mxu1 %v9211_v31  ;;  %v8236_v31 = vld [vmem:[%s11268_s3 + $0x148] sm:$0xff] }
0x1394   :  { %v7052_v10 = vpop.xlane.xlu1 %7051 }
0x1395   :  { %v7064_v61 = vmul.f32 0.03125, %v7052_v10  ;;  %v7049_v2 = vpop.xlane.xlu0 %7048  ;;  %v9231_v10 = vpack.c.bf16 %v8236_v31, %v8235_v43 }
0x1396   :  { %v7063_v19 = vmul.f32 0.03125, %v7049_v2  ;;  %v8238_v2 = vld [vmem:[%s11268_s3 + $0x158] sm:$0xff] }
0x1397   :  { %v10853_v49 = vsub.f32 %v7030_v59, %v7064_v61  ;;  %v8237_v61 = vld [vmem:[%s11268_s3 + $0x150] sm:$0xff] }
0x1398   :  { %v10855_v30 = vsub.f32 %v7029_v37, %v7063_v19  ;;  %v7058_v26 = vpop.xlane.xlu1 %7057  ;;  %v9235_v19 = vpack.c.bf16 %v8238_v2, %v8237_v61 }
0x1399   :  { %v7066_v60 = vmul.f32 0.03125, %v7058_v26  ;;  %v7055_v48 = vpop.xlane.xlu0 %7054  ;;  %v7080_v39 = vmul.f32 %v10853_v49, %v10853_v49  ;;  %v8239_v26 = vld [vmem:[%s11268_s3 + $0x160] sm:$0xff] }
0x139a   :  { %v7065_v45 = vmul.f32 0.03125, %v7055_v48  ;;  %v7079_v46 = vmul.f32 %v10855_v30, %v10855_v30 }
0x139b   :  { %v10861_v38 = vsub.f32 %v7032_v17, %v7066_v60  ;;  %v7098_v41 = vsel %vm34_vm1, %v7080_v39, 0.0  ;;  %v10883_v17 = vld [vmem:[%s11270_s4 + $0x13] ss:$0 sm:$0xff]  ;;  %v8240_v60 = vld [vmem:[%s11268_s3 + $0x168] sm:$0xff] }
0x139c   :  { %v10864_v52 = vsub.f32 %v7031_v22, %v7065_v45  ;;  %7099 = vadd.xlane.f32.xlu1 %v7098_v41  ;;  %v7088_v35 = vpop.xlane.xlu1 %7087  ;;  %v7095_v14 = vsel %vm34_vm1, %v7079_v46, 0.0  ;;  %v9239_v48 = vpack.c.bf16 %v8240_v60, %v8239_v26  ;;  %v8241_v39 = vld [vmem:[%s11268_s3 + $0x170] sm:$0xff]  ;;  %v8242_v45 = vld [vmem:[%s11268_s3 + $0x178] sm:$0xff] }
0x139d   :  { %v7108_v1 = vmul.f32 0.03125, %v7088_v35  ;;  %7096 = vadd.xlane.f32.xlu0 %v7095_v14  ;;  %v7085_v6 = vpop.xlane.xlu0 %7084  ;;  %v7082_v7 = vmul.f32 %v10861_v38, %v10861_v38  ;;  %v9243_v46 = vpack.c.bf16 %v8242_v45, %v8241_v39  ;;  %v8244_v26 = vld [vmem:[%s11270_s4 + $0x18] ss:$0 sm:$0xff] }
0x139e   :  { %v7107_v23 = vmul.f32 0.03125, %v7085_v6  ;;  %v7081_v56 = vmul.f32 %v10864_v52, %v10864_v52 }
0x139f   :  { %v7116_v15 = vadd.f32 1e-05, %v7108_v1  ;;  %v7104_v54 = vsel %vm34_vm1, %v7082_v7, 0.0 }
0x13a0   :  { %v7115_v59 = vadd.f32 1e-05, %v7107_v23  ;;  %7105 = vadd.xlane.f32.xlu1 %v7104_v54  ;;  %v7094_v28 = vpop.xlane.xlu1 %7093  ;;  %v7101_v37 = vsel %vm34_vm1, %v7081_v56, 0.0 }
0x13a1   :  { %9486 = vrsqrt.f32 %v7116_v15  ;;  %v7110_v55 = vmul.f32 0.03125, %v7094_v28  ;;  %7102 = vadd.xlane.f32.xlu0 %v7101_v37  ;;  %v7091_v24 = vpop.xlane.xlu0 %7090 }
0x13a2   :  { %9488 = vrsqrt.f32 %v7115_v59  ;;  %v7109_v62 = vmul.f32 0.03125, %v7091_v24 }
0x13a3   :  { %v7118_v16 = vadd.f32 1e-05, %v7110_v55 }
0x13a4   :  { %v7117_v58 = vadd.f32 1e-05, %v7109_v62 }
0x13a5   :  { %9490 = vrsqrt.f32 %v7118_v16 }
0x13a6   :  { %9492 = vrsqrt.f32 %v7117_v58 }
0x13ab   :  { %v9487_v3 = vpop.eup %9486 }
0x13ac   :  { %v9489_v36 = vpop.eup %9488  ;;  %v7132_v4 = vmul.f32 %v9487_v3, %v10816_v5 }
0x13ad   :  { %v7131_v50 = vmul.f32 %v9489_v36, %v10820_v57 }
0x13ae   :  { %v7144_v25 = vmul.f32 %v10876_v33, %v7132_v4 }
0x13af   :  { %v9491_v22 = vpop.eup %9490  ;;  %v7143_v9 = vmul.f32 %v10876_v33, %v7131_v50 }
0x13b0   :  { %v9493_v11 = vpop.eup %9492  ;;  %v7134_v53 = vmul.f32 %v9491_v22, %v10828_v27  ;;  %v10893_v57 = vadd.f32 %v10883_v17, %v7144_v25  ;;  %v8227_v27 = vld [vmem:[%s11268_s3 + $0x100] sm:$0xff] }
0x13b1   :  { %v10889_v20 = vadd.f32 %v10883_v17, %v7143_v9  ;;  %v7133_v5 = vmul.f32 %v9493_v11, %v10832_v13  ;;  %v8229_v13 = vld [vmem:[%s11268_s3 + $0x110] sm:$0xff]  ;;  %v9215_v32 = vpack.c.bf16 %v8228_v63, %v8227_v27 }
0x13b2   :  { %v7146_v21 = vmul.f32 %v10876_v33, %v7134_v53  ;;  %v9219_v18 = vpack.c.bf16 %v8230_v8, %v8229_v13 }
0x13b3   :  { %9043 = vmatprep.mubr.msk.f32.mxu1 %vm34_vm1, %v10889_v20  ;;  %v7145_v51 = vmul.f32 %v10876_v33, %v7133_v5  ;;  %9216 = vmatprep.subr.bf16.mxu0 %v9215_v32 }
0x13b4   :  { %9044 = vmatmul.mubr.msk.f32.vlgmr.msra.gmra.mrb[92].mxu1 %vm34_vm1, %v10893_v57  ;;  %v10905_v40 = vadd.f32 %v10883_v17, %v7146_v21  ;;  %9218 = vmatpush3.bf16.msra.mxu0 %v9215_v32 }
0x13b5   :  { %v10902_v12 = vadd.f32 %v10883_v17, %v7145_v51  ;;  %9220 = vmatprep.subr.bf16.mxu0 %v9219_v18 }
0x13b7   :  { %9046 = vmatprep.mubr.msk.f32.mxu1 %vm34_vm1, %v10902_v12 }
0x13b8   :  { %9047 = vmatmul.mubr.msk.f32.gmra.mrb[94].mxu1 %vm34_vm1, %v10905_v40  ;;  %9222 = vmatpush3.bf16.msra.mxu0 %v9219_v18 }
0x13b9   :  { %9224 = vmatprep.subr.bf16.mxu0 %v9223_v0 }
0x13bc   :  { %9226 = vmatpush3.bf16.msra.mxu0 %v9223_v0 }
0x13bd   :  { %9228 = vmatprep.subr.bf16.mxu0 %v9227_v42 }
0x13c0   :  { %9230 = vmatpush3.bf16.msra.mxu0 %v9227_v42 }
0x13c1   :  { %9232 = vmatprep.subr.bf16.mxu0 %v9231_v10 }
0x13c4   :  { %9234 = vmatpush3.bf16.msra.mxu0 %v9231_v10 }
0x13c5   :  { %9236 = vmatprep.subr.bf16.mxu0 %v9235_v19 }
0x13c8   :  { %9238 = vmatpush3.bf16.msra.mxu0 %v9235_v19 }
0x13c9   :  { %9240 = vmatprep.subr.bf16.mxu0 %v9239_v48 }
0x13cc   :  { %9242 = vmatpush3.bf16.msra.mxu0 %v9239_v48 }
0x13cd   :  { %9244 = vmatprep.subr.bf16.mxu0 %v9243_v46 }
0x13d0   :  { %9246 = vmatpush3.bf16.msra.mxu0 %v9243_v46 }
0x1429   :  { %v7100_v41 = vpop.xlane.xlu1 %7099 }
0x142a   :  { %v7112_v35 = vmul.f32 0.03125, %v7100_v41  ;;  %v7097_v14 = vpop.xlane.xlu0 %7096 }
0x142b   :  { %v7111_v1 = vmul.f32 0.03125, %v7097_v14 }
0x142c   :  { %v7120_v6 = vadd.f32 1e-05, %v7112_v35 }
0x142d   :  { %v7119_v7 = vadd.f32 1e-05, %v7111_v1  ;;  %v7106_v23 = vpop.xlane.xlu1 %7105 }
0x142e   :  { %9494 = vrsqrt.f32 %v7120_v6  ;;  %v7114_v56 = vmul.f32 0.03125, %v7106_v23  ;;  %v7103_v15 = vpop.xlane.xlu0 %7102 }
0x142f   :  { %9496 = vrsqrt.f32 %v7119_v7  ;;  %v7113_v54 = vmul.f32 0.03125, %v7103_v15 }
0x1430   :  { %v7122_v59 = vadd.f32 1e-05, %v7114_v56 }
0x1431   :  { %v7121_v28 = vadd.f32 1e-05, %v7113_v54 }
0x1432   :  { %9498 = vrsqrt.f32 %v7122_v59 }
0x1433   :  { %9500 = vrsqrt.f32 %v7121_v28 }
0x1438   :  { %v9495_v37 = vpop.eup %9494 }
0x1439   :  { %v9497_v55 = vpop.eup %9496  ;;  %v7136_v24 = vmul.f32 %v9495_v37, %v10853_v49 }
0x143a   :  { %v7135_v62 = vmul.f32 %v9497_v55, %v10855_v30 }
0x143b   :  { %v7148_v16 = vmul.f32 %v10876_v33, %v7136_v24 }
0x143c   :  { %v9499_v58 = vpop.eup %9498  ;;  %v7147_v3 = vmul.f32 %v10876_v33, %v7135_v62 }
0x143d   :  { %v9501_v36 = vpop.eup %9500  ;;  %v7138_v4 = vmul.f32 %v9499_v58, %v10861_v38  ;;  %v10969_v22 = vadd.f32 %v10883_v17, %v7148_v16 }
0x143e   :  { %v10965_v50 = vadd.f32 %v10883_v17, %v7147_v3  ;;  %v7137_v25 = vmul.f32 %v9501_v36, %v10864_v52  ;;  %v8218_v52 = vld [vmem:[%s11270_s4 + $0x1a] ss:$0 sm:$0xff] }
0x143f   :  { %v7150_v49 = vmul.f32 %v10876_v33, %v7138_v4 }
0x1440   :  { %9049 = vmatprep.mubr.msk.f32.mxu1 %vm34_vm1, %v10965_v50  ;;  %v7149_v30 = vmul.f32 %v10876_v33, %v7137_v25 }
0x1441   :  { %9050 = vmatmul.mubr.msk.f32.gmra.mrb[96].mxu1 %vm34_vm1, %v10969_v22  ;;  %v10981_v9 = vadd.f32 %v10883_v17, %v7150_v49 }
0x1442   :  { %v10978_v38 = vadd.f32 %v10883_v17, %v7149_v30 }
0x1444   :  { %9052 = vmatprep.mubr.msk.f32.mxu1 %vm34_vm1, %v10978_v38 }
0x1445   :  { %9053 = vmatmul.mubr.msk.f32.gmra.mrb[98].mxu1 %vm34_vm1, %v10981_v9 }
0x1487   :  { %v9045_v33 = vpop.f32.mrb[92].mxu1 }
0x1488   :  { %v7268_v11 = vadd.f32 %v9045_v33, %v8218_v52  ;;  %v7262_v53 = vpop.f32.mrb[93].mxu1 }
0x1489   :  { %v7263_v5 = vadd.f32 %v8218_v52, %v7262_v53 }
0x148a   :  { %v7302_v27 = vmax.f32 %v7268_v11, 0.0 }
0x148b   :  { %v7301_v21 = vmax.f32 %v7263_v5, 0.0  ;;  %v9048_v51 = vpop.f32.mrb[94].mxu1 }
0x148c   :  { %v7278_v63 = vadd.f32 %v9048_v51, %v8218_v52  ;;  %v7272_v17 = vpop.f32.mrb[95].mxu1 }
0x148d   :  { %v7273_v13 = vadd.f32 %v8218_v52, %v7272_v17  ;;  %9087 = vmatprep.mubr.f32.mxu0 %v7301_v21 }
0x148e   :  { %9088 = vmatmul.mubr.f32.vlgmr.msra.gmra.mrb[72].mxu0 %v7302_v27  ;;  %v7304_v8 = vmax.f32 %v7278_v63, 0.0 }
0x148f   :  { %v7303_v32 = vmax.f32 %v7273_v13, 0.0 }
0x1491   :  { %9090 = vmatprep.mubr.f32.mxu0 %v7303_v32 }
0x1492   :  { %9091 = vmatmul.mubr.f32.gmra.mrb[74].mxu0 %v7304_v8 }
0x1514   :  { %v9051_v18 = vpop.f32.mrb[96].mxu1 }
0x1515   :  { %v7288_v44 = vadd.f32 %v9051_v18, %v8218_v52  ;;  %v7282_v47 = vpop.f32.mrb[97].mxu1 }
0x1516   :  { %v7283_v0 = vadd.f32 %v8218_v52, %v7282_v47  ;;  %v7582_v47 = vld [vmem:[%s11273_s5 + $0x8] sm:$0xff] }
0x1517   :  { %v7306_v42 = vmax.f32 %v7288_v44, 0.0  ;;  %v7581_v44 = vld [vmem:[%s11273_s5] sm:$0xff] }
0x1518   :  { %v7305_v34 = vmax.f32 %v7283_v0, 0.0  ;;  %v9054_v29 = vpop.f32.mrb[98].mxu1  ;;  %v9247_v0 = vpack.c.bf16 %v7582_v47, %v7581_v44  ;;  %v7733_v47 = vld [vmem:[%s11273_s5 + $0x58] sm:$0xff] }
0x1519   :  { %v7298_v43 = vadd.f32 %v9054_v29, %v8218_v52  ;;  %v7292_v31 = vpop.f32.mrb[99].mxu1  ;;  %v7584_v29 = vld [vmem:[%s11273_s5 + $0x18] sm:$0xff] }
0x151a   :  { %v7293_v10 = vadd.f32 %v8218_v52, %v7292_v31  ;;  %9093 = vmatprep.mubr.f32.mxu0 %v7305_v34  ;;  %9248 = vmatprep.subr.bf16.mxu1 %v9247_v0  ;;  %v7583_v34 = vld [vmem:[%s11273_s5 + $0x10] sm:$0xff] }
0x151b   :  { %9094 = vmatmul.mubr.f32.gmra.mrb[76].mxu0 %v7306_v42  ;;  %v7308_v2 = vmax.f32 %v7298_v43, 0.0  ;;  %9250 = vmatpush3.bf16.msra.mxu1 %v9247_v0  ;;  %v9251_v42 = vpack.c.bf16 %v7584_v29, %v7583_v34  ;;  %v7734_v0 = vld [vmem:[%s11273_s5 + $0x60] sm:$0xff] }
0x151c   :  { %v7307_v61 = vmax.f32 %v7293_v10, 0.0  ;;  %v9267_v34 = vpack.c.bf16 %v7734_v0, %v7733_v47 }
0x151d   :  { %9252 = vmatprep.subr.bf16.mxu1 %v9251_v42 }
0x151e   :  { %9096 = vmatprep.mubr.f32.mxu0 %v7307_v61 }
0x151f   :  { %9097 = vmatmul.mubr.f32.gmra.mrb[78].mxu0 %v7308_v2  ;;  %9254 = vmatpush3.bf16.msra.mxu1 %v9251_v42 }
0x1561   :  { %v9089_v19 = vpop.f32.mrb[72].mxu0 }
0x1562   :  { %v7431_v60 = vadd.f32 %v9089_v19, %v10893_v57  ;;  %v7391_v48 = vpop.f32.mrb[73].mxu0 }
0x1563   :  { %v7430_v39 = vadd.f32 %v7391_v48, %v10889_v20 }
0x1564   :  { %v7444_v45 = vadd.f32 %v8244_v26, %v7431_v60 }
0x1565   :  { %v7443_v46 = vadd.f32 %v8244_v26, %v7430_v39  ;;  %v9092_v41 = vpop.f32.mrb[74].mxu0 }
0x1566   :  { %v7433_v35 = vadd.f32 %v9092_v41, %v10905_v40  ;;  %v7401_v14 = vpop.f32.mrb[75].mxu0  ;;  %v7456_v1 = vsel %vm34_vm1, %v7444_v45, 0.0 }
0x1567   :  { %v7432_v6 = vadd.f32 %v7401_v14, %v10902_v12  ;;  %7457 = vadd.xlane.f32.xlu1 %v7456_v1  ;;  %v7453_v7 = vsel %vm34_vm1, %v7443_v46, 0.0 }
0x1568   :  { %v7446_v23 = vadd.f32 %v8244_v26, %v7433_v35  ;;  %7454 = vadd.xlane.f32.xlu0 %v7453_v7 }
0x1569   :  { %v7445_v56 = vadd.f32 %v8244_v26, %v7432_v6 }
0x156a   :  { %v7462_v57 = vsel %vm34_vm1, %v7446_v23, 0.0 }
0x156b   :  { %7463 = vadd.xlane.f32.xlu1 %v7462_v57  ;;  %v7459_v20 = vsel %vm34_vm1, %v7445_v56, 0.0 }
0x156c   :  { %7460 = vadd.xlane.f32.xlu0 %v7459_v20 }
0x15ee   :  { %v9095_v15 = vpop.f32.mrb[76].mxu0 }
0x15ef   :  { %v7435_v40 = vadd.f32 %v9095_v15, %v10969_v22  ;;  %v7411_v54 = vpop.f32.mrb[77].mxu0 }
0x15f0   :  { %v7434_v59 = vadd.f32 %v7411_v54, %v10965_v50 }
0x15f1   :  { %v7448_v28 = vadd.f32 %v8244_v26, %v7435_v40 }
0x15f2   :  { %v7447_v12 = vadd.f32 %v8244_v26, %v7434_v59  ;;  %v9098_v37 = vpop.f32.mrb[78].mxu0 }
0x15f3   :  { %v7437_v55 = vadd.f32 %v9098_v37, %v10981_v9  ;;  %v7421_v24 = vpop.f32.mrb[79].mxu0  ;;  %v7468_v62 = vsel %vm34_vm1, %v7448_v28, 0.0 }
0x15f4   :  { %v7436_v16 = vadd.f32 %v7421_v24, %v10978_v38  ;;  %v7458_v58 = vpop.xlane.xlu1 %7457  ;;  %7469 = vadd.xlane.f32.xlu1 %v7468_v62  ;;  %v7465_v3 = vsel %vm34_vm1, %v7447_v12, 0.0 }
0x15f5   :  { %v7450_v36 = vadd.f32 %v8244_v26, %v7437_v55  ;;  %v7478_v4 = vmul.f32 0.03125, %v7458_v58  ;;  %7466 = vadd.xlane.f32.xlu0 %v7465_v3  ;;  %v7455_v25 = vpop.xlane.xlu0 %7454  ;;  %v11064_v58 = vld [vmem:[%s11270_s4 + $0x14] ss:$0 sm:$0xff] }
0x15f6   :  { %v7449_v22 = vadd.f32 %v8244_v26, %v7436_v16  ;;  %v7477_v50 = vmul.f32 0.03125, %v7455_v25  ;;  %v11071_v25 = vld [vmem:[%s11270_s4 + $0x15] ss:$0 sm:$0xff] }
0x15f7   :  { %v11007_v49 = vsub.f32 %v7444_v45, %v7478_v4  ;;  %v7474_v30 = vsel %vm34_vm1, %v7450_v36, 0.0 }
0x15f8   :  { %v11010_v9 = vsub.f32 %v7443_v46, %v7477_v50  ;;  %v7464_v52 = vpop.xlane.xlu1 %7463  ;;  %7475 = vadd.xlane.f32.xlu1 %v7474_v30  ;;  %v7471_v38 = vsel %vm34_vm1, %v7449_v22, 0.0 }
0x15f9   :  { %v7480_v33 = vmul.f32 0.03125, %v7464_v52  ;;  %7472 = vadd.xlane.f32.xlu0 %v7471_v38  ;;  %v7461_v11 = vpop.xlane.xlu0 %7460  ;;  %v7494_v53 = vmul.f32 %v11007_v49, %v11007_v49 }
0x15fa   :  { %v7479_v5 = vmul.f32 0.03125, %v7461_v11  ;;  %v7493_v21 = vmul.f32 %v11010_v9, %v11010_v9 }
0x15fb   :  { %v11017_v51 = vsub.f32 %v7446_v23, %v7480_v33  ;;  %v7504_v27 = vsel %vm34_vm1, %v7494_v53, 0.0 }
0x15fc   :  { %v11020_v63 = vsub.f32 %v7445_v56, %v7479_v5  ;;  %7505 = vadd.xlane.f32.xlu1 %v7504_v27  ;;  %v7501_v17 = vsel %vm34_vm1, %v7493_v21, 0.0  ;;  %v7728_v27 = vld [vmem:[%s11273_s5 + $0x30] sm:$0xff] }
0x15fd   :  { %7502 = vadd.xlane.f32.xlu0 %v7501_v17  ;;  %v7496_v13 = vmul.f32 %v11017_v51, %v11017_v51 }
0x15fe   :  { %v7495_v32 = vmul.f32 %v11020_v63, %v11020_v63 }
0x15ff   :  { %v7510_v8 = vsel %vm34_vm1, %v7496_v13, 0.0  ;;  %v7730_v13 = vld [vmem:[%s11273_s5 + $0x40] sm:$0xff] }
0x1600   :  { %7511 = vadd.xlane.f32.xlu1 %v7510_v8  ;;  %v7507_v18 = vsel %vm34_vm1, %v7495_v32, 0.0  ;;  %v7731_v8 = vld [vmem:[%s11273_s5 + $0x48] sm:$0xff] }
0x1601   :  { %7508 = vadd.xlane.f32.xlu0 %v7507_v18  ;;  %v7732_v18 = vld [vmem:[%s11273_s5 + $0x50] sm:$0xff] }
0x1602   :  { %v9263_v44 = vpack.c.bf16 %v7732_v18, %v7731_v8 }
0x1681   :  { %v7470_v43 = vpop.xlane.xlu1 %7469 }
0x1682   :  { %v7482_v31 = vmul.f32 0.03125, %v7470_v43  ;;  %v7467_v10 = vpop.xlane.xlu0 %7466 }
0x1683   :  { %v7481_v61 = vmul.f32 0.03125, %v7467_v10 }
0x1684   :  { %v11041_v2 = vsub.f32 %v7448_v28, %v7482_v31 }
0x1685   :  { %v11043_v19 = vsub.f32 %v7447_v12, %v7481_v61  ;;  %v7476_v26 = vpop.xlane.xlu1 %7475 }
0x1686   :  { %v7484_v60 = vmul.f32 0.03125, %v7476_v26  ;;  %v7473_v48 = vpop.xlane.xlu0 %7472  ;;  %v7498_v39 = vmul.f32 %v11041_v2, %v11041_v2 }
0x1687   :  { %v7483_v45 = vmul.f32 0.03125, %v7473_v48  ;;  %v7497_v46 = vmul.f32 %v11043_v19, %v11043_v19 }
0x1688   :  { %v11049_v41 = vsub.f32 %v7450_v36, %v7484_v60  ;;  %v7516_v35 = vsel %vm34_vm1, %v7498_v39, 0.0 }
0x1689   :  { %v11052_v14 = vsub.f32 %v7449_v22, %v7483_v45  ;;  %7517 = vadd.xlane.f32.xlu1 %v7516_v35  ;;  %v7506_v1 = vpop.xlane.xlu1 %7505  ;;  %v7513_v6 = vsel %vm34_vm1, %v7497_v46, 0.0 }
0x168a   :  { %v7526_v7 = vmul.f32 0.03125, %v7506_v1  ;;  %7514 = vadd.xlane.f32.xlu0 %v7513_v6  ;;  %v7503_v23 = vpop.xlane.xlu0 %7502  ;;  %v7500_v56 = vmul.f32 %v11049_v41, %v11049_v41 }
0x168b   :  { %v7525_v57 = vmul.f32 0.03125, %v7503_v23  ;;  %v7499_v20 = vmul.f32 %v11052_v14, %v11052_v14 }
0x168c   :  { %v7534_v15 = vadd.f32 1e-05, %v7526_v7  ;;  %v7522_v40 = vsel %vm34_vm1, %v7500_v56, 0.0 }
0x168d   :  { %v7533_v54 = vadd.f32 1e-05, %v7525_v57  ;;  %7523 = vadd.xlane.f32.xlu1 %v7522_v40  ;;  %v7512_v59 = vpop.xlane.xlu1 %7511  ;;  %v7519_v28 = vsel %vm34_vm1, %v7499_v20, 0.0 }
0x168e   :  { %9502 = vrsqrt.f32 %v7534_v15  ;;  %v7528_v12 = vmul.f32 0.03125, %v7512_v59  ;;  %7520 = vadd.xlane.f32.xlu0 %v7519_v28  ;;  %v7509_v37 = vpop.xlane.xlu0 %7508 }
0x168f   :  { %9504 = vrsqrt.f32 %v7533_v54  ;;  %v7527_v55 = vmul.f32 0.03125, %v7509_v37 }
0x1690   :  { %v7536_v24 = vadd.f32 1e-05, %v7528_v12 }
0x1691   :  { %v7535_v62 = vadd.f32 1e-05, %v7527_v55 }
0x1692   :  { %9506 = vrsqrt.f32 %v7536_v24 }
0x1693   :  { %9508 = vrsqrt.f32 %v7535_v62 }
0x1698   :  { %v9503_v16 = vpop.eup %9502 }
0x1699   :  { %v9505_v3 = vpop.eup %9504  ;;  %v7550_v36 = vmul.f32 %v9503_v16, %v11007_v49 }
0x169a   :  { %v7549_v4 = vmul.f32 %v9505_v3, %v11010_v9 }
0x169b   :  { %v7562_v22 = vmul.f32 %v11064_v58, %v7550_v36 }
0x169c   :  { %v9507_v50 = vpop.eup %9506  ;;  %v7561_v30 = vmul.f32 %v11064_v58, %v7549_v4 }
0x169d   :  { %v9509_v52 = vpop.eup %9508  ;;  %v7552_v38 = vmul.f32 %v9507_v50, %v11017_v51  ;;  %v7574_v49 = vadd.f32 %v11071_v25, %v7562_v22  ;;  %v7727_v51 = vld [vmem:[%s11273_s5 + $0x28] sm:$0xff] }
0x169e   :  { %v7573_v33 = vadd.f32 %v11071_v25, %v7561_v30  ;;  %v7551_v11 = vmul.f32 %v9509_v52, %v11020_v63  ;;  %v7729_v63 = vld [vmem:[%s11273_s5 + $0x38] sm:$0xff]  ;;  %v9255_v17 = vpack.c.bf16 %v7728_v27, %v7727_v51  ;;  %v11141_v27 = vld [vmem:[%s11273_s5 + $0x68] ss:$0 sm:$0xff] }
0x169f   :  { %v7564_v9 = vmul.f32 %v11064_v58, %v7552_v38  ;;  %v9259_v32 = vpack.c.bf16 %v7730_v13, %v7729_v63 }
0x16a0   :  { %9107 = vmatprep.mubr.msk.f32.mxu1 %vm34_vm1, %v7573_v33  ;;  %v7563_v53 = vmul.f32 %v11064_v58, %v7551_v11  ;;  %9256 = vmatprep.subr.bf16.mxu1 %v9255_v17 }
0x16a1   :  { %9108 = vmatmul.mubr.msk.f32.vlgmr.msra.gmra.mrb[100].mxu1 %vm34_vm1, %v7574_v49  ;;  %v7576_v21 = vadd.f32 %v11071_v25, %v7564_v9 }
0x16a2   :  { %v7575_v5 = vadd.f32 %v11071_v25, %v7563_v53  ;;  %9258 = vmatpush3.bf16.msra.mxu1 %v9255_v17 }
0x16a3   :  { %9260 = vmatprep.subr.bf16.mxu1 %v9259_v32 }
0x16a4   :  { %9110 = vmatprep.mubr.msk.f32.mxu1 %vm34_vm1, %v7575_v5 }
0x16a5   :  { %9111 = vmatmul.mubr.msk.f32.gmra.mrb[102].mxu1 %vm34_vm1, %v7576_v21 }
0x16a6   :  { %9262 = vmatpush3.bf16.msra.mxu1 %v9259_v32 }
0x16a7   :  { %9264 = vmatprep.subr.bf16.mxu1 %v9263_v44 }
0x16aa   :  { %9266 = vmatpush3.bf16.msra.mxu1 %v9263_v44 }
0x16ab   :  { %9268 = vmatprep.subr.bf16.mxu1 %v9267_v34 }
0x16ae   :  { %9270 = vmatpush3.bf16.msra.mxu1 %v9267_v34 }
0x1716   :  { %v7518_v29 = vpop.xlane.xlu1 %7517 }
0x1717   :  { %v7530_v42 = vmul.f32 0.03125, %v7518_v29  ;;  %v7515_v43 = vpop.xlane.xlu0 %7514 }
0x1718   :  { %v7529_v31 = vmul.f32 0.03125, %v7515_v43 }
0x1719   :  { %v7538_v10 = vadd.f32 1e-05, %v7530_v42 }
0x171a   :  { %v7537_v61 = vadd.f32 1e-05, %v7529_v31  ;;  %v7524_v26 = vpop.xlane.xlu1 %7523 }
0x171b   :  { %9510 = vrsqrt.f32 %v7538_v10  ;;  %v7532_v60 = vmul.f32 0.03125, %v7524_v26  ;;  %v7521_v48 = vpop.xlane.xlu0 %7520 }
0x171c   :  { %9512 = vrsqrt.f32 %v7537_v61  ;;  %v7531_v39 = vmul.f32 0.03125, %v7521_v48 }
0x171d   :  { %v7540_v45 = vadd.f32 1e-05, %v7532_v60 }
0x171e   :  { %v7539_v46 = vadd.f32 1e-05, %v7531_v39 }
0x171f   :  { %9514 = vrsqrt.f32 %v7540_v45 }
0x1720   :  { %9516 = vrsqrt.f32 %v7539_v46 }
0x1725   :  { %v9511_v35 = vpop.eup %9510 }
0x1726   :  { %v9513_v1 = vpop.eup %9512  ;;  %v7554_v6 = vmul.f32 %v9511_v35, %v11041_v2 }
0x1727   :  { %v7553_v7 = vmul.f32 %v9513_v1, %v11043_v19 }
0x1728   :  { %v7566_v23 = vmul.f32 %v11064_v58, %v7554_v6 }
0x1729   :  { %v9515_v56 = vpop.eup %9514  ;;  %v7565_v57 = vmul.f32 %v11064_v58, %v7553_v7 }
0x172a   :  { %v9517_v20 = vpop.eup %9516  ;;  %v7556_v15 = vmul.f32 %v9515_v56, %v11049_v41  ;;  %v7578_v59 = vadd.f32 %v11071_v25, %v7566_v23  ;;  %v8249_v41 = vld [vmem:[%s11273_s5 + $0x20] ss:$0 sm:$0xff] }
0x172b   :  { %v7577_v40 = vadd.f32 %v11071_v25, %v7565_v57  ;;  %v7555_v54 = vmul.f32 %v9517_v20, %v11052_v14 }
0x172c   :  { %v7568_v28 = vmul.f32 %v11064_v58, %v7556_v15 }
0x172d   :  { %9113 = vmatprep.mubr.msk.f32.mxu1 %vm34_vm1, %v7577_v40  ;;  %v7567_v2 = vmul.f32 %v11064_v58, %v7555_v54 }
0x172e   :  { %9114 = vmatmul.mubr.msk.f32.gmra.mrb[104].mxu1 %vm34_vm1, %v7578_v59  ;;  %v7580_v12 = vadd.f32 %v11071_v25, %v7568_v28 }
0x172f   :  { %v7579_v19 = vadd.f32 %v11071_v25, %v7567_v2 }
0x1731   :  { %9116 = vmatprep.mubr.msk.f32.mxu1 %vm34_vm1, %v7579_v19 }
0x1732   :  { %9117 = vmatmul.mubr.msk.f32.gmra.mrb[106].mxu1 %vm34_vm1, %v7580_v12 }
0x1774   :  { %v9109_v14 = vpop.f32.mrb[100].mxu1 }
0x1775   :  { %v7686_v37 = vadd.f32 %v9109_v14, %v8249_v41  ;;  %v7680_v55 = vpop.f32.mrb[101].mxu1 }
0x1776   :  { %v7681_v24 = vadd.f32 %v8249_v41, %v7680_v55 }
0x1777   :  { %v7720_v58 = vmax.f32 %v7686_v37, 0.0 }
0x1778   :  { %v7719_v62 = vmax.f32 %v7681_v24, 0.0  ;;  %v9112_v16 = vpop.f32.mrb[102].mxu1 }
0x1779   :  { %v7696_v3 = vadd.f32 %v9112_v16, %v8249_v41  ;;  %v7690_v36 = vpop.f32.mrb[103].mxu1 }
0x177a   :  { %v7691_v4 = vadd.f32 %v8249_v41, %v7690_v36  ;;  %9135 = vmatprep.mubr.msk.f32.mxu1 %vm7740_vm3, %v7719_v62 }
0x177b   :  { %9136 = vmatmul.mubr.msk.f32.vlgmr.msra.gmra.mrb[108].mxu1 %vm7740_vm3, %v7720_v58  ;;  %v7722_v22 = vmax.f32 %v7696_v3, 0.0 }
0x177c   :  { %v7721_v25 = vmax.f32 %v7691_v4, 0.0 }
0x177e   :  { %9138 = vmatprep.mubr.msk.f32.mxu1 %vm7740_vm3, %v7721_v25 }
0x177f   :  { %9139 = vmatmul.mubr.msk.f32.gmra.mrb[110].mxu1 %vm7740_vm3, %v7722_v22 }
0x1801   :  { %v9115_v50 = vpop.f32.mrb[104].mxu1 }
0x1802   :  { %v7706_v30 = vadd.f32 %v9115_v50, %v8249_v41  ;;  %v7700_v52 = vpop.f32.mrb[105].mxu1 }
0x1803   :  { %v7701_v38 = vadd.f32 %v8249_v41, %v7700_v52 }
0x1804   :  { %v7724_v49 = vmax.f32 %v7706_v30, 0.0 }
0x1805   :  { %v7723_v33 = vmax.f32 %v7701_v38, 0.0  ;;  %v9118_v11 = vpop.f32.mrb[106].mxu1 }
0x1806   :  { %v7716_v9 = vadd.f32 %v9118_v11, %v8249_v41  ;;  %v7710_v53 = vpop.f32.mrb[107].mxu1 }
0x1807   :  { %v7711_v5 = vadd.f32 %v8249_v41, %v7710_v53  ;;  %9141 = vmatprep.mubr.msk.f32.mxu1 %vm7740_vm3, %v7723_v33 }
0x1808   :  { %9142 = vmatmul.mubr.msk.f32.gmra.mrb[112].mxu1 %vm7740_vm3, %v7724_v49  ;;  %v7726_v51 = vmax.f32 %v7716_v9, 0.0 }
0x1809   :  { %v7725_v21 = vmax.f32 %v7711_v5, 0.0 }
0x180b   :  { %9144 = vmatprep.mubr.msk.f32.mxu1 %vm7740_vm3, %v7725_v21 }
0x180c   :  { %9145 = vmatmul.mubr.msk.f32.gmra.mrb[114].mxu1 %vm7740_vm3, %v7726_v51 }
0x184e   :  { %v9137_v63 = vpop.f32.mrb[108].mxu1 }
0x184f   :  { %v7837_v17 = vadd.f32 %v9137_v63, %v11141_v27  ;;  %v7831_v13 = vpop.f32.mrb[109].mxu1 }
0x1850   :  { %v7832_v32 = vadd.f32 %v11141_v27, %v7831_v13 }
0x1851   :  { %9518 = vtanh.f32 %v7837_v17 }
0x1852   :  { %9520 = vtanh.f32 %v7832_v32  ;;  %v9140_v8 = vpop.f32.mrb[110].mxu1 }
0x1853   :  { %v7847_v18 = vadd.f32 %v9140_v8, %v11141_v27  ;;  %v7841_v44 = vpop.f32.mrb[111].mxu1 }
0x1854   :  { %v7842_v47 = vadd.f32 %v11141_v27, %v7841_v44 }
0x1855   :  { %9522 = vtanh.f32 %v7847_v18 }
0x1856   :  { %9524 = vtanh.f32 %v7842_v47 }
0x185b   :  { %v9519_v0 = vpop.eup %9518 }
0x185c   :  { %v9521_v34 = vpop.eup %9520  ;;  %v7945_v29 = vrot.slane %v9519_v0, 2  ;;  %v7979_v42 = vrot.slane %v9519_v0, 4  ;;  %v8013_v43 = vrot.slane %v9519_v0, 6  ;;  %v7929_v31 = vrot.slane %v9519_v0, 1 }
0x185d   :  { %v7944_v10 = vrot.slane %v9521_v34, 3  ;;  %v7909_v61 = vrot.slane %v9521_v34, 1  ;;  %v7978_v26 = vrot.slane %v9521_v34, 5  ;;  %v8012_v60 = vrot.slane %v9521_v34, 7 }
0x185e   :  { %v7928_v48 = vrot.slane %v9521_v34, 2  ;;  %v7886_v39 = vrot.slane %v9519_v0, 7  ;;  %v7962_v56 = vrot.slane %v9521_v34, 4  ;;  %v7963_v57 = vrot.slane %v9519_v0, 3 }
0x185f   :  { %v9523_v45 = vpop.eup %9522  ;;  %v7946_v46 = vsel %vm7887_vm4, %v7945_v29, %v7944_v10  ;;  %v7910_v35 = vsel %vm7887_vm4, %v9519_v0, %v7909_v61  ;;  %v7980_v1 = vsel %vm7887_vm4, %v7979_v42, %v7978_v26  ;;  %v8014_v6 = vsel %vm7887_vm4, %v8013_v43, %v8012_v60 }
0x1860   :  { %v9525_v7 = vpop.eup %9524  ;;  %v7930_v23 = vsel %vm7887_vm4, %v7929_v31, %v7928_v48  ;;  %v7932_v28 = vrot.slane %v9523_v45, 7  ;;  %v7888_v2 = vsel %vm7887_vm4, %v7886_v39, %v9521_v34  ;;  %v7913_v12 = vrot.slane %v9523_v45, 6 }
0x1861   :  { %v7947_v20 = vrot.slane %v9525_v7, 1  ;;  %v7911_v15 = vrot.slane %v9525_v7, 7  ;;  %v7981_v40 = vrot.slane %v9525_v7, 3  ;;  %v8015_v54 = vrot.slane %v9525_v7, 5 }
0x1862   :  { %v7931_v59 = vsel %vm7890_vm5, %v9525_v7, %v7930_v23  ;;  %v7889_v19 = vrot.slane %v9525_v7, 6  ;;  %v7983_v41 = vrot.slane %v9523_v45, 2  ;;  %v8017_v14 = vrot.slane %v9523_v45, 4 }
0x1863   :  { %v7948_v37 = vsel %vm7890_vm5, %v7947_v20, %v7946_v46  ;;  %v7912_v55 = vsel %vm7890_vm5, %v7911_v15, %v7910_v35  ;;  %v7982_v24 = vsel %vm7890_vm5, %v7981_v40, %v7980_v1  ;;  %v8016_v62 = vsel %vm7890_vm5, %v8015_v54, %v8014_v6 }
0x1864   :  { %v7949_v16 = vsel %vm7893_vm6, %v9523_v45, %v7948_v37  ;;  %v7914_v58 = vsel %vm7893_vm6, %v7913_v12, %v7912_v55  ;;  %v7984_v3 = vsel %vm7893_vm6, %v7983_v41, %v7982_v24  ;;  %v8018_v36 = vsel %vm7893_vm6, %v8017_v14, %v8016_v62 }
0x1865   :  { %v11163_v4 = vsel %vm7893_vm6, %v7932_v28, %v7931_v59  ;;  %v7891_v25 = vsel %vm7890_vm5, %v7889_v19, %v7888_v2  ;;  %v7892_v22 = vrot.slane %v9523_v45, 5  ;;  %v7964_v50 = vsel %vm7887_vm4, %v7963_v57, %v7962_v56 }
0x1866   :  { %v7965_v30 = vrot.slane %v9525_v7, 2  ;;  %v7996_v52 = vrot.slane %v9521_v34, 6  ;;  %v7997_v38 = vrot.slane %v9519_v0, 5  ;;  %v7967_v11 = vrot.slane %v9523_v45, 1 }
0x1867   :  { %v11168_v33 = vsel %vm7893_vm6, %v7892_v22, %v7891_v25  ;;  %v7999_v49 = vrot.slane %v9525_v7, 4  ;;  %v8001_v5 = vrot.slane %v9523_v45, 3 }
0x1868   :  { %v7966_v9 = vsel %vm7890_vm5, %v7965_v30, %v7964_v50  ;;  %v7998_v53 = vsel %vm7887_vm4, %v7997_v38, %v7996_v52 }
0x1869   :  { %v7968_v21 = vsel %vm7893_vm6, %v7967_v11, %v7966_v9  ;;  %v8000_v51 = vsel %vm7890_vm5, %v7999_v49, %v7998_v53 }
0x186a   :  { %v11175_v63 = vsel %vm7893_vm6, %v8001_v5, %v8000_v51 }
0x18db   :  { %v9143_v17 = vpop.f32.mrb[112].mxu1 }
0x18dc   :  { %v7857_v13 = vadd.f32 %v9143_v17, %v11141_v27  ;;  %v7851_v32 = vpop.f32.mrb[113].mxu1 }
0x18dd   :  { %v7852_v8 = vadd.f32 %v11141_v27, %v7851_v32 }
0x18de   :  { %9526 = vtanh.f32 %v7857_v13 }
0x18df   :  { %9528 = vtanh.f32 %v7852_v8  ;;  %v9146_v18 = vpop.f32.mrb[114].mxu1 }
0x18e0   :  { %v7867_v44 = vadd.f32 %v9146_v18, %v11141_v27  ;;  %v7861_v47 = vpop.f32.mrb[115].mxu1 }
0x18e1   :  { %v7862_v0 = vadd.f32 %v11141_v27, %v7861_v47 }
0x18e2   :  { %9530 = vtanh.f32 %v7867_v44 }
0x18e3   :  { %9532 = vtanh.f32 %v7862_v0 }
0x18e8   :  { %v11181_v34 = vpop.eup %9526 }
0x18e9   :  { %v11183_v29 = vpop.eup %9528  ;;  %v7952_v42 = vrot.slane %v11181_v34, 6  ;;  %v7917_v43 = vrot.slane %v11181_v34, 4  ;;  %v8021_v31 = vrot.slane %v11181_v34, 2  ;;  %v7936_v10 = vrot.slane %v11181_v34, 5 }
0x18ea   :  { %v7950_v27 = vrot.slane %v11183_v29, 7  ;;  %v7915_v61 = vrot.slane %v11183_v29, 5  ;;  %v7985_v26 = vrot.slane %v11183_v29, 1  ;;  %v8019_v60 = vrot.slane %v11183_v29, 3 }
0x18eb   :  { %v7934_v48 = vrot.slane %v11183_v29, 6  ;;  %v7895_v39 = vrot.slane %v11183_v29, 4  ;;  %v7898_v45 = vrot.slane %v11181_v34, 3  ;;  %v7969_v46 = vsel %vm7896_vm7, %v11183_v29, %v7968_v21 }
0x18ec   :  { %v9531_v35 = vpop.eup %9530  ;;  %v7951_v1 = vsel %vm7896_vm7, %v7950_v27, %v7949_v16  ;;  %v7916_v6 = vsel %vm7896_vm7, %v7915_v61, %v7914_v58  ;;  %v7986_v7 = vsel %vm7896_vm7, %v7985_v26, %v7984_v3  ;;  %v8020_v23 = vsel %vm7896_vm7, %v8019_v60, %v8018_v36 }
0x18ed   :  { %v9533_v56 = vpop.eup %9532  ;;  %v7953_v57 = vsel %vm7899_vm8, %v7952_v42, %v7951_v1  ;;  %v7956_v20 = vrot.slane %v9531_v35, 4  ;;  %v7918_v15 = vsel %vm7899_vm8, %v7917_v43, %v7916_v6  ;;  %v7921_v40 = vrot.slane %v9531_v35, 2 }
0x18ee   :  { %v7954_v54 = vrot.slane %v9533_v56, 5  ;;  %v7919_v59 = vrot.slane %v9533_v56, 3  ;;  %v7987_v28 = vsel %vm7899_vm8, %v11181_v34, %v7986_v7  ;;  %v7988_v2 = vrot.slane %v9533_v56, 7 }
0x18ef   :  { %v7990_v19 = vrot.slane %v9531_v35, 6  ;;  %v8022_v12 = vsel %vm7899_vm8, %v8021_v31, %v8020_v23  ;;  %v8023_v41 = vrot.slane %v9533_v56, 1  ;;  %v7935_v14 = vsel %vm7896_vm7, %v7934_v48, %v11163_v4 }
0x18f0   :  { %v7955_v37 = vsel %vm7902_vm9, %v7954_v54, %v7953_v57  ;;  %v7920_v55 = vsel %vm7902_vm9, %v7919_v59, %v7918_v15  ;;  %v7989_v24 = vsel %vm7902_vm9, %v7988_v2, %v7987_v28  ;;  %v7937_v62 = vsel %vm7899_vm8, %v7936_v10, %v7935_v14 }
0x18f1   :  { %v7957_v16 = vsel %vm7905_vm10, %v7956_v20, %v7955_v37  ;;  %v7922_v58 = vsel %vm7905_vm10, %v7921_v40, %v7920_v55  ;;  %v7991_v3 = vsel %vm7905_vm10, %v7990_v19, %v7989_v24  ;;  %v8024_v36 = vsel %vm7902_vm9, %v8023_v41, %v8022_v12 }
0x18f2   :  { %7958 = vrot.lane.b32.xlu1 %v7957_v16, %s9540_s23  ;;  %7923 = vrot.lane.b32.xlu0 %v7922_v58, %s9540_s23  ;;  %v8025_v4 = vsel %vm7905_vm10, %v9531_v35, %v8024_v36  ;;  %v7940_v25 = vrot.slane %v9531_v35, 3  ;;  %v7938_v22 = vrot.slane %v9533_v56, 4  ;;  %v7897_v50 = vsel %vm7896_vm7, %v7895_v39, %v11168_v33 }
0x18f3   :  { %v7900_v30 = vsel %vm7899_vm8, %v7898_v45, %v7897_v50  ;;  %v7904_v52 = vrot.slane %v9531_v35, 1  ;;  %v7901_v38 = vrot.slane %v9533_v56, 2  ;;  %v7970_v11 = vrot.slane %v11181_v34, 7 }
0x18f4   :  { %v7939_v49 = vsel %vm7902_vm9, %v7938_v22, %v7937_v62  ;;  %v7972_v9 = vrot.slane %v9533_v56, 6  ;;  %v7974_v53 = vrot.slane %v9531_v35, 5  ;;  %v8003_v5 = vrot.slane %v11183_v29, 2 }
0x18f5   :  { %v7941_v21 = vsel %vm7905_vm10, %v7940_v25, %v7939_v49  ;;  %v7903_v51 = vsel %vm7902_vm9, %v7901_v38, %v7900_v30  ;;  %v7971_v17 = vsel %vm7899_vm8, %v7970_v11, %v7969_v46  ;;  %v8005_v33 = vrot.slane %v11181_v34, 1 }
0x18f6   :  { %7992 = vrot.lane.b32.xlu1 %v7991_v3, %s9540_s23  ;;  %7943 = vst.msk [vmem:[%s11274_s6 + $0x8] sm:$0xff] %vm7740_vm3, %v7941_v21  ;;  %v7906_v13 = vsel %vm7905_vm10, %v7904_v52, %v7903_v51  ;;  %v7973_v32 = vsel %vm7902_vm9, %v7972_v9, %v7971_v17  ;;  %v8004_v8 = vsel %vm7896_vm7, %v8003_v5, %v11175_v63  ;;  %v8008_v18 = vrot.slane %v9531_v35, 7 }
0x18f7   :  { %7908 = vst.msk [vmem:[%s11274_s6] sm:$0xff] %vm7740_vm3, %v7906_v13  ;;  %v7975_v44 = vsel %vm7905_vm10, %v7974_v53, %v7973_v32  ;;  %v8006_v47 = vsel %vm7899_vm8, %v8005_v33, %v8004_v8 }
0x18f8   :  { %7977 = vst.msk [vmem:[%s11274_s6 + $0x10] sm:$0xff] %vm7740_vm3, %v7975_v44  ;;  %v8007_v0 = vsel %vm7902_vm9, %v9533_v56, %v8006_v47 }
0x18f9   :  { %v8009_v34 = vsel %vm7905_vm10, %v8008_v18, %v8007_v0 }
0x18fa   :  { %8026 = vrot.lane.b32.xlu1 %v8025_v4, %s9540_s23  ;;  %8011 = vst.msk [vmem:[%s11274_s6 + $0x18] sm:$0xff] %vm7740_vm3, %v8009_v34 }
0x1964   :  { %v7959_v63 = vpop.permute.xlu1 %7958  ;;  %v7924_v29 = vpop.permute.xlu0 %7923 }
0x1965   :  { %7961 = vst.msk [vmem:[%s11274_s6 + $0x8] sm:$0xff] %vm7926_vm11, %v7959_v63  ;;  %7927 = vst.msk [vmem:[%s11274_s6] sm:$0xff] %vm7926_vm11, %v7924_v29 }
0x1968   :  { %v7993_v42 = vpop.permute.xlu1 %7992 }
0x1969   :  { %7995 = vst.msk [vmem:[%s11274_s6 + $0x10] sm:$0xff] %vm7926_vm11, %v7993_v42 }
0x196c   :  { %v8027_v43 = vpop.permute.xlu1 %8026 }
0x196d   :  { %8029 = vst.msk [vmem:[%s11274_s6 + $0x18] sm:$0xff] %vm7926_vm11, %v8027_v43 }

</bundles_post_ra>
